<compile_context>
chip_gen: v7x
topology: tpu7x:2x2x1
jax: 0.10.0
libtpu: 0.0.40
codegen_flags: <defaults>
</compile_context>

<pallas_src>
import functools

import jax
import jax.numpy as jnp
from jax.experimental import pallas as pl
from jax.experimental.pallas import tpu as pltpu


# ---------------------------------------------------------------------------
# parameter folding (runs ONCE at load time, outside the jitted forward)
# ---------------------------------------------------------------------------
def _bn_affine(gamma, beta, mean, var, eps=1e-5):
    scale = (gamma / jnp.sqrt(var + eps)).astype(jnp.float32)
    shift = (beta - mean * scale).astype(jnp.float32)
    return scale, shift


def prepare_params(raw, n_heads, matmul_dtype=jnp.float32):
    """Fold BN stats, stack the three conv blocks, split attention heads and
    broadcast the ECA taps — once, at load time."""
    convs = [raw["conv1"], raw["conv2"], raw["conv3"]]
    D, C = convs[0]["exp_w"].shape
    eca_k = convs[0]["eca_w"].shape[0]

    bn = [_bn_affine(c["bn_g"], c["bn_b"], c["bn_m"], c["bn_v"]) for c in convs]
    conv = dict(
        exp_w=jnp.stack([c["exp_w"].astype(matmul_dtype) for c in convs]),
        exp_b=jnp.stack([c["exp_b"].reshape(1, C).astype(jnp.float32) for c in convs]),
        dw_w=jnp.stack([c["dw_w"].astype(jnp.float32) for c in convs]),
        bn_s=jnp.stack([s.reshape(1, C) for s, _ in bn]),
        bn_b=jnp.stack([b.reshape(1, C) for _, b in bn]),
        # ECA taps broadcast over channels: row j == tap weight j (no (C,C) band matrix)
        eca_w=jnp.stack([jnp.broadcast_to(c["eca_w"].reshape(eca_k, 1),
                                          (eca_k, C)).astype(jnp.float32)
                         for c in convs]),
        proj_w=jnp.stack([c["proj_w"].astype(matmul_dtype) for c in convs]),
        proj_b=jnp.stack([c["proj_b"].reshape(1, D).astype(jnp.float32) for c in convs]),
    )

    tf = raw["tf"]
    a = tf["attn"]
    H = n_heads
    dh = D // H
    bn1_s, bn1_b = _bn_affine(tf["bn1_g"], tf["bn1_b"], tf["bn1_m"], tf["bn1_v"])
    bn2_s, bn2_b = _bn_affine(tf["bn2_g"], tf["bn2_b"], tf["bn2_m"], tf["bn2_v"])

    def split_cols(w):  # (D, D) -> (H, D, dh): heads on the major axis
        return jnp.transpose(w.reshape(D, H, dh), (1, 0, 2)).astype(matmul_dtype)

    tfp = dict(
        bn1_s=bn1_s.reshape(1, D), bn1_b=bn1_b.reshape(1, D),
        bn2_s=bn2_s.reshape(1, D), bn2_b=bn2_b.reshape(1, D),
        # TODO(synk): original TransformerBlock reuses lnorm1 for the 2nd norm; ln2_* unused.
        ln_g=tf["ln1_g"].reshape(1, D).astype(jnp.float32),
        ln_b=tf["ln1_b"].reshape(1, D).astype(jnp.float32),
        wq=split_cols(a["wq"]), bq=a["bq"].reshape(H, 1, dh).astype(jnp.float32),
        wk=split_cols(a["wk"]), bk=a["bk"].reshape(H, 1, dh).astype(jnp.float32),
        wv=split_cols(a["wv"]), bv=a["bv"].reshape(H, 1, dh).astype(jnp.float32),
        wo=a["wo"].reshape(H, dh, D).astype(matmul_dtype),
        bo=a["bo"].reshape(1, D).astype(jnp.float32),
        ff_w1=tf["ff_w1"].astype(matmul_dtype),
        ff_b1=tf["ff_b1"].reshape(1, -1).astype(jnp.float32),
        ff_w2=tf["ff_w2"].astype(matmul_dtype),
        ff_b2=tf["ff_b2"].reshape(1, D).astype(jnp.float32),
    )
    return dict(conv=conv, tf=tfp)


# ---------------------------------------------------------------------------
# fused 3x Conv1dBlock kernel (grid over batch)
# ---------------------------------------------------------------------------
def _conv_chain_kernel(x_ref, expw_ref, expb_ref, dww_ref, bns_ref, bnb_ref,
                       ecaw_ref, projw_ref, projb_ref, o_ref, hp_ref, zp_ref,
                       *, dilation):
    n_blocks, ksize, C = dww_ref.shape
    eca_k = ecaw_ref.shape[1]
    eca_pad = eca_k // 2
    pad = (ksize - 1) * dilation

    x = x_ref[0].astype(jnp.float32)                       # (L, D) residual stream
    L = x.shape[0]
    wdt = expw_ref.dtype

    # zero the causal-pad rows / ECA edge lanes of the persistent scratches once
    if pad:
        hp_ref[0:pad, :] = jnp.zeros((pad, C), jnp.float32)
    zp_ref[...] = jnp.zeros(zp_ref.shape, jnp.float32)

    for blk in range(n_blocks):                            # 3 Conv1dBlocks, fused
        # 1) expand dense + SiLU (MXU, f32 accumulate)
        h = jnp.dot(x.astype(wdt), expw_ref[blk], preferred_element_type=jnp.float32)
        h = h + expb_ref[blk].astype(jnp.float32)
        h = h * jax.nn.sigmoid(h)

        # 2) causal depthwise conv: write the SiLU output once into the (L+pad, C)
        #    VMEM scratch, read the taps back as static-offset ref slices.
        hp_ref[pad:pad + L, :] = h
        dw = dww_ref[blk].astype(jnp.float32)              # (K, C)
        acc = jnp.zeros((L, C), jnp.float32)
        for j in range(ksize):                             # static unrolled taps
            off = j * dilation
            acc = acc + hp_ref[off:off + L, :] * dw[j:j + 1, :]

        # 3) BatchNorm1d (eval) folded to a per-channel affine
        h = acc * bns_ref[blk] + bnb_ref[blk]

        # 4) ECA gate: time-average pool -> k-tap channel conv on the pooled (1, C)
        #    vector (padded scratch + static-offset slices, row-broadcast taps)
        z = jnp.mean(h, axis=0, keepdims=True)             # (1, C)
        zp_ref[:, eca_pad:eca_pad + C] = z
        wrow = ecaw_ref[blk]                               # (eca_k, C) f32
        g = jnp.zeros((1, C), jnp.float32)
        for j in range(eca_k):
            g = g + zp_ref[:, j:j + C] * wrow[j:j + 1, :]
        h = h * jax.nn.sigmoid(g)

        # 5) project back + residual (dropout = identity at inference)
        y = jnp.dot(h.astype(wdt), projw_ref[blk], preferred_element_type=jnp.float32)
        x = x + y + projb_ref[blk].astype(jnp.float32)

    o_ref[0] = x.astype(o_ref.dtype)


def conv_chain(x, cp, *, dilation=1):
    """All three Conv1dBlocks fused into a single pallas_call (grid over batch)."""
    B, L, D = x.shape
    n_blocks, K, C = cp["dw_w"].shape
    eca_k = cp["eca_w"].shape[1]
    eca_pad = eca_k // 2
    pad = (K - 1) * dilation

    def const3(shape):
        return pl.BlockSpec(shape, lambda b: (0, 0, 0))

    return pl.pallas_call(
        functools.partial(_conv_chain_kernel, dilation=dilation),
        out_shape=jax.ShapeDtypeStruct((B, L, D), x.dtype),
        grid=(B,),
        in_specs=[
            pl.BlockSpec((1, L, D), lambda b: (b, 0, 0)),   # x
            const3((n_blocks, D, C)),                       # expand weights
            const3((n_blocks, 1, C)),                       # expand bias
            const3((n_blocks, K, C)),                       # depthwise weights
            const3((n_blocks, 1, C)),                       # bn scale
            const3((n_blocks, 1, C)),                       # bn shift
            const3((n_blocks, eca_k, C)),                   # ECA taps (row-broadcast)
            const3((n_blocks, C, D)),                       # proj weights
            const3((n_blocks, 1, D)),                       # proj bias
        ],
        out_specs=pl.BlockSpec((1, L, D), lambda b: (b, 0, 0)),
        scratch_shapes=[
            pltpu.VMEM((L + pad, C), jnp.float32),          # causal-pad dwconv buffer
            pltpu.VMEM((1, C + 2 * eca_pad), jnp.float32),  # padded pooled vector
        ],
        compiler_params=pltpu.CompilerParams(
            dimension_semantics=("parallel",),
            vmem_limit_bytes=64 * 1024 * 1024),
    )(x, cp["exp_w"], cp["exp_b"], cp["dw_w"], cp["bn_s"], cp["bn_b"],
      cp["eca_w"], cp["proj_w"], cp["proj_b"])


# ---------------------------------------------------------------------------
# fused TransformerBlock kernel (grid over batch)
# ---------------------------------------------------------------------------
def _transformer_kernel(*refs, eps, has_mask):
    if has_mask:
        (x_ref, mbias_ref, bn1s_ref, bn1b_ref, lng_ref, lnb_ref,
         wq_ref, bq_ref, wk_ref, bk_ref, wv_ref, bv_ref, wo_ref, bo_ref,
         bn2s_ref, bn2b_ref, w1_ref, b1_ref, w2_ref, b2_ref, o_ref) = refs
    else:
        (x_ref, bn1s_ref, bn1b_ref, lng_ref, lnb_ref,
         wq_ref, bq_ref, wk_ref, bk_ref, wv_ref, bv_ref, wo_ref, bo_ref,
         bn2s_ref, bn2b_ref, w1_ref, b1_ref, w2_ref, b2_ref, o_ref) = refs
        mbias_ref = None

    n_heads, _, dh = wq_ref.shape
    inv_scale = 1.0 / (float(dh) ** 0.5)
    wdt = wq_ref.dtype
    x = x_ref[0].astype(jnp.float32)                       # (L, D)

    ln_g = lng_ref[...]
    ln_b = lnb_ref[...]

    def layer_norm(h):
        mu = jnp.mean(h, axis=-1, keepdims=True)
        var = jnp.mean(jnp.square(h - mu), axis=-1, keepdims=True)
        return (h - mu) * jax.lax.rsqrt(var + eps) * ln_g + ln_b

    # --- BN1 (folded affine) + LN1 -> multi-head self-attention -> O-proj -> +skip
    h = layer_norm(x * bn1s_ref[...] + bn1b_ref[...])
    hc = h.astype(wdt)
    attn = jnp.zeros_like(x)                               # (L, D) f32 accumulator
    for hh in range(n_heads):                              # heads on the major axis
        q = jnp.dot(hc, wq_ref[hh], preferred_element_type=jnp.float32) + bq_ref[hh]
        k = jnp.dot(hc, wk_ref[hh], preferred_element_type=jnp.float32) + bk_ref[hh]
        v = jnp.dot(hc, wv_ref[hh], preferred_element_type=jnp.float32) + bv_ref[hh]
        s = jax.lax.dot_general(q.astype(wdt), k.astype(wdt),
                                (((1,), (1,)), ((), ())),
                                preferred_element_type=jnp.float32) * inv_scale
        if has_mask:
            s = s + mbias_ref[0]                           # additive (1, L) mask bias
        s = s - jnp.max(s, axis=-1, keepdims=True)
        p = jnp.exp(s)
        p = p * pl.reciprocal(jnp.sum(p, axis=-1, keepdims=True), approx=True)
        oh = jnp.dot(p.astype(wdt), v.astype(wdt), preferred_element_type=jnp.float32)
        # fold this head's slice of the O-projection in directly (no head concat)
        attn = attn + jnp.dot(oh.astype(wdt), wo_ref[hh],
                              preferred_element_type=jnp.float32)
    h1 = x + attn + bo_ref[...]                            # dropout = identity

    # --- BN2 (folded affine) + LN1 (original reuses lnorm1) -> FFN -> +skip
    g = layer_norm(h1 * bn2s_ref[...] + bn2b_ref[...])
    f = jnp.dot(g.astype(w1_ref.dtype), w1_ref[...],
                preferred_element_type=jnp.float32) + b1_ref[...]
    f = jnp.maximum(f, 0.0)
    y = jnp.dot(f.astype(w2_ref.dtype), w2_ref[...],
                preferred_element_type=jnp.float32) + b2_ref[...]
    o_ref[0] = (h1 + y).astype(o_ref.dtype)


def transformer_block(x, mask_bias, tp, *, eps=1e-5):
    """Whole TransformerBlock as a single pallas_call (grid over batch)."""
    B, L, D = x.shape
    H, _, dh = tp["wq"].shape
    P = tp["ff_w1"].shape[-1]
    has_mask = mask_bias is not None

    def const(shape):
        return pl.BlockSpec(shape, lambda b: (0,) * len(shape))

    in_specs = [pl.BlockSpec((1, L, D), lambda b: (b, 0, 0))]
    args = [x]
    if has_mask:
        in_specs.append(pl.BlockSpec((1, 1, L), lambda b: (b, 0, 0)))
        args.append(mask_bias)
    in_specs += [
        const((1, D)), const((1, D)), const((1, D)), const((1, D)),   # bn1 s/b, ln g/b
        const((H, D, dh)), const((H, 1, dh)),                         # wq, bq
        const((H, D, dh)), const((H, 1, dh)),                         # wk, bk
        const((H, D, dh)), const((H, 1, dh)),                         # wv, bv
        const((H, dh, D)), const((1, D)),                             # wo (head rows), bo
        const((1, D)), const((1, D)),                                 # bn2 s/b
        const((D, P)), const((1, P)), const((P, D)), const((1, D)),   # ffn
    ]
    args += [tp["bn1_s"], tp["bn1_b"], tp["ln_g"], tp["ln_b"],
             tp["wq"], tp["bq"], tp["wk"], tp["bk"], tp["wv"], tp["bv"],
             tp["wo"], tp["bo"], tp["bn2_s"], tp["bn2_b"],
             tp["ff_w1"], tp["ff_b1"], tp["ff_w2"], tp["ff_b2"]]

    return pl.pallas_call(
        functools.partial(_transformer_kernel, eps=eps, has_mask=has_mask),
        out_shape=jax.ShapeDtypeStruct((B, L, D), x.dtype),
        grid=(B,),
        in_specs=in_specs,
        out_specs=pl.BlockSpec((1, L, D), lambda b: (b, 0, 0)),
        compiler_params=pltpu.CompilerParams(
            dimension_semantics=("parallel",),
            vmem_limit_bytes=64 * 1024 * 1024),
    )(*args)


# ---------------------------------------------------------------------------
# encoder layer
# ---------------------------------------------------------------------------
def encoder_layer(x, seq_mask, params, *, dilation=1):
    x = conv_chain(x, params["conv"], dilation=dilation)
    mask_bias = None
    if seq_mask is not None:
        B, L, _ = x.shape
        mask_bias = jnp.where(seq_mask.reshape(B, 1, L) != 0,
                              0.0, -1e10).astype(jnp.float32)
    return transformer_block(x, mask_bias, params["tf"])


# ---------------------------------------------------------------------------
# raw params (stand-in for a loaded checkpoint)
# ---------------------------------------------------------------------------
def init_params(key, hid_dim, expand_ratio=2, kernel_size=17):
    pf_dim = hid_dim * expand_ratio
    dexp = hid_dim * expand_ratio
    keys = iter(jax.random.split(key, 32))

    def lin(din, dout):
        return (jax.random.normal(next(keys), (din, dout), jnp.float32) * 0.02,
                jnp.zeros((dout,), jnp.float32))

    def conv_block():
        ew, eb = lin(hid_dim, dexp)
        pw, pb = lin(dexp, hid_dim)
        return dict(
            exp_w=ew, exp_b=eb,
            dw_w=jax.random.normal(next(keys), (kernel_size, dexp), jnp.float32) * 0.05,
            bn_g=jnp.ones((dexp,), jnp.float32), bn_b=jnp.zeros((dexp,), jnp.float32),
            bn_m=jnp.zeros((dexp,), jnp.float32), bn_v=jnp.ones((dexp,), jnp.float32),
            eca_w=jax.random.normal(next(keys), (5,), jnp.float32) * 0.1,
            proj_w=pw, proj_b=pb)

    wq, bq = lin(hid_dim, hid_dim)
    wk, bk = lin(hid_dim, hid_dim)
    wv, bv = lin(hid_dim, hid_dim)
    wo, bo = lin(hid_dim, hid_dim)
    w1, b1 = lin(hid_dim, pf_dim)
    w2, b2 = lin(pf_dim, hid_dim)
    tf = dict(
        bn1_g=jnp.ones((hid_dim,)), bn1_b=jnp.zeros((hid_dim,)),
        bn1_m=jnp.zeros((hid_dim,)), bn1_v=jnp.ones((hid_dim,)),
        bn2_g=jnp.ones((hid_dim,)), bn2_b=jnp.zeros((hid_dim,)),
        bn2_m=jnp.zeros((hid_dim,)), bn2_v=jnp.ones((hid_dim,)),
        ln1_g=jnp.ones((hid_dim,)), ln1_b=jnp.zeros((hid_dim,)),
        ln2_g=jnp.ones((hid_dim,)), ln2_b=jnp.zeros((hid_dim,)),   # unused (original bug)
        attn=dict(wq=wq, bq=bq, wk=wk, bk=bk, wv=wv, bv=bv, wo=wo, bo=bo),
        ff_w1=w1, ff_b1=b1, ff_w2=w2, ff_b2=b2)

    return dict(conv1=conv_block(), conv2=conv_block(), conv3=conv_block(), tf=tf)


# ---------------------------------------------------------------------------
# main
# ---------------------------------------------------------------------------
if __name__ == "__main__":
    B, L, HID, HEADS = 2, 16, 32, 4
    x = jax.random.normal(jax.random.PRNGKey(0), (B, L, HID), jnp.float32)
    raw = init_params(jax.random.PRNGKey(1), HID, expand_ratio=2, kernel_size=17)

    # All parameter folding (BN affines, head splits, stacking) done once at load
    # time; pass matmul_dtype=jnp.bfloat16 for bf16 MXU operands on v6e/v7x.
    params = prepare_params(raw, n_heads=HEADS)

    fwd = jax.jit(lambda xx, pp: encoder_layer(xx, None, pp))
    out = fwd(x, params)                      # seq_mask=None (EncoderLayer default)
    jax.block_until_ready(out)

    assert out.shape == (B, L, HID), out.shape
    assert bool(jnp.isfinite(out).all())
    print("KERNEL_OK")
</pallas_src>

<mosaic_0001>
module attributes {stable_mosaic.version = 11 : i64} {
  func.func @_conv_chain_kernel(%arg0: i32, %arg1: memref<1x16x32xf32, #tpu.memory_space<vmem>>, %arg2: memref<3x32x64xf32, #tpu.memory_space<vmem>>, %arg3: memref<3x1x64xf32, #tpu.memory_space<vmem>>, %arg4: memref<3x17x64xf32, #tpu.memory_space<vmem>>, %arg5: memref<3x1x64xf32, #tpu.memory_space<vmem>>, %arg6: memref<3x1x64xf32, #tpu.memory_space<vmem>>, %arg7: memref<3x5x64xf32, #tpu.memory_space<vmem>>, %arg8: memref<3x64x32xf32, #tpu.memory_space<vmem>>, %arg9: memref<3x1x32xf32, #tpu.memory_space<vmem>>, %arg10: memref<1x16x32xf32, #tpu.memory_space<vmem>>, %arg11: memref<32x64xf32, #tpu.memory_space<vmem>>, %arg12: memref<1x68xf32, #tpu.memory_space<vmem>>) attributes {dimension_semantics = [#tpu.dimension_semantics<parallel>], iteration_bounds = array<i64: 2>, scalar_prefetch = 0 : i64, scratch_operands = 2 : i64, tpu.core_type = #tpu.core_type<tc>, window_params = [{transform_indices = @transform_0, window_bounds = array<i64: 1, 16, 32>}, {pipeline_mode = #tpu.pipeline_mode<synchronous>, transform_indices = @transform_1, window_bounds = array<i64: 3, 32, 64>}, {pipeline_mode = #tpu.pipeline_mode<synchronous>, transform_indices = @transform_2, window_bounds = array<i64: 3, 1, 64>}, {pipeline_mode = #tpu.pipeline_mode<synchronous>, transform_indices = @transform_3, window_bounds = array<i64: 3, 17, 64>}, {pipeline_mode = #tpu.pipeline_mode<synchronous>, transform_indices = @transform_4, window_bounds = array<i64: 3, 1, 64>}, {pipeline_mode = #tpu.pipeline_mode<synchronous>, transform_indices = @transform_5, window_bounds = array<i64: 3, 1, 64>}, {pipeline_mode = #tpu.pipeline_mode<synchronous>, transform_indices = @transform_6, window_bounds = array<i64: 3, 5, 64>}, {pipeline_mode = #tpu.pipeline_mode<synchronous>, transform_indices = @transform_7, window_bounds = array<i64: 3, 64, 32>}, {pipeline_mode = #tpu.pipeline_mode<synchronous>, transform_indices = @transform_8, window_bounds = array<i64: 3, 1, 32>}, {transform_indices = @transform_9, window_bounds = array<i64: 1, 16, 32>}]} {
    %c0 = arith.constant 0 : index
    %c0_0 = arith.constant 0 : index
    %c0_1 = arith.constant 0 : index
    %0 = vector.load %arg1[%c0, %c0_0, %c0_1] : memref<1x16x32xf32, #tpu.memory_space<vmem>>, vector<1x16x32xf32>
    %1 = vector.shape_cast %0 : vector<1x16x32xf32> to vector<16x32xf32>
    %cst = arith.constant 0.000000e+00 : f32
    %2 = vector.broadcast %cst : f32 to vector<16x64xf32>
    %c0_2 = arith.constant 0 : index
    %c0_3 = arith.constant 0 : index
    %3 = vector.load %arg11[%c0_2, %c0_3] : memref<32x64xf32, #tpu.memory_space<vmem>>, vector<16x64xf32>
    tpu.vector_store %arg11[%c0_2, %c0_3], %2 {strides = array<i32>} : memref<32x64xf32, #tpu.memory_space<vmem>>, vector<16x64xf32>,
    %cst_4 = arith.constant 0.000000e+00 : f32
    %4 = vector.broadcast %cst_4 : f32 to vector<1x68xf32>
    %c0_5 = arith.constant 0 : index
    %c0_6 = arith.constant 0 : index
    %5 = vector.load %arg12[%c0_5, %c0_6] : memref<1x68xf32, #tpu.memory_space<vmem>>, vector<1x68xf32>
    tpu.vector_store %arg12[%c0_5, %c0_6], %4 {strides = array<i32>} : memref<1x68xf32, #tpu.memory_space<vmem>>, vector<1x68xf32>,
    %c0_7 = arith.constant 0 : index
    %c0_8 = arith.constant 0 : index
    %c0_9 = arith.constant 0 : index
    %6 = vector.load %arg2[%c0_7, %c0_8, %c0_9] : memref<3x32x64xf32, #tpu.memory_space<vmem>>, vector<1x32x64xf32>
    %7 = vector.shape_cast %6 : vector<1x32x64xf32> to vector<32x64xf32>
    %cst_10 = arith.constant dense<0.000000e+00> : vector<16x64xf32>
    %8 = tpu.matmul %1, %7, %cst_10 {dimension_numbers = #tpu.dot_dimension_numbers<[1], [0], [0], [1], [0, 0, 1, 1], [], []>} : vector<16x32xf32>, vector<32x64xf32>, vector<16x64xf32> -> vector<16x64xf32>
    %c0_11 = arith.constant 0 : index
    %c0_12 = arith.constant 0 : index
    %c0_13 = arith.constant 0 : index
    %9 = vector.load %arg3[%c0_11, %c0_12, %c0_13] : memref<3x1x64xf32, #tpu.memory_space<vmem>>, vector<1x1x64xf32>
    %10 = vector.shape_cast %9 : vector<1x1x64xf32> to vector<1x64xf32>
    %11 = vector.broadcast %10 : vector<1x64xf32> to vector<16x64xf32>
    %12 = arith.addf %8, %11 : vector<16x64xf32>
    %13 = arith.negf %12 : vector<16x64xf32>
    %14 = math.exp %13 : vector<16x64xf32>
    %cst_14 = arith.constant 1.000000e+00 : f32
    %15 = vector.broadcast %cst_14 : f32 to vector<16x64xf32>
    %16 = arith.addf %15, %14 : vector<16x64xf32>
    %17 = arith.divf %15, %16 : vector<16x64xf32>
    %18 = arith.mulf %12, %17 : vector<16x64xf32>
    %c16 = arith.constant 16 : index
    %c0_15 = arith.constant 0 : index
    %19 = vector.load %arg11[%c16, %c0_15] : memref<32x64xf32, #tpu.memory_space<vmem>>, vector<16x64xf32>
    tpu.vector_store %arg11[%c16, %c0_15], %18 {strides = array<i32>} : memref<32x64xf32, #tpu.memory_space<vmem>>, vector<16x64xf32>,
    %c0_16 = arith.constant 0 : index
    %c0_17 = arith.constant 0 : index
    %c0_18 = arith.constant 0 : index
    %20 = vector.load %arg4[%c0_16, %c0_17, %c0_18] : memref<3x17x64xf32, #tpu.memory_space<vmem>>, vector<1x17x64xf32>
    %21 = vector.shape_cast %20 : vector<1x17x64xf32> to vector<17x64xf32>
    %cst_19 = arith.constant 0.000000e+00 : f32
    %22 = vector.broadcast %cst_19 : f32 to vector<16x64xf32>
    %c0_20 = arith.constant 0 : index
    %c0_21 = arith.constant 0 : index
    %23 = vector.load %arg11[%c0_20, %c0_21] : memref<32x64xf32, #tpu.memory_space<vmem>>, vector<16x64xf32>
    %24 = vector.extract_strided_slice %21 {offsets = [0, 0], sizes = [1, 64], strides = [1, 1]} : vector<17x64xf32> to vector<1x64xf32>
    %25 = vector.broadcast %24 : vector<1x64xf32> to vector<16x64xf32>
    %26 = arith.mulf %23, %25 : vector<16x64xf32>
    %27 = arith.addf %22, %26 : vector<16x64xf32>
    %c1 = arith.constant 1 : index
    %c0_22 = arith.constant 0 : index
    %28 = vector.load %arg11[%c1, %c0_22] : memref<32x64xf32, #tpu.memory_space<vmem>>, vector<16x64xf32>
    %29 = vector.extract_strided_slice %21 {offsets = [1, 0], sizes = [1, 64], strides = [1, 1]} : vector<17x64xf32> to vector<1x64xf32>
    %30 = vector.broadcast %29 : vector<1x64xf32> to vector<16x64xf32>
    %31 = arith.mulf %28, %30 : vector<16x64xf32>
    %32 = arith.addf %27, %31 : vector<16x64xf32>
    %c2 = arith.constant 2 : index
    %c0_23 = arith.constant 0 : index
    %33 = vector.load %arg11[%c2, %c0_23] : memref<32x64xf32, #tpu.memory_space<vmem>>, vector<16x64xf32>
    %34 = vector.extract_strided_slice %21 {offsets = [2, 0], sizes = [1, 64], strides = [1, 1]} : vector<17x64xf32> to vector<1x64xf32>
    %35 = vector.broadcast %34 : vector<1x64xf32> to vector<16x64xf32>
    %36 = arith.mulf %33, %35 : vector<16x64xf32>
    %37 = arith.addf %32, %36 : vector<16x64xf32>
    %c3 = arith.constant 3 : index
    %c0_24 = arith.constant 0 : index
    %38 = vector.load %arg11[%c3, %c0_24] : memref<32x64xf32, #tpu.memory_space<vmem>>, vector<16x64xf32>
    %39 = vector.extract_strided_slice %21 {offsets = [3, 0], sizes = [1, 64], strides = [1, 1]} : vector<17x64xf32> to vector<1x64xf32>
    %40 = vector.broadcast %39 : vector<1x64xf32> to vector<16x64xf32>
    %41 = arith.mulf %38, %40 : vector<16x64xf32>
    %42 = arith.addf %37, %41 : vector<16x64xf32>
    %c4 = arith.constant 4 : index
    %c0_25 = arith.constant 0 : index
    %43 = vector.load %arg11[%c4, %c0_25] : memref<32x64xf32, #tpu.memory_space<vmem>>, vector<16x64xf32>
    %44 = vector.extract_strided_slice %21 {offsets = [4, 0], sizes = [1, 64], strides = [1, 1]} : vector<17x64xf32> to vector<1x64xf32>
    %45 = vector.broadcast %44 : vector<1x64xf32> to vector<16x64xf32>
    %46 = arith.mulf %43, %45 : vector<16x64xf32>
    %47 = arith.addf %42, %46 : vector<16x64xf32>
    %c5 = arith.constant 5 : index
    %c0_26 = arith.constant 0 : index
    %48 = vector.load %arg11[%c5, %c0_26] : memref<32x64xf32, #tpu.memory_space<vmem>>, vector<16x64xf32>
    %49 = vector.extract_strided_slice %21 {offsets = [5, 0], sizes = [1, 64], strides = [1, 1]} : vector<17x64xf32> to vector<1x64xf32>
    %50 = vector.broadcast %49 : vector<1x64xf32> to vector<16x64xf32>
    %51 = arith.mulf %48, %50 : vector<16x64xf32>
    %52 = arith.addf %47, %51 : vector<16x64xf32>
    %c6 = arith.constant 6 : index
    %c0_27 = arith.constant 0 : index
    %53 = vector.load %arg11[%c6, %c0_27] : memref<32x64xf32, #tpu.memory_space<vmem>>, vector<16x64xf32>
    %54 = vector.extract_strided_slice %21 {offsets = [6, 0], sizes = [1, 64], strides = [1, 1]} : vector<17x64xf32> to vector<1x64xf32>
    %55 = vector.broadcast %54 : vector<1x64xf32> to vector<16x64xf32>
    %56 = arith.mulf %53, %55 : vector<16x64xf32>
    %57 = arith.addf %52, %56 : vector<16x64xf32>
    %c7 = arith.constant 7 : index
    %c0_28 = arith.constant 0 : index
    %58 = vector.load %arg11[%c7, %c0_28] : memref<32x64xf32, #tpu.memory_space<vmem>>, vector<16x64xf32>
    %59 = vector.extract_strided_slice %21 {offsets = [7, 0], sizes = [1, 64], strides = [1, 1]} : vector<17x64xf32> to vector<1x64xf32>
    %60 = vector.broadcast %59 : vector<1x64xf32> to vector<16x64xf32>
    %61 = arith.mulf %58, %60 : vector<16x64xf32>
    %62 = arith.addf %57, %61 : vector<16x64xf32>
    %c8 = arith.constant 8 : index
    %c0_29 = arith.constant 0 : index
    %63 = vector.load %arg11[%c8, %c0_29] : memref<32x64xf32, #tpu.memory_space<vmem>>, vector<16x64xf32>
    %64 = vector.extract_strided_slice %21 {offsets = [8, 0], sizes = [1, 64], strides = [1, 1]} : vector<17x64xf32> to vector<1x64xf32>
    %65 = vector.broadcast %64 : vector<1x64xf32> to vector<16x64xf32>
    %66 = arith.mulf %63, %65 : vector<16x64xf32>
    %67 = arith.addf %62, %66 : vector<16x64xf32>
    %c9 = arith.constant 9 : index
    %c0_30 = arith.constant 0 : index
    %68 = vector.load %arg11[%c9, %c0_30] : memref<32x64xf32, #tpu.memory_space<vmem>>, vector<16x64xf32>
    %69 = vector.extract_strided_slice %21 {offsets = [9, 0], sizes = [1, 64], strides = [1, 1]} : vector<17x64xf32> to vector<1x64xf32>
    %70 = vector.broadcast %69 : vector<1x64xf32> to vector<16x64xf32>
    %71 = arith.mulf %68, %70 : vector<16x64xf32>
    %72 = arith.addf %67, %71 : vector<16x64xf32>
    %c10 = arith.constant 10 : index
    %c0_31 = arith.constant 0 : index
    %73 = vector.load %arg11[%c10, %c0_31] : memref<32x64xf32, #tpu.memory_space<vmem>>, vector<16x64xf32>
    %74 = vector.extract_strided_slice %21 {offsets = [10, 0], sizes = [1, 64], strides = [1, 1]} : vector<17x64xf32> to vector<1x64xf32>
    %75 = vector.broadcast %74 : vector<1x64xf32> to vector<16x64xf32>
    %76 = arith.mulf %73, %75 : vector<16x64xf32>
    %77 = arith.addf %72, %76 : vector<16x64xf32>
    %c11 = arith.constant 11 : index
    %c0_32 = arith.constant 0 : index
    %78 = vector.load %arg11[%c11, %c0_32] : memref<32x64xf32, #tpu.memory_space<vmem>>, vector<16x64xf32>
    %79 = vector.extract_strided_slice %21 {offsets = [11, 0], sizes = [1, 64], strides = [1, 1]} : vector<17x64xf32> to vector<1x64xf32>
    %80 = vector.broadcast %79 : vector<1x64xf32> to vector<16x64xf32>
    %81 = arith.mulf %78, %80 : vector<16x64xf32>
    %82 = arith.addf %77, %81 : vector<16x64xf32>
    %c12 = arith.constant 12 : index
    %c0_33 = arith.constant 0 : index
    %83 = vector.load %arg11[%c12, %c0_33] : memref<32x64xf32, #tpu.memory_space<vmem>>, vector<16x64xf32>
    %84 = vector.extract_strided_slice %21 {offsets = [12, 0], sizes = [1, 64], strides = [1, 1]} : vector<17x64xf32> to vector<1x64xf32>
    %85 = vector.broadcast %84 : vector<1x64xf32> to vector<16x64xf32>
    %86 = arith.mulf %83, %85 : vector<16x64xf32>
    %87 = arith.addf %82, %86 : vector<16x64xf32>
    %c13 = arith.constant 13 : index
    %c0_34 = arith.constant 0 : index
    %88 = vector.load %arg11[%c13, %c0_34] : memref<32x64xf32, #tpu.memory_space<vmem>>, vector<16x64xf32>
    %89 = vector.extract_strided_slice %21 {offsets = [13, 0], sizes = [1, 64], strides = [1, 1]} : vector<17x64xf32> to vector<1x64xf32>
    %90 = vector.broadcast %89 : vector<1x64xf32> to vector<16x64xf32>
    %91 = arith.mulf %88, %90 : vector<16x64xf32>
    %92 = arith.addf %87, %91 : vector<16x64xf32>
    %c14 = arith.constant 14 : index
    %c0_35 = arith.constant 0 : index
    %93 = vector.load %arg11[%c14, %c0_35] : memref<32x64xf32, #tpu.memory_space<vmem>>, vector<16x64xf32>
    %94 = vector.extract_strided_slice %21 {offsets = [14, 0], sizes = [1, 64], strides = [1, 1]} : vector<17x64xf32> to vector<1x64xf32>
    %95 = vector.broadcast %94 : vector<1x64xf32> to vector<16x64xf32>
    %96 = arith.mulf %93, %95 : vector<16x64xf32>
    %97 = arith.addf %92, %96 : vector<16x64xf32>
    %c15 = arith.constant 15 : index
    %c0_36 = arith.constant 0 : index
    %98 = vector.load %arg11[%c15, %c0_36] : memref<32x64xf32, #tpu.memory_space<vmem>>, vector<16x64xf32>
    %99 = vector.extract_strided_slice %21 {offsets = [15, 0], sizes = [1, 64], strides = [1, 1]} : vector<17x64xf32> to vector<1x64xf32>
    %100 = vector.broadcast %99 : vector<1x64xf32> to vector<16x64xf32>
    %101 = arith.mulf %98, %100 : vector<16x64xf32>
    %102 = arith.addf %97, %101 : vector<16x64xf32>
    %c16_37 = arith.constant 16 : index
    %c0_38 = arith.constant 0 : index
    %103 = vector.load %arg11[%c16_37, %c0_38] : memref<32x64xf32, #tpu.memory_space<vmem>>, vector<16x64xf32>
    %104 = vector.extract_strided_slice %21 {offsets = [16, 0], sizes = [1, 64], strides = [1, 1]} : vector<17x64xf32> to vector<1x64xf32>
    %105 = vector.broadcast %104 : vector<1x64xf32> to vector<16x64xf32>
    %106 = arith.mulf %103, %105 : vector<16x64xf32>
    %107 = arith.addf %102, %106 : vector<16x64xf32>
    %c0_39 = arith.constant 0 : index
    %c0_40 = arith.constant 0 : index
    %c0_41 = arith.constant 0 : index
    %108 = vector.load %arg5[%c0_39, %c0_40, %c0_41] : memref<3x1x64xf32, #tpu.memory_space<vmem>>, vector<1x1x64xf32>
    %109 = vector.shape_cast %108 : vector<1x1x64xf32> to vector<1x64xf32>
    %110 = vector.broadcast %109 : vector<1x64xf32> to vector<16x64xf32>
    %111 = arith.mulf %107, %110 : vector<16x64xf32>
    %c0_42 = arith.constant 0 : index
    %c0_43 = arith.constant 0 : index
    %c0_44 = arith.constant 0 : index
    %112 = vector.load %arg6[%c0_42, %c0_43, %c0_44] : memref<3x1x64xf32, #tpu.memory_space<vmem>>, vector<1x1x64xf32>
    %113 = vector.shape_cast %112 : vector<1x1x64xf32> to vector<1x64xf32>
    %114 = vector.broadcast %113 : vector<1x64xf32> to vector<16x64xf32>
    %115 = arith.addf %111, %114 : vector<16x64xf32>
    %cst_45 = arith.constant dense<0.000000e+00> : vector<64xf32>
    %116 = vector.multi_reduction <add>, %115, %cst_45 [0] : vector<16x64xf32> to vector<64xf32>
    %117 = vector.shape_cast %116 : vector<64xf32> to vector<1x64xf32>
    %cst_46 = arith.constant 1.600000e+01 : f32
    %118 = vector.broadcast %cst_46 : f32 to vector<1x64xf32>
    %119 = arith.divf %117, %118 : vector<1x64xf32>
    %c0_47 = arith.constant 0 : index
    %c2_48 = arith.constant 2 : index
    %120 = vector.load %arg12[%c0_47, %c2_48] : memref<1x68xf32, #tpu.memory_space<vmem>>, vector<1x64xf32>
    tpu.vector_store %arg12[%c0_47, %c2_48], %119 {strides = array<i32>} : memref<1x68xf32, #tpu.memory_space<vmem>>, vector<1x64xf32>,
    %c0_49 = arith.constant 0 : index
    %c0_50 = arith.constant 0 : index
    %c0_51 = arith.constant 0 : index
    %121 = vector.load %arg7[%c0_49, %c0_50, %c0_51] : memref<3x5x64xf32, #tpu.memory_space<vmem>>, vector<1x5x64xf32>
    %122 = vector.shape_cast %121 : vector<1x5x64xf32> to vector<5x64xf32>
    %cst_52 = arith.constant 0.000000e+00 : f32
    %123 = vector.broadcast %cst_52 : f32 to vector<1x64xf32>
    %c0_53 = arith.constant 0 : index
    %c0_54 = arith.constant 0 : index
    %124 = vector.load %arg12[%c0_53, %c0_54] : memref<1x68xf32, #tpu.memory_space<vmem>>, vector<1x64xf32>
    %125 = vector.extract_strided_slice %122 {offsets = [0, 0], sizes = [1, 64], strides = [1, 1]} : vector<5x64xf32> to vector<1x64xf32>
    %126 = arith.mulf %124, %125 : vector<1x64xf32>
    %127 = arith.addf %123, %126 : vector<1x64xf32>
    %c0_55 = arith.constant 0 : index
    %c1_56 = arith.constant 1 : index
    %128 = vector.load %arg12[%c0_55, %c1_56] : memref<1x68xf32, #tpu.memory_space<vmem>>, vector<1x64xf32>
    %129 = vector.extract_strided_slice %122 {offsets = [1, 0], sizes = [1, 64], strides = [1, 1]} : vector<5x64xf32> to vector<1x64xf32>
    %130 = arith.mulf %128, %129 : vector<1x64xf32>
    %131 = arith.addf %127, %130 : vector<1x64xf32>
    %c0_57 = arith.constant 0 : index
    %c2_58 = arith.constant 2 : index
    %132 = vector.load %arg12[%c0_57, %c2_58] : memref<1x68xf32, #tpu.memory_space<vmem>>, vector<1x64xf32>
    %133 = vector.extract_strided_slice %122 {offsets = [2, 0], sizes = [1, 64], strides = [1, 1]} : vector<5x64xf32> to vector<1x64xf32>
    %134 = arith.mulf %132, %133 : vector<1x64xf32>
    %135 = arith.addf %131, %134 : vector<1x64xf32>
    %c0_59 = arith.constant 0 : index
    %c3_60 = arith.constant 3 : index
    %136 = vector.load %arg12[%c0_59, %c3_60] : memref<1x68xf32, #tpu.memory_space<vmem>>, vector<1x64xf32>
    %137 = vector.extract_strided_slice %122 {offsets = [3, 0], sizes = [1, 64], strides = [1, 1]} : vector<5x64xf32> to vector<1x64xf32>
    %138 = arith.mulf %136, %137 : vector<1x64xf32>
    %139 = arith.addf %135, %138 : vector<1x64xf32>
    %c0_61 = arith.constant 0 : index
    %c4_62 = arith.constant 4 : index
    %140 = vector.load %arg12[%c0_61, %c4_62] : memref<1x68xf32, #tpu.memory_space<vmem>>, vector<1x64xf32>
    %141 = vector.extract_strided_slice %122 {offsets = [4, 0], sizes = [1, 64], strides = [1, 1]} : vector<5x64xf32> to vector<1x64xf32>
    %142 = arith.mulf %140, %141 : vector<1x64xf32>
    %143 = arith.addf %139, %142 : vector<1x64xf32>
    %144 = arith.negf %143 : vector<1x64xf32>
    %145 = math.exp %144 : vector<1x64xf32>
    %cst_63 = arith.constant 1.000000e+00 : f32
    %146 = vector.broadcast %cst_63 : f32 to vector<1x64xf32>
    %147 = arith.addf %146, %145 : vector<1x64xf32>
    %148 = arith.divf %146, %147 : vector<1x64xf32>
    %149 = vector.broadcast %148 : vector<1x64xf32> to vector<16x64xf32>
    %150 = arith.mulf %115, %149 : vector<16x64xf32>
    %c0_64 = arith.constant 0 : index
    %c0_65 = arith.constant 0 : index
    %c0_66 = arith.constant 0 : index
    %151 = vector.load %arg8[%c0_64, %c0_65, %c0_66] : memref<3x64x32xf32, #tpu.memory_space<vmem>>, vector<1x64x32xf32>
    %152 = vector.shape_cast %151 : vector<1x64x32xf32> to vector<64x32xf32>
    %cst_67 = arith.constant dense<0.000000e+00> : vector<16x32xf32>
    %153 = tpu.matmul %150, %152, %cst_67 {dimension_numbers = #tpu.dot_dimension_numbers<[1], [0], [0], [1], [0, 0, 1, 1], [], []>} : vector<16x64xf32>, vector<64x32xf32>, vector<16x32xf32> -> vector<16x32xf32>
    %154 = arith.addf %1, %153 : vector<16x32xf32>
    %c0_68 = arith.constant 0 : index
    %c0_69 = arith.constant 0 : index
    %c0_70 = arith.constant 0 : index
    %155 = vector.load %arg9[%c0_68, %c0_69, %c0_70] : memref<3x1x32xf32, #tpu.memory_space<vmem>>, vector<1x1x32xf32>
    %156 = vector.shape_cast %155 : vector<1x1x32xf32> to vector<1x32xf32>
    %157 = vector.broadcast %156 : vector<1x32xf32> to vector<16x32xf32>
    %158 = arith.addf %154, %157 : vector<16x32xf32>
    %c1_71 = arith.constant 1 : index
    %c0_72 = arith.constant 0 : index
    %c0_73 = arith.constant 0 : index
    %159 = vector.load %arg2[%c1_71, %c0_72, %c0_73] : memref<3x32x64xf32, #tpu.memory_space<vmem>>, vector<1x32x64xf32>
    %160 = vector.shape_cast %159 : vector<1x32x64xf32> to vector<32x64xf32>
    %cst_74 = arith.constant dense<0.000000e+00> : vector<16x64xf32>
    %161 = tpu.matmul %158, %160, %cst_74 {dimension_numbers = #tpu.dot_dimension_numbers<[1], [0], [0], [1], [0, 0, 1, 1], [], []>} : vector<16x32xf32>, vector<32x64xf32>, vector<16x64xf32> -> vector<16x64xf32>
    %c1_75 = arith.constant 1 : index
    %c0_76 = arith.constant 0 : index
    %c0_77 = arith.constant 0 : index
    %162 = vector.load %arg3[%c1_75, %c0_76, %c0_77] : memref<3x1x64xf32, #tpu.memory_space<vmem>>, vector<1x1x64xf32>
    %163 = vector.shape_cast %162 : vector<1x1x64xf32> to vector<1x64xf32>
    %164 = vector.broadcast %163 : vector<1x64xf32> to vector<16x64xf32>
    %165 = arith.addf %161, %164 : vector<16x64xf32>
    %166 = arith.negf %165 : vector<16x64xf32>
    %167 = math.exp %166 : vector<16x64xf32>
    %cst_78 = arith.constant 1.000000e+00 : f32
    %168 = vector.broadcast %cst_78 : f32 to vector<16x64xf32>
    %169 = arith.addf %168, %167 : vector<16x64xf32>
    %170 = arith.divf %168, %169 : vector<16x64xf32>
    %171 = arith.mulf %165, %170 : vector<16x64xf32>
    %c16_79 = arith.constant 16 : index
    %c0_80 = arith.constant 0 : index
    %172 = vector.load %arg11[%c16_79, %c0_80] : memref<32x64xf32, #tpu.memory_space<vmem>>, vector<16x64xf32>
    tpu.vector_store %arg11[%c16_79, %c0_80], %171 {strides = array<i32>} : memref<32x64xf32, #tpu.memory_space<vmem>>, vector<16x64xf32>,
    %c1_81 = arith.constant 1 : index
    %c0_82 = arith.constant 0 : index
    %c0_83 = arith.constant 0 : index
    %173 = vector.load %arg4[%c1_81, %c0_82, %c0_83] : memref<3x17x64xf32, #tpu.memory_space<vmem>>, vector<1x17x64xf32>
    %174 = vector.shape_cast %173 : vector<1x17x64xf32> to vector<17x64xf32>
    %cst_84 = arith.constant 0.000000e+00 : f32
    %175 = vector.broadcast %cst_84 : f32 to vector<16x64xf32>
    %c0_85 = arith.constant 0 : index
    %c0_86 = arith.constant 0 : index
    %176 = vector.load %arg11[%c0_85, %c0_86] : memref<32x64xf32, #tpu.memory_space<vmem>>, vector<16x64xf32>
    %177 = vector.extract_strided_slice %174 {offsets = [0, 0], sizes = [1, 64], strides = [1, 1]} : vector<17x64xf32> to vector<1x64xf32>
    %178 = vector.broadcast %177 : vector<1x64xf32> to vector<16x64xf32>
    %179 = arith.mulf %176, %178 : vector<16x64xf32>
    %180 = arith.addf %175, %179 : vector<16x64xf32>
    %c1_87 = arith.constant 1 : index
    %c0_88 = arith.constant 0 : index
    %181 = vector.load %arg11[%c1_87, %c0_88] : memref<32x64xf32, #tpu.memory_space<vmem>>, vector<16x64xf32>
    %182 = vector.extract_strided_slice %174 {offsets = [1, 0], sizes = [1, 64], strides = [1, 1]} : vector<17x64xf32> to vector<1x64xf32>
    %183 = vector.broadcast %182 : vector<1x64xf32> to vector<16x64xf32>
    %184 = arith.mulf %181, %183 : vector<16x64xf32>
    %185 = arith.addf %180, %184 : vector<16x64xf32>
    %c2_89 = arith.constant 2 : index
    %c0_90 = arith.constant 0 : index
    %186 = vector.load %arg11[%c2_89, %c0_90] : memref<32x64xf32, #tpu.memory_space<vmem>>, vector<16x64xf32>
    %187 = vector.extract_strided_slice %174 {offsets = [2, 0], sizes = [1, 64], strides = [1, 1]} : vector<17x64xf32> to vector<1x64xf32>
    %188 = vector.broadcast %187 : vector<1x64xf32> to vector<16x64xf32>
    %189 = arith.mulf %186, %188 : vector<16x64xf32>
    %190 = arith.addf %185, %189 : vector<16x64xf32>
    %c3_91 = arith.constant 3 : index
    %c0_92 = arith.constant 0 : index
    %191 = vector.load %arg11[%c3_91, %c0_92] : memref<32x64xf32, #tpu.memory_space<vmem>>, vector<16x64xf32>
    %192 = vector.extract_strided_slice %174 {offsets = [3, 0], sizes = [1, 64], strides = [1, 1]} : vector<17x64xf32> to vector<1x64xf32>
    %193 = vector.broadcast %192 : vector<1x64xf32> to vector<16x64xf32>
    %194 = arith.mulf %191, %193 : vector<16x64xf32>
    %195 = arith.addf %190, %194 : vector<16x64xf32>
    %c4_93 = arith.constant 4 : index
    %c0_94 = arith.constant 0 : index
    %196 = vector.load %arg11[%c4_93, %c0_94] : memref<32x64xf32, #tpu.memory_space<vmem>>, vector<16x64xf32>
    %197 = vector.extract_strided_slice %174 {offsets = [4, 0], sizes = [1, 64], strides = [1, 1]} : vector<17x64xf32> to vector<1x64xf32>
    %198 = vector.broadcast %197 : vector<1x64xf32> to vector<16x64xf32>
    %199 = arith.mulf %196, %198 : vector<16x64xf32>
    %200 = arith.addf %195, %199 : vector<16x64xf32>
    %c5_95 = arith.constant 5 : index
    %c0_96 = arith.constant 0 : index
    %201 = vector.load %arg11[%c5_95, %c0_96] : memref<32x64xf32, #tpu.memory_space<vmem>>, vector<16x64xf32>
    %202 = vector.extract_strided_slice %174 {offsets = [5, 0], sizes = [1, 64], strides = [1, 1]} : vector<17x64xf32> to vector<1x64xf32>
    %203 = vector.broadcast %202 : vector<1x64xf32> to vector<16x64xf32>
    %204 = arith.mulf %201, %203 : vector<16x64xf32>
    %205 = arith.addf %200, %204 : vector<16x64xf32>
    %c6_97 = arith.constant 6 : index
    %c0_98 = arith.constant 0 : index
    %206 = vector.load %arg11[%c6_97, %c0_98] : memref<32x64xf32, #tpu.memory_space<vmem>>, vector<16x64xf32>
    %207 = vector.extract_strided_slice %174 {offsets = [6, 0], sizes = [1, 64], strides = [1, 1]} : vector<17x64xf32> to vector<1x64xf32>
    %208 = vector.broadcast %207 : vector<1x64xf32> to vector<16x64xf32>
    %209 = arith.mulf %206, %208 : vector<16x64xf32>
    %210 = arith.addf %205, %209 : vector<16x64xf32>
    %c7_99 = arith.constant 7 : index
    %c0_100 = arith.constant 0 : index
    %211 = vector.load %arg11[%c7_99, %c0_100] : memref<32x64xf32, #tpu.memory_space<vmem>>, vector<16x64xf32>
    %212 = vector.extract_strided_slice %174 {offsets = [7, 0], sizes = [1, 64], strides = [1, 1]} : vector<17x64xf32> to vector<1x64xf32>
    %213 = vector.broadcast %212 : vector<1x64xf32> to vector<16x64xf32>
    %214 = arith.mulf %211, %213 : vector<16x64xf32>
    %215 = arith.addf %210, %214 : vector<16x64xf32>
    %c8_101 = arith.constant 8 : index
    %c0_102 = arith.constant 0 : index
    %216 = vector.load %arg11[%c8_101, %c0_102] : memref<32x64xf32, #tpu.memory_space<vmem>>, vector<16x64xf32>
    %217 = vector.extract_strided_slice %174 {offsets = [8, 0], sizes = [1, 64], strides = [1, 1]} : vector<17x64xf32> to vector<1x64xf32>
    %218 = vector.broadcast %217 : vector<1x64xf32> to vector<16x64xf32>
    %219 = arith.mulf %216, %218 : vector<16x64xf32>
    %220 = arith.addf %215, %219 : vector<16x64xf32>
    %c9_103 = arith.constant 9 : index
    %c0_104 = arith.constant 0 : index
    %221 = vector.load %arg11[%c9_103, %c0_104] : memref<32x64xf32, #tpu.memory_space<vmem>>, vector<16x64xf32>
    %222 = vector.extract_strided_slice %174 {offsets = [9, 0], sizes = [1, 64], strides = [1, 1]} : vector<17x64xf32> to vector<1x64xf32>
    %223 = vector.broadcast %222 : vector<1x64xf32> to vector<16x64xf32>
    %224 = arith.mulf %221, %223 : vector<16x64xf32>
    %225 = arith.addf %220, %224 : vector<16x64xf32>
    %c10_105 = arith.constant 10 : index
    %c0_106 = arith.constant 0 : index
    %226 = vector.load %arg11[%c10_105, %c0_106] : memref<32x64xf32, #tpu.memory_space<vmem>>, vector<16x64xf32>
    %227 = vector.extract_strided_slice %174 {offsets = [10, 0], sizes = [1, 64], strides = [1, 1]} : vector<17x64xf32> to vector<1x64xf32>
    %228 = vector.broadcast %227 : vector<1x64xf32> to vector<16x64xf32>
    %229 = arith.mulf %226, %228 : vector<16x64xf32>
    %230 = arith.addf %225, %229 : vector<16x64xf32>
    %c11_107 = arith.constant 11 : index
    %c0_108 = arith.constant 0 : index
    %231 = vector.load %arg11[%c11_107, %c0_108] : memref<32x64xf32, #tpu.memory_space<vmem>>, vector<16x64xf32>
    %232 = vector.extract_strided_slice %174 {offsets = [11, 0], sizes = [1, 64], strides = [1, 1]} : vector<17x64xf32> to vector<1x64xf32>
    %233 = vector.broadcast %232 : vector<1x64xf32> to vector<16x64xf32>
    %234 = arith.mulf %231, %233 : vector<16x64xf32>
    %235 = arith.addf %230, %234 : vector<16x64xf32>
    %c12_109 = arith.constant 12 : index
    %c0_110 = arith.constant 0 : index
    %236 = vector.load %arg11[%c12_109, %c0_110] : memref<32x64xf32, #tpu.memory_space<vmem>>, vector<16x64xf32>
    %237 = vector.extract_strided_slice %174 {offsets = [12, 0], sizes = [1, 64], strides = [1, 1]} : vector<17x64xf32> to vector<1x64xf32>
    %238 = vector.broadcast %237 : vector<1x64xf32> to vector<16x64xf32>
    %239 = arith.mulf %236, %238 : vector<16x64xf32>
    %240 = arith.addf %235, %239 : vector<16x64xf32>
    %c13_111 = arith.constant 13 : index
    %c0_112 = arith.constant 0 : index
    %241 = vector.load %arg11[%c13_111, %c0_112] : memref<32x64xf32, #tpu.memory_space<vmem>>, vector<16x64xf32>
    %242 = vector.extract_strided_slice %174 {offsets = [13, 0], sizes = [1, 64], strides = [1, 1]} : vector<17x64xf32> to vector<1x64xf32>
    %243 = vector.broadcast %242 : vector<1x64xf32> to vector<16x64xf32>
    %244 = arith.mulf %241, %243 : vector<16x64xf32>
    %245 = arith.addf %240, %244 : vector<16x64xf32>
    %c14_113 = arith.constant 14 : index
    %c0_114 = arith.constant 0 : index
    %246 = vector.load %arg11[%c14_113, %c0_114] : memref<32x64xf32, #tpu.memory_space<vmem>>, vector<16x64xf32>
    %247 = vector.extract_strided_slice %174 {offsets = [14, 0], sizes = [1, 64], strides = [1, 1]} : vector<17x64xf32> to vector<1x64xf32>
    %248 = vector.broadcast %247 : vector<1x64xf32> to vector<16x64xf32>
    %249 = arith.mulf %246, %248 : vector<16x64xf32>
    %250 = arith.addf %245, %249 : vector<16x64xf32>
    %c15_115 = arith.constant 15 : index
    %c0_116 = arith.constant 0 : index
    %251 = vector.load %arg11[%c15_115, %c0_116] : memref<32x64xf32, #tpu.memory_space<vmem>>, vector<16x64xf32>
    %252 = vector.extract_strided_slice %174 {offsets = [15, 0], sizes = [1, 64], strides = [1, 1]} : vector<17x64xf32> to vector<1x64xf32>
    %253 = vector.broadcast %252 : vector<1x64xf32> to vector<16x64xf32>
    %254 = arith.mulf %251, %253 : vector<16x64xf32>
    %255 = arith.addf %250, %254 : vector<16x64xf32>
    %c16_117 = arith.constant 16 : index
    %c0_118 = arith.constant 0 : index
    %256 = vector.load %arg11[%c16_117, %c0_118] : memref<32x64xf32, #tpu.memory_space<vmem>>, vector<16x64xf32>
    %257 = vector.extract_strided_slice %174 {offsets = [16, 0], sizes = [1, 64], strides = [1, 1]} : vector<17x64xf32> to vector<1x64xf32>
    %258 = vector.broadcast %257 : vector<1x64xf32> to vector<16x64xf32>
    %259 = arith.mulf %256, %258 : vector<16x64xf32>
    %260 = arith.addf %255, %259 : vector<16x64xf32>
    %c1_119 = arith.constant 1 : index
    %c0_120 = arith.constant 0 : index
    %c0_121 = arith.constant 0 : index
    %261 = vector.load %arg5[%c1_119, %c0_120, %c0_121] : memref<3x1x64xf32, #tpu.memory_space<vmem>>, vector<1x1x64xf32>
    %262 = vector.shape_cast %261 : vector<1x1x64xf32> to vector<1x64xf32>
    %263 = vector.broadcast %262 : vector<1x64xf32> to vector<16x64xf32>
    %264 = arith.mulf %260, %263 : vector<16x64xf32>
    %c1_122 = arith.constant 1 : index
    %c0_123 = arith.constant 0 : index
    %c0_124 = arith.constant 0 : index
    %265 = vector.load %arg6[%c1_122, %c0_123, %c0_124] : memref<3x1x64xf32, #tpu.memory_space<vmem>>, vector<1x1x64xf32>
    %266 = vector.shape_cast %265 : vector<1x1x64xf32> to vector<1x64xf32>
    %267 = vector.broadcast %266 : vector<1x64xf32> to vector<16x64xf32>
    %268 = arith.addf %264, %267 : vector<16x64xf32>
    %cst_125 = arith.constant dense<0.000000e+00> : vector<64xf32>
    %269 = vector.multi_reduction <add>, %268, %cst_125 [0] : vector<16x64xf32> to vector<64xf32>
    %270 = vector.shape_cast %269 : vector<64xf32> to vector<1x64xf32>
    %cst_126 = arith.constant 1.600000e+01 : f32
    %271 = vector.broadcast %cst_126 : f32 to vector<1x64xf32>
    %272 = arith.divf %270, %271 : vector<1x64xf32>
    %c0_127 = arith.constant 0 : index
    %c2_128 = arith.constant 2 : index
    %273 = vector.load %arg12[%c0_127, %c2_128] : memref<1x68xf32, #tpu.memory_space<vmem>>, vector<1x64xf32>
    tpu.vector_store %arg12[%c0_127, %c2_128], %272 {strides = array<i32>} : memref<1x68xf32, #tpu.memory_space<vmem>>, vector<1x64xf32>,
    %c1_129 = arith.constant 1 : index
    %c0_130 = arith.constant 0 : index
    %c0_131 = arith.constant 0 : index
    %274 = vector.load %arg7[%c1_129, %c0_130, %c0_131] : memref<3x5x64xf32, #tpu.memory_space<vmem>>, vector<1x5x64xf32>
    %275 = vector.shape_cast %274 : vector<1x5x64xf32> to vector<5x64xf32>
    %cst_132 = arith.constant 0.000000e+00 : f32
    %276 = vector.broadcast %cst_132 : f32 to vector<1x64xf32>
    %c0_133 = arith.constant 0 : index
    %c0_134 = arith.constant 0 : index
    %277 = vector.load %arg12[%c0_133, %c0_134] : memref<1x68xf32, #tpu.memory_space<vmem>>, vector<1x64xf32>
    %278 = vector.extract_strided_slice %275 {offsets = [0, 0], sizes = [1, 64], strides = [1, 1]} : vector<5x64xf32> to vector<1x64xf32>
    %279 = arith.mulf %277, %278 : vector<1x64xf32>
    %280 = arith.addf %276, %279 : vector<1x64xf32>
    %c0_135 = arith.constant 0 : index
    %c1_136 = arith.constant 1 : index
    %281 = vector.load %arg12[%c0_135, %c1_136] : memref<1x68xf32, #tpu.memory_space<vmem>>, vector<1x64xf32>
    %282 = vector.extract_strided_slice %275 {offsets = [1, 0], sizes = [1, 64], strides = [1, 1]} : vector<5x64xf32> to vector<1x64xf32>
    %283 = arith.mulf %281, %282 : vector<1x64xf32>
    %284 = arith.addf %280, %283 : vector<1x64xf32>
    %c0_137 = arith.constant 0 : index
    %c2_138 = arith.constant 2 : index
    %285 = vector.load %arg12[%c0_137, %c2_138] : memref<1x68xf32, #tpu.memory_space<vmem>>, vector<1x64xf32>
    %286 = vector.extract_strided_slice %275 {offsets = [2, 0], sizes = [1, 64], strides = [1, 1]} : vector<5x64xf32> to vector<1x64xf32>
    %287 = arith.mulf %285, %286 : vector<1x64xf32>
    %288 = arith.addf %284, %287 : vector<1x64xf32>
    %c0_139 = arith.constant 0 : index
    %c3_140 = arith.constant 3 : index
    %289 = vector.load %arg12[%c0_139, %c3_140] : memref<1x68xf32, #tpu.memory_space<vmem>>, vector<1x64xf32>
    %290 = vector.extract_strided_slice %275 {offsets = [3, 0], sizes = [1, 64], strides = [1, 1]} : vector<5x64xf32> to vector<1x64xf32>
    %291 = arith.mulf %289, %290 : vector<1x64xf32>
    %292 = arith.addf %288, %291 : vector<1x64xf32>
    %c0_141 = arith.constant 0 : index
    %c4_142 = arith.constant 4 : index
    %293 = vector.load %arg12[%c0_141, %c4_142] : memref<1x68xf32, #tpu.memory_space<vmem>>, vector<1x64xf32>
    %294 = vector.extract_strided_slice %275 {offsets = [4, 0], sizes = [1, 64], strides = [1, 1]} : vector<5x64xf32> to vector<1x64xf32>
    %295 = arith.mulf %293, %294 : vector<1x64xf32>
    %296 = arith.addf %292, %295 : vector<1x64xf32>
    %297 = arith.negf %296 : vector<1x64xf32>
    %298 = math.exp %297 : vector<1x64xf32>
    %cst_143 = arith.constant 1.000000e+00 : f32
    %299 = vector.broadcast %cst_143 : f32 to vector<1x64xf32>
    %300 = arith.addf %299, %298 : vector<1x64xf32>
    %301 = arith.divf %299, %300 : vector<1x64xf32>
    %302 = vector.broadcast %301 : vector<1x64xf32> to vector<16x64xf32>
    %303 = arith.mulf %268, %302 : vector<16x64xf32>
    %c1_144 = arith.constant 1 : index
    %c0_145 = arith.constant 0 : index
    %c0_146 = arith.constant 0 : index
    %304 = vector.load %arg8[%c1_144, %c0_145, %c0_146] : memref<3x64x32xf32, #tpu.memory_space<vmem>>, vector<1x64x32xf32>
    %305 = vector.shape_cast %304 : vector<1x64x32xf32> to vector<64x32xf32>
    %cst_147 = arith.constant dense<0.000000e+00> : vector<16x32xf32>
    %306 = tpu.matmul %303, %305, %cst_147 {dimension_numbers = #tpu.dot_dimension_numbers<[1], [0], [0], [1], [0, 0, 1, 1], [], []>} : vector<16x64xf32>, vector<64x32xf32>, vector<16x32xf32> -> vector<16x32xf32>
    %307 = arith.addf %158, %306 : vector<16x32xf32>
    %c1_148 = arith.constant 1 : index
    %c0_149 = arith.constant 0 : index
    %c0_150 = arith.constant 0 : index
    %308 = vector.load %arg9[%c1_148, %c0_149, %c0_150] : memref<3x1x32xf32, #tpu.memory_space<vmem>>, vector<1x1x32xf32>
    %309 = vector.shape_cast %308 : vector<1x1x32xf32> to vector<1x32xf32>
    %310 = vector.broadcast %309 : vector<1x32xf32> to vector<16x32xf32>
    %311 = arith.addf %307, %310 : vector<16x32xf32>
    %c2_151 = arith.constant 2 : index
    %c0_152 = arith.constant 0 : index
    %c0_153 = arith.constant 0 : index
    %312 = vector.load %arg2[%c2_151, %c0_152, %c0_153] : memref<3x32x64xf32, #tpu.memory_space<vmem>>, vector<1x32x64xf32>
    %313 = vector.shape_cast %312 : vector<1x32x64xf32> to vector<32x64xf32>
    %cst_154 = arith.constant dense<0.000000e+00> : vector<16x64xf32>
    %314 = tpu.matmul %311, %313, %cst_154 {dimension_numbers = #tpu.dot_dimension_numbers<[1], [0], [0], [1], [0, 0, 1, 1], [], []>} : vector<16x32xf32>, vector<32x64xf32>, vector<16x64xf32> -> vector<16x64xf32>
    %c2_155 = arith.constant 2 : index
    %c0_156 = arith.constant 0 : index
    %c0_157 = arith.constant 0 : index
    %315 = vector.load %arg3[%c2_155, %c0_156, %c0_157] : memref<3x1x64xf32, #tpu.memory_space<vmem>>, vector<1x1x64xf32>
    %316 = vector.shape_cast %315 : vector<1x1x64xf32> to vector<1x64xf32>
    %317 = vector.broadcast %316 : vector<1x64xf32> to vector<16x64xf32>
    %318 = arith.addf %314, %317 : vector<16x64xf32>
    %319 = arith.negf %318 : vector<16x64xf32>
    %320 = math.exp %319 : vector<16x64xf32>
    %cst_158 = arith.constant 1.000000e+00 : f32
    %321 = vector.broadcast %cst_158 : f32 to vector<16x64xf32>
    %322 = arith.addf %321, %320 : vector<16x64xf32>
    %323 = arith.divf %321, %322 : vector<16x64xf32>
    %324 = arith.mulf %318, %323 : vector<16x64xf32>
    %c16_159 = arith.constant 16 : index
    %c0_160 = arith.constant 0 : index
    %325 = vector.load %arg11[%c16_159, %c0_160] : memref<32x64xf32, #tpu.memory_space<vmem>>, vector<16x64xf32>
    tpu.vector_store %arg11[%c16_159, %c0_160], %324 {strides = array<i32>} : memref<32x64xf32, #tpu.memory_space<vmem>>, vector<16x64xf32>,
    %c2_161 = arith.constant 2 : index
    %c0_162 = arith.constant 0 : index
    %c0_163 = arith.constant 0 : index
    %326 = vector.load %arg4[%c2_161, %c0_162, %c0_163] : memref<3x17x64xf32, #tpu.memory_space<vmem>>, vector<1x17x64xf32>
    %327 = vector.shape_cast %326 : vector<1x17x64xf32> to vector<17x64xf32>
    %cst_164 = arith.constant 0.000000e+00 : f32
    %328 = vector.broadcast %cst_164 : f32 to vector<16x64xf32>
    %c0_165 = arith.constant 0 : index
    %c0_166 = arith.constant 0 : index
    %329 = vector.load %arg11[%c0_165, %c0_166] : memref<32x64xf32, #tpu.memory_space<vmem>>, vector<16x64xf32>
    %330 = vector.extract_strided_slice %327 {offsets = [0, 0], sizes = [1, 64], strides = [1, 1]} : vector<17x64xf32> to vector<1x64xf32>
    %331 = vector.broadcast %330 : vector<1x64xf32> to vector<16x64xf32>
    %332 = arith.mulf %329, %331 : vector<16x64xf32>
    %333 = arith.addf %328, %332 : vector<16x64xf32>
    %c1_167 = arith.constant 1 : index
    %c0_168 = arith.constant 0 : index
    %334 = vector.load %arg11[%c1_167, %c0_168] : memref<32x64xf32, #tpu.memory_space<vmem>>, vector<16x64xf32>
    %335 = vector.extract_strided_slice %327 {offsets = [1, 0], sizes = [1, 64], strides = [1, 1]} : vector<17x64xf32> to vector<1x64xf32>
    %336 = vector.broadcast %335 : vector<1x64xf32> to vector<16x64xf32>
    %337 = arith.mulf %334, %336 : vector<16x64xf32>
    %338 = arith.addf %333, %337 : vector<16x64xf32>
    %c2_169 = arith.constant 2 : index
    %c0_170 = arith.constant 0 : index
    %339 = vector.load %arg11[%c2_169, %c0_170] : memref<32x64xf32, #tpu.memory_space<vmem>>, vector<16x64xf32>
    %340 = vector.extract_strided_slice %327 {offsets = [2, 0], sizes = [1, 64], strides = [1, 1]} : vector<17x64xf32> to vector<1x64xf32>
    %341 = vector.broadcast %340 : vector<1x64xf32> to vector<16x64xf32>
    %342 = arith.mulf %339, %341 : vector<16x64xf32>
    %343 = arith.addf %338, %342 : vector<16x64xf32>
    %c3_171 = arith.constant 3 : index
    %c0_172 = arith.constant 0 : index
    %344 = vector.load %arg11[%c3_171, %c0_172] : memref<32x64xf32, #tpu.memory_space<vmem>>, vector<16x64xf32>
    %345 = vector.extract_strided_slice %327 {offsets = [3, 0], sizes = [1, 64], strides = [1, 1]} : vector<17x64xf32> to vector<1x64xf32>
    %346 = vector.broadcast %345 : vector<1x64xf32> to vector<16x64xf32>
    %347 = arith.mulf %344, %346 : vector<16x64xf32>
    %348 = arith.addf %343, %347 : vector<16x64xf32>
    %c4_173 = arith.constant 4 : index
    %c0_174 = arith.constant 0 : index
    %349 = vector.load %arg11[%c4_173, %c0_174] : memref<32x64xf32, #tpu.memory_space<vmem>>, vector<16x64xf32>
    %350 = vector.extract_strided_slice %327 {offsets = [4, 0], sizes = [1, 64], strides = [1, 1]} : vector<17x64xf32> to vector<1x64xf32>
    %351 = vector.broadcast %350 : vector<1x64xf32> to vector<16x64xf32>
    %352 = arith.mulf %349, %351 : vector<16x64xf32>
    %353 = arith.addf %348, %352 : vector<16x64xf32>
    %c5_175 = arith.constant 5 : index
    %c0_176 = arith.constant 0 : index
    %354 = vector.load %arg11[%c5_175, %c0_176] : memref<32x64xf32, #tpu.memory_space<vmem>>, vector<16x64xf32>
    %355 = vector.extract_strided_slice %327 {offsets = [5, 0], sizes = [1, 64], strides = [1, 1]} : vector<17x64xf32> to vector<1x64xf32>
    %356 = vector.broadcast %355 : vector<1x64xf32> to vector<16x64xf32>
    %357 = arith.mulf %354, %356 : vector<16x64xf32>
    %358 = arith.addf %353, %357 : vector<16x64xf32>
    %c6_177 = arith.constant 6 : index
    %c0_178 = arith.constant 0 : index
    %359 = vector.load %arg11[%c6_177, %c0_178] : memref<32x64xf32, #tpu.memory_space<vmem>>, vector<16x64xf32>
    %360 = vector.extract_strided_slice %327 {offsets = [6, 0], sizes = [1, 64], strides = [1, 1]} : vector<17x64xf32> to vector<1x64xf32>
    %361 = vector.broadcast %360 : vector<1x64xf32> to vector<16x64xf32>
    %362 = arith.mulf %359, %361 : vector<16x64xf32>
    %363 = arith.addf %358, %362 : vector<16x64xf32>
    %c7_179 = arith.constant 7 : index
    %c0_180 = arith.constant 0 : index
    %364 = vector.load %arg11[%c7_179, %c0_180] : memref<32x64xf32, #tpu.memory_space<vmem>>, vector<16x64xf32>
    %365 = vector.extract_strided_slice %327 {offsets = [7, 0], sizes = [1, 64], strides = [1, 1]} : vector<17x64xf32> to vector<1x64xf32>
    %366 = vector.broadcast %365 : vector<1x64xf32> to vector<16x64xf32>
    %367 = arith.mulf %364, %366 : vector<16x64xf32>
    %368 = arith.addf %363, %367 : vector<16x64xf32>
    %c8_181 = arith.constant 8 : index
    %c0_182 = arith.constant 0 : index
    %369 = vector.load %arg11[%c8_181, %c0_182] : memref<32x64xf32, #tpu.memory_space<vmem>>, vector<16x64xf32>
    %370 = vector.extract_strided_slice %327 {offsets = [8, 0], sizes = [1, 64], strides = [1, 1]} : vector<17x64xf32> to vector<1x64xf32>
    %371 = vector.broadcast %370 : vector<1x64xf32> to vector<16x64xf32>
    %372 = arith.mulf %369, %371 : vector<16x64xf32>
    %373 = arith.addf %368, %372 : vector<16x64xf32>
    %c9_183 = arith.constant 9 : index
    %c0_184 = arith.constant 0 : index
    %374 = vector.load %arg11[%c9_183, %c0_184] : memref<32x64xf32, #tpu.memory_space<vmem>>, vector<16x64xf32>
    %375 = vector.extract_strided_slice %327 {offsets = [9, 0], sizes = [1, 64], strides = [1, 1]} : vector<17x64xf32> to vector<1x64xf32>
    %376 = vector.broadcast %375 : vector<1x64xf32> to vector<16x64xf32>
    %377 = arith.mulf %374, %376 : vector<16x64xf32>
    %378 = arith.addf %373, %377 : vector<16x64xf32>
    %c10_185 = arith.constant 10 : index
    %c0_186 = arith.constant 0 : index
    %379 = vector.load %arg11[%c10_185, %c0_186] : memref<32x64xf32, #tpu.memory_space<vmem>>, vector<16x64xf32>
    %380 = vector.extract_strided_slice %327 {offsets = [10, 0], sizes = [1, 64], strides = [1, 1]} : vector<17x64xf32> to vector<1x64xf32>
    %381 = vector.broadcast %380 : vector<1x64xf32> to vector<16x64xf32>
    %382 = arith.mulf %379, %381 : vector<16x64xf32>
    %383 = arith.addf %378, %382 : vector<16x64xf32>
    %c11_187 = arith.constant 11 : index
    %c0_188 = arith.constant 0 : index
    %384 = vector.load %arg11[%c11_187, %c0_188] : memref<32x64xf32, #tpu.memory_space<vmem>>, vector<16x64xf32>
    %385 = vector.extract_strided_slice %327 {offsets = [11, 0], sizes = [1, 64], strides = [1, 1]} : vector<17x64xf32> to vector<1x64xf32>
    %386 = vector.broadcast %385 : vector<1x64xf32> to vector<16x64xf32>
    %387 = arith.mulf %384, %386 : vector<16x64xf32>
    %388 = arith.addf %383, %387 : vector<16x64xf32>
    %c12_189 = arith.constant 12 : index
    %c0_190 = arith.constant 0 : index
    %389 = vector.load %arg11[%c12_189, %c0_190] : memref<32x64xf32, #tpu.memory_space<vmem>>, vector<16x64xf32>
    %390 = vector.extract_strided_slice %327 {offsets = [12, 0], sizes = [1, 64], strides = [1, 1]} : vector<17x64xf32> to vector<1x64xf32>
    %391 = vector.broadcast %390 : vector<1x64xf32> to vector<16x64xf32>
    %392 = arith.mulf %389, %391 : vector<16x64xf32>
    %393 = arith.addf %388, %392 : vector<16x64xf32>
    %c13_191 = arith.constant 13 : index
    %c0_192 = arith.constant 0 : index
    %394 = vector.load %arg11[%c13_191, %c0_192] : memref<32x64xf32, #tpu.memory_space<vmem>>, vector<16x64xf32>
    %395 = vector.extract_strided_slice %327 {offsets = [13, 0], sizes = [1, 64], strides = [1, 1]} : vector<17x64xf32> to vector<1x64xf32>
    %396 = vector.broadcast %395 : vector<1x64xf32> to vector<16x64xf32>
    %397 = arith.mulf %394, %396 : vector<16x64xf32>
    %398 = arith.addf %393, %397 : vector<16x64xf32>
    %c14_193 = arith.constant 14 : index
    %c0_194 = arith.constant 0 : index
    %399 = vector.load %arg11[%c14_193, %c0_194] : memref<32x64xf32, #tpu.memory_space<vmem>>, vector<16x64xf32>
    %400 = vector.extract_strided_slice %327 {offsets = [14, 0], sizes = [1, 64], strides = [1, 1]} : vector<17x64xf32> to vector<1x64xf32>
    %401 = vector.broadcast %400 : vector<1x64xf32> to vector<16x64xf32>
    %402 = arith.mulf %399, %401 : vector<16x64xf32>
    %403 = arith.addf %398, %402 : vector<16x64xf32>
    %c15_195 = arith.constant 15 : index
    %c0_196 = arith.constant 0 : index
    %404 = vector.load %arg11[%c15_195, %c0_196] : memref<32x64xf32, #tpu.memory_space<vmem>>, vector<16x64xf32>
    %405 = vector.extract_strided_slice %327 {offsets = [15, 0], sizes = [1, 64], strides = [1, 1]} : vector<17x64xf32> to vector<1x64xf32>
    %406 = vector.broadcast %405 : vector<1x64xf32> to vector<16x64xf32>
    %407 = arith.mulf %404, %406 : vector<16x64xf32>
    %408 = arith.addf %403, %407 : vector<16x64xf32>
    %c16_197 = arith.constant 16 : index
    %c0_198 = arith.constant 0 : index
    %409 = vector.load %arg11[%c16_197, %c0_198] : memref<32x64xf32, #tpu.memory_space<vmem>>, vector<16x64xf32>
    %410 = vector.extract_strided_slice %327 {offsets = [16, 0], sizes = [1, 64], strides = [1, 1]} : vector<17x64xf32> to vector<1x64xf32>
    %411 = vector.broadcast %410 : vector<1x64xf32> to vector<16x64xf32>
    %412 = arith.mulf %409, %411 : vector<16x64xf32>
    %413 = arith.addf %408, %412 : vector<16x64xf32>
    %c2_199 = arith.constant 2 : index
    %c0_200 = arith.constant 0 : index
    %c0_201 = arith.constant 0 : index
    %414 = vector.load %arg5[%c2_199, %c0_200, %c0_201] : memref<3x1x64xf32, #tpu.memory_space<vmem>>, vector<1x1x64xf32>
    %415 = vector.shape_cast %414 : vector<1x1x64xf32> to vector<1x64xf32>
    %416 = vector.broadcast %415 : vector<1x64xf32> to vector<16x64xf32>
    %417 = arith.mulf %413, %416 : vector<16x64xf32>
    %c2_202 = arith.constant 2 : index
    %c0_203 = arith.constant 0 : index
    %c0_204 = arith.constant 0 : index
    %418 = vector.load %arg6[%c2_202, %c0_203, %c0_204] : memref<3x1x64xf32, #tpu.memory_space<vmem>>, vector<1x1x64xf32>
    %419 = vector.shape_cast %418 : vector<1x1x64xf32> to vector<1x64xf32>
    %420 = vector.broadcast %419 : vector<1x64xf32> to vector<16x64xf32>
    %421 = arith.addf %417, %420 : vector<16x64xf32>
    %cst_205 = arith.constant dense<0.000000e+00> : vector<64xf32>
    %422 = vector.multi_reduction <add>, %421, %cst_205 [0] : vector<16x64xf32> to vector<64xf32>
    %423 = vector.shape_cast %422 : vector<64xf32> to vector<1x64xf32>
    %cst_206 = arith.constant 1.600000e+01 : f32
    %424 = vector.broadcast %cst_206 : f32 to vector<1x64xf32>
    %425 = arith.divf %423, %424 : vector<1x64xf32>
    %c0_207 = arith.constant 0 : index
    %c2_208 = arith.constant 2 : index
    %426 = vector.load %arg12[%c0_207, %c2_208] : memref<1x68xf32, #tpu.memory_space<vmem>>, vector<1x64xf32>
    tpu.vector_store %arg12[%c0_207, %c2_208], %425 {strides = array<i32>} : memref<1x68xf32, #tpu.memory_space<vmem>>, vector<1x64xf32>,
    %c2_209 = arith.constant 2 : index
    %c0_210 = arith.constant 0 : index
    %c0_211 = arith.constant 0 : index
    %427 = vector.load %arg7[%c2_209, %c0_210, %c0_211] : memref<3x5x64xf32, #tpu.memory_space<vmem>>, vector<1x5x64xf32>
    %428 = vector.shape_cast %427 : vector<1x5x64xf32> to vector<5x64xf32>
    %cst_212 = arith.constant 0.000000e+00 : f32
    %429 = vector.broadcast %cst_212 : f32 to vector<1x64xf32>
    %c0_213 = arith.constant 0 : index
    %c0_214 = arith.constant 0 : index
    %430 = vector.load %arg12[%c0_213, %c0_214] : memref<1x68xf32, #tpu.memory_space<vmem>>, vector<1x64xf32>
    %431 = vector.extract_strided_slice %428 {offsets = [0, 0], sizes = [1, 64], strides = [1, 1]} : vector<5x64xf32> to vector<1x64xf32>
    %432 = arith.mulf %430, %431 : vector<1x64xf32>
    %433 = arith.addf %429, %432 : vector<1x64xf32>
    %c0_215 = arith.constant 0 : index
    %c1_216 = arith.constant 1 : index
    %434 = vector.load %arg12[%c0_215, %c1_216] : memref<1x68xf32, #tpu.memory_space<vmem>>, vector<1x64xf32>
    %435 = vector.extract_strided_slice %428 {offsets = [1, 0], sizes = [1, 64], strides = [1, 1]} : vector<5x64xf32> to vector<1x64xf32>
    %436 = arith.mulf %434, %435 : vector<1x64xf32>
    %437 = arith.addf %433, %436 : vector<1x64xf32>
    %c0_217 = arith.constant 0 : index
    %c2_218 = arith.constant 2 : index
    %438 = vector.load %arg12[%c0_217, %c2_218] : memref<1x68xf32, #tpu.memory_space<vmem>>, vector<1x64xf32>
    %439 = vector.extract_strided_slice %428 {offsets = [2, 0], sizes = [1, 64], strides = [1, 1]} : vector<5x64xf32> to vector<1x64xf32>
    %440 = arith.mulf %438, %439 : vector<1x64xf32>
    %441 = arith.addf %437, %440 : vector<1x64xf32>
    %c0_219 = arith.constant 0 : index
    %c3_220 = arith.constant 3 : index
    %442 = vector.load %arg12[%c0_219, %c3_220] : memref<1x68xf32, #tpu.memory_space<vmem>>, vector<1x64xf32>
    %443 = vector.extract_strided_slice %428 {offsets = [3, 0], sizes = [1, 64], strides = [1, 1]} : vector<5x64xf32> to vector<1x64xf32>
    %444 = arith.mulf %442, %443 : vector<1x64xf32>
    %445 = arith.addf %441, %444 : vector<1x64xf32>
    %c0_221 = arith.constant 0 : index
    %c4_222 = arith.constant 4 : index
    %446 = vector.load %arg12[%c0_221, %c4_222] : memref<1x68xf32, #tpu.memory_space<vmem>>, vector<1x64xf32>
    %447 = vector.extract_strided_slice %428 {offsets = [4, 0], sizes = [1, 64], strides = [1, 1]} : vector<5x64xf32> to vector<1x64xf32>
    %448 = arith.mulf %446, %447 : vector<1x64xf32>
    %449 = arith.addf %445, %448 : vector<1x64xf32>
    %450 = arith.negf %449 : vector<1x64xf32>
    %451 = math.exp %450 : vector<1x64xf32>
    %cst_223 = arith.constant 1.000000e+00 : f32
    %452 = vector.broadcast %cst_223 : f32 to vector<1x64xf32>
    %453 = arith.addf %452, %451 : vector<1x64xf32>
    %454 = arith.divf %452, %453 : vector<1x64xf32>
    %455 = vector.broadcast %454 : vector<1x64xf32> to vector<16x64xf32>
    %456 = arith.mulf %421, %455 : vector<16x64xf32>
    %c2_224 = arith.constant 2 : index
    %c0_225 = arith.constant 0 : index
    %c0_226 = arith.constant 0 : index
    %457 = vector.load %arg8[%c2_224, %c0_225, %c0_226] : memref<3x64x32xf32, #tpu.memory_space<vmem>>, vector<1x64x32xf32>
    %458 = vector.shape_cast %457 : vector<1x64x32xf32> to vector<64x32xf32>
    %cst_227 = arith.constant dense<0.000000e+00> : vector<16x32xf32>
    %459 = tpu.matmul %456, %458, %cst_227 {dimension_numbers = #tpu.dot_dimension_numbers<[1], [0], [0], [1], [0, 0, 1, 1], [], []>} : vector<16x64xf32>, vector<64x32xf32>, vector<16x32xf32> -> vector<16x32xf32>
    %460 = arith.addf %311, %459 : vector<16x32xf32>
    %c2_228 = arith.constant 2 : index
    %c0_229 = arith.constant 0 : index
    %c0_230 = arith.constant 0 : index
    %461 = vector.load %arg9[%c2_228, %c0_229, %c0_230] : memref<3x1x32xf32, #tpu.memory_space<vmem>>, vector<1x1x32xf32>
    %462 = vector.shape_cast %461 : vector<1x1x32xf32> to vector<1x32xf32>
    %463 = vector.broadcast %462 : vector<1x32xf32> to vector<16x32xf32>
    %464 = arith.addf %460, %463 : vector<16x32xf32>
    %c0_231 = arith.constant 0 : index
    %c0_232 = arith.constant 0 : index
    %c0_233 = arith.constant 0 : index
    %465 = vector.load %arg10[%c0_231, %c0_232, %c0_233] : memref<1x16x32xf32, #tpu.memory_space<vmem>>, vector<1x16x32xf32>
    %466 = vector.shape_cast %465 : vector<1x16x32xf32> to vector<16x32xf32>
    %467 = vector.shape_cast %464 : vector<16x32xf32> to vector<1x16x32xf32>
    tpu.vector_store %arg10[%c0_231, %c0_232, %c0_233], %467 {strides = array<i32>} : memref<1x16x32xf32, #tpu.memory_space<vmem>>, vector<1x16x32xf32>,
    return
  }
  func.func @transform_0(%arg0: i32) -> (i32, i32, i32) {
    %c0_i32 = arith.constant 0 : i32
    %c0_i32_0 = arith.constant 0 : i32
    %c0_i32_1 = arith.constant 0 : i32
    return %arg0, %c0_i32, %c0_i32_0 : i32, i32, i32
  }
  func.func @transform_1(%arg0: i32) -> (i32, i32, i32) {
    %c0_i32 = arith.constant 0 : i32
    %c0_i32_0 = arith.constant 0 : i32
    %c0_i32_1 = arith.constant 0 : i32
    %c0_i32_2 = arith.constant 0 : i32
    return %c0_i32, %c0_i32_0, %c0_i32_1 : i32, i32, i32
  }
  func.func @transform_2(%arg0: i32) -> (i32, i32, i32) {
    %c0_i32 = arith.constant 0 : i32
    %c0_i32_0 = arith.constant 0 : i32
    %c0_i32_1 = arith.constant 0 : i32
    %c0_i32_2 = arith.constant 0 : i32
    return %c0_i32, %c0_i32_0, %c0_i32_1 : i32, i32, i32
  }
  func.func @transform_3(%arg0: i32) -> (i32, i32, i32) {
    %c0_i32 = arith.constant 0 : i32
    %c0_i32_0 = arith.constant 0 : i32
    %c0_i32_1 = arith.constant 0 : i32
    %c0_i32_2 = arith.constant 0 : i32
    return %c0_i32, %c0_i32_0, %c0_i32_1 : i32, i32, i32
  }
  func.func @transform_4(%arg0: i32) -> (i32, i32, i32) {
    %c0_i32 = arith.constant 0 : i32
    %c0_i32_0 = arith.constant 0 : i32
    %c0_i32_1 = arith.constant 0 : i32
    %c0_i32_2 = arith.constant 0 : i32
    return %c0_i32, %c0_i32_0, %c0_i32_1 : i32, i32, i32
  }
  func.func @transform_5(%arg0: i32) -> (i32, i32, i32) {
    %c0_i32 = arith.constant 0 : i32
    %c0_i32_0 = arith.constant 0 : i32
    %c0_i32_1 = arith.constant 0 : i32
    %c0_i32_2 = arith.constant 0 : i32
    return %c0_i32, %c0_i32_0, %c0_i32_1 : i32, i32, i32
  }
  func.func @transform_6(%arg0: i32) -> (i32, i32, i32) {
    %c0_i32 = arith.constant 0 : i32
    %c0_i32_0 = arith.constant 0 : i32
    %c0_i32_1 = arith.constant 0 : i32
    %c0_i32_2 = arith.constant 0 : i32
    return %c0_i32, %c0_i32_0, %c0_i32_1 : i32, i32, i32
  }
  func.func @transform_7(%arg0: i32) -> (i32, i32, i32) {
    %c0_i32 = arith.constant 0 : i32
    %c0_i32_0 = arith.constant 0 : i32
    %c0_i32_1 = arith.constant 0 : i32
    %c0_i32_2 = arith.constant 0 : i32
    return %c0_i32, %c0_i32_0, %c0_i32_1 : i32, i32, i32
  }
  func.func @transform_8(%arg0: i32) -> (i32, i32, i32) {
    %c0_i32 = arith.constant 0 : i32
    %c0_i32_0 = arith.constant 0 : i32
    %c0_i32_1 = arith.constant 0 : i32
    %c0_i32_2 = arith.constant 0 : i32
    return %c0_i32, %c0_i32_0, %c0_i32_1 : i32, i32, i32
  }
  func.func @transform_9(%arg0: i32) -> (i32, i32, i32) {
    %c0_i32 = arith.constant 0 : i32
    %c0_i32_0 = arith.constant 0 : i32
    %c0_i32_1 = arith.constant 0 : i32
    return %arg0, %c0_i32, %c0_i32_0 : i32, i32, i32
  }
}

module attributes {stable_mosaic.version = 11 : i64} {
  func.func @_transformer_kernel(%arg0: i32, %arg1: memref<1x16x32xf32, #tpu.memory_space<vmem>>, %arg2: memref<1x32xf32, #tpu.memory_space<vmem>>, %arg3: memref<1x32xf32, #tpu.memory_space<vmem>>, %arg4: memref<1x32xf32, #tpu.memory_space<vmem>>, %arg5: memref<1x32xf32, #tpu.memory_space<vmem>>, %arg6: memref<4x32x8xf32, #tpu.memory_space<vmem>>, %arg7: memref<4x1x8xf32, #tpu.memory_space<vmem>>, %arg8: memref<4x32x8xf32, #tpu.memory_space<vmem>>, %arg9: memref<4x1x8xf32, #tpu.memory_space<vmem>>, %arg10: memref<4x32x8xf32, #tpu.memory_space<vmem>>, %arg11: memref<4x1x8xf32, #tpu.memory_space<vmem>>, %arg12: memref<4x8x32xf32, #tpu.memory_space<vmem>>, %arg13: memref<1x32xf32, #tpu.memory_space<vmem>>, %arg14: memref<1x32xf32, #tpu.memory_space<vmem>>, %arg15: memref<1x32xf32, #tpu.memory_space<vmem>>, %arg16: memref<32x64xf32, #tpu.memory_space<vmem>>, %arg17: memref<1x64xf32, #tpu.memory_space<vmem>>, %arg18: memref<64x32xf32, #tpu.memory_space<vmem>>, %arg19: memref<1x32xf32, #tpu.memory_space<vmem>>, %arg20: memref<1x16x32xf32, #tpu.memory_space<vmem>>) attributes {dimension_semantics = [#tpu.dimension_semantics<parallel>], iteration_bounds = array<i64: 2>, scalar_prefetch = 0 : i64, scratch_operands = 0 : i64, tpu.core_type = #tpu.core_type<tc>, window_params = [{transform_indices = @transform_0, window_bounds = array<i64: 1, 16, 32>}, {pipeline_mode = #tpu.pipeline_mode<synchronous>, transform_indices = @transform_1, window_bounds = array<i64: 1, 32>}, {pipeline_mode = #tpu.pipeline_mode<synchronous>, transform_indices = @transform_2, window_bounds = array<i64: 1, 32>}, {pipeline_mode = #tpu.pipeline_mode<synchronous>, transform_indices = @transform_3, window_bounds = array<i64: 1, 32>}, {pipeline_mode = #tpu.pipeline_mode<synchronous>, transform_indices = @transform_4, window_bounds = array<i64: 1, 32>}, {pipeline_mode = #tpu.pipeline_mode<synchronous>, transform_indices = @transform_5, window_bounds = array<i64: 4, 32, 8>}, {pipeline_mode = #tpu.pipeline_mode<synchronous>, transform_indices = @transform_6, window_bounds = array<i64: 4, 1, 8>}, {pipeline_mode = #tpu.pipeline_mode<synchronous>, transform_indices = @transform_7, window_bounds = array<i64: 4, 32, 8>}, {pipeline_mode = #tpu.pipeline_mode<synchronous>, transform_indices = @transform_8, window_bounds = array<i64: 4, 1, 8>}, {pipeline_mode = #tpu.pipeline_mode<synchronous>, transform_indices = @transform_9, window_bounds = array<i64: 4, 32, 8>}, {pipeline_mode = #tpu.pipeline_mode<synchronous>, transform_indices = @transform_10, window_bounds = array<i64: 4, 1, 8>}, {pipeline_mode = #tpu.pipeline_mode<synchronous>, transform_indices = @transform_11, window_bounds = array<i64: 4, 8, 32>}, {pipeline_mode = #tpu.pipeline_mode<synchronous>, transform_indices = @transform_12, window_bounds = array<i64: 1, 32>}, {pipeline_mode = #tpu.pipeline_mode<synchronous>, transform_indices = @transform_13, window_bounds = array<i64: 1, 32>}, {pipeline_mode = #tpu.pipeline_mode<synchronous>, transform_indices = @transform_14, window_bounds = array<i64: 1, 32>}, {pipeline_mode = #tpu.pipeline_mode<synchronous>, transform_indices = @transform_15, window_bounds = array<i64: 32, 64>}, {pipeline_mode = #tpu.pipeline_mode<synchronous>, transform_indices = @transform_16, window_bounds = array<i64: 1, 64>}, {pipeline_mode = #tpu.pipeline_mode<synchronous>, transform_indices = @transform_17, window_bounds = array<i64: 64, 32>}, {pipeline_mode = #tpu.pipeline_mode<synchronous>, transform_indices = @transform_18, window_bounds = array<i64: 1, 32>}, {transform_indices = @transform_19, window_bounds = array<i64: 1, 16, 32>}]} {
    %c0 = arith.constant 0 : index
    %c0_0 = arith.constant 0 : index
    %c0_1 = arith.constant 0 : index
    %0 = vector.load %arg1[%c0, %c0_0, %c0_1] : memref<1x16x32xf32, #tpu.memory_space<vmem>>, vector<1x16x32xf32>
    %1 = vector.shape_cast %0 : vector<1x16x32xf32> to vector<16x32xf32>
    %c0_2 = arith.constant 0 : index
    %c0_3 = arith.constant 0 : index
    %2 = vector.load %arg4[%c0_2, %c0_3] : memref<1x32xf32, #tpu.memory_space<vmem>>, vector<1x32xf32>
    %c0_4 = arith.constant 0 : index
    %c0_5 = arith.constant 0 : index
    %3 = vector.load %arg5[%c0_4, %c0_5] : memref<1x32xf32, #tpu.memory_space<vmem>>, vector<1x32xf32>
    %c0_6 = arith.constant 0 : index
    %c0_7 = arith.constant 0 : index
    %4 = vector.load %arg2[%c0_6, %c0_7] : memref<1x32xf32, #tpu.memory_space<vmem>>, vector<1x32xf32>
    %5 = vector.broadcast %4 : vector<1x32xf32> to vector<16x32xf32>
    %6 = arith.mulf %1, %5 : vector<16x32xf32>
    %c0_8 = arith.constant 0 : index
    %c0_9 = arith.constant 0 : index
    %7 = vector.load %arg3[%c0_8, %c0_9] : memref<1x32xf32, #tpu.memory_space<vmem>>, vector<1x32xf32>
    %8 = vector.broadcast %7 : vector<1x32xf32> to vector<16x32xf32>
    %9 = arith.addf %6, %8 : vector<16x32xf32>
    %cst = arith.constant dense<0.000000e+00> : vector<16xf32>
    %10 = vector.multi_reduction <add>, %9, %cst [1] : vector<16x32xf32> to vector<16xf32>
    %11 = vector.shape_cast %10 : vector<16xf32> to vector<16x1xf32>
    %cst_10 = arith.constant 3.200000e+01 : f32
    %12 = vector.broadcast %cst_10 : f32 to vector<16x1xf32>
    %13 = arith.divf %11, %12 : vector<16x1xf32>
    %14 = vector.broadcast %13 : vector<16x1xf32> to vector<16x32xf32>
    %15 = arith.subf %9, %14 : vector<16x32xf32>
    %16 = arith.mulf %15, %15 : vector<16x32xf32>
    %cst_11 = arith.constant dense<0.000000e+00> : vector<16xf32>
    %17 = vector.multi_reduction <add>, %16, %cst_11 [1] : vector<16x32xf32> to vector<16xf32>
    %18 = vector.shape_cast %17 : vector<16xf32> to vector<16x1xf32>
    %cst_12 = arith.constant 3.200000e+01 : f32
    %19 = vector.broadcast %cst_12 : f32 to vector<16x1xf32>
    %20 = arith.divf %18, %19 : vector<16x1xf32>
    %21 = vector.broadcast %13 : vector<16x1xf32> to vector<16x32xf32>
    %22 = arith.subf %9, %21 : vector<16x32xf32>
    %cst_13 = arith.constant 9.99999974E-6 : f32
    %23 = vector.broadcast %cst_13 : f32 to vector<16x1xf32>
    %24 = arith.addf %20, %23 : vector<16x1xf32>
    %25 = math.rsqrt %24 : vector<16x1xf32>
    %26 = vector.broadcast %25 : vector<16x1xf32> to vector<16x32xf32>
    %27 = arith.mulf %22, %26 : vector<16x32xf32>
    %28 = vector.broadcast %2 : vector<1x32xf32> to vector<16x32xf32>
    %29 = arith.mulf %27, %28 : vector<16x32xf32>
    %30 = vector.broadcast %3 : vector<1x32xf32> to vector<16x32xf32>
    %31 = arith.addf %29, %30 : vector<16x32xf32>
    %cst_14 = arith.constant 0.000000e+00 : f32
    %32 = vector.broadcast %cst_14 : f32 to vector<16x32xf32>
    %c0_15 = arith.constant 0 : index
    %c0_16 = arith.constant 0 : index
    %c0_17 = arith.constant 0 : index
    %33 = vector.load %arg6[%c0_15, %c0_16, %c0_17] : memref<4x32x8xf32, #tpu.memory_space<vmem>>, vector<1x32x8xf32>
    %34 = vector.shape_cast %33 : vector<1x32x8xf32> to vector<32x8xf32>
    %cst_18 = arith.constant dense<0.000000e+00> : vector<16x8xf32>
    %35 = tpu.matmul %31, %34, %cst_18 {dimension_numbers = #tpu.dot_dimension_numbers<[1], [0], [0], [1], [0, 0, 1, 1], [], []>} : vector<16x32xf32>, vector<32x8xf32>, vector<16x8xf32> -> vector<16x8xf32>
    %c0_19 = arith.constant 0 : index
    %c0_20 = arith.constant 0 : index
    %c0_21 = arith.constant 0 : index
    %36 = vector.load %arg7[%c0_19, %c0_20, %c0_21] : memref<4x1x8xf32, #tpu.memory_space<vmem>>, vector<1x1x8xf32>
    %37 = vector.shape_cast %36 : vector<1x1x8xf32> to vector<1x8xf32>
    %38 = vector.broadcast %37 : vector<1x8xf32> to vector<16x8xf32>
    %39 = arith.addf %35, %38 : vector<16x8xf32>
    %c0_22 = arith.constant 0 : index
    %c0_23 = arith.constant 0 : index
    %c0_24 = arith.constant 0 : index
    %40 = vector.load %arg8[%c0_22, %c0_23, %c0_24] : memref<4x32x8xf32, #tpu.memory_space<vmem>>, vector<1x32x8xf32>
    %41 = vector.shape_cast %40 : vector<1x32x8xf32> to vector<32x8xf32>
    %cst_25 = arith.constant dense<0.000000e+00> : vector<16x8xf32>
    %42 = tpu.matmul %31, %41, %cst_25 {dimension_numbers = #tpu.dot_dimension_numbers<[1], [0], [0], [1], [0, 0, 1, 1], [], []>} : vector<16x32xf32>, vector<32x8xf32>, vector<16x8xf32> -> vector<16x8xf32>
    %c0_26 = arith.constant 0 : index
    %c0_27 = arith.constant 0 : index
    %c0_28 = arith.constant 0 : index
    %43 = vector.load %arg9[%c0_26, %c0_27, %c0_28] : memref<4x1x8xf32, #tpu.memory_space<vmem>>, vector<1x1x8xf32>
    %44 = vector.shape_cast %43 : vector<1x1x8xf32> to vector<1x8xf32>
    %45 = vector.broadcast %44 : vector<1x8xf32> to vector<16x8xf32>
    %46 = arith.addf %42, %45 : vector<16x8xf32>
    %c0_29 = arith.constant 0 : index
    %c0_30 = arith.constant 0 : index
    %c0_31 = arith.constant 0 : index
    %47 = vector.load %arg10[%c0_29, %c0_30, %c0_31] : memref<4x32x8xf32, #tpu.memory_space<vmem>>, vector<1x32x8xf32>
    %48 = vector.shape_cast %47 : vector<1x32x8xf32> to vector<32x8xf32>
    %cst_32 = arith.constant dense<0.000000e+00> : vector<16x8xf32>
    %49 = tpu.matmul %31, %48, %cst_32 {dimension_numbers = #tpu.dot_dimension_numbers<[1], [0], [0], [1], [0, 0, 1, 1], [], []>} : vector<16x32xf32>, vector<32x8xf32>, vector<16x8xf32> -> vector<16x8xf32>
    %c0_33 = arith.constant 0 : index
    %c0_34 = arith.constant 0 : index
    %c0_35 = arith.constant 0 : index
    %50 = vector.load %arg11[%c0_33, %c0_34, %c0_35] : memref<4x1x8xf32, #tpu.memory_space<vmem>>, vector<1x1x8xf32>
    %51 = vector.shape_cast %50 : vector<1x1x8xf32> to vector<1x8xf32>
    %52 = vector.broadcast %51 : vector<1x8xf32> to vector<16x8xf32>
    %53 = arith.addf %49, %52 : vector<16x8xf32>
    %cst_36 = arith.constant dense<0.000000e+00> : vector<16x16xf32>
    %54 = tpu.matmul %39, %46, %cst_36 {dimension_numbers = #tpu.dot_dimension_numbers<[1], [1], [0], [0], [0, 0, 1, 0], [], []>} : vector<16x8xf32>, vector<16x8xf32>, vector<16x16xf32> -> vector<16x16xf32>
    %cst_37 = arith.constant 0.353553385 : f32
    %55 = vector.broadcast %cst_37 : f32 to vector<16x16xf32>
    %56 = arith.mulf %54, %55 : vector<16x16xf32>
    %cst_38 = arith.constant dense<0xFF800000> : vector<16xf32>
    %57 = vector.multi_reduction <maximumf>, %56, %cst_38 [1] : vector<16x16xf32> to vector<16xf32>
    %58 = vector.shape_cast %57 : vector<16xf32> to vector<16x1xf32>
    %59 = vector.broadcast %58 : vector<16x1xf32> to vector<16x16xf32>
    %60 = arith.subf %56, %59 : vector<16x16xf32>
    %61 = math.exp %60 : vector<16x16xf32>
    %cst_39 = arith.constant dense<0.000000e+00> : vector<16xf32>
    %62 = vector.multi_reduction <add>, %61, %cst_39 [1] : vector<16x16xf32> to vector<16xf32>
    %63 = vector.shape_cast %62 : vector<16xf32> to vector<16x1xf32>
    %64 = tpu.reciprocal %63 {approx = true} : vector<16x1xf32> -> vector<16x1xf32>
    %65 = vector.broadcast %64 : vector<16x1xf32> to vector<16x16xf32>
    %66 = arith.mulf %61, %65 : vector<16x16xf32>
    %cst_40 = arith.constant dense<0.000000e+00> : vector<16x8xf32>
    %67 = tpu.matmul %66, %53, %cst_40 {dimension_numbers = #tpu.dot_dimension_numbers<[1], [0], [0], [1], [0, 0, 1, 1], [], []>} : vector<16x16xf32>, vector<16x8xf32>, vector<16x8xf32> -> vector<16x8xf32>
    %c0_41 = arith.constant 0 : index
    %c0_42 = arith.constant 0 : index
    %c0_43 = arith.constant 0 : index
    %68 = vector.load %arg12[%c0_41, %c0_42, %c0_43] : memref<4x8x32xf32, #tpu.memory_space<vmem>>, vector<1x8x32xf32>
    %69 = vector.shape_cast %68 : vector<1x8x32xf32> to vector<8x32xf32>
    %cst_44 = arith.constant dense<0.000000e+00> : vector<16x32xf32>
    %70 = tpu.matmul %67, %69, %cst_44 {dimension_numbers = #tpu.dot_dimension_numbers<[1], [0], [0], [1], [0, 0, 1, 1], [], []>} : vector<16x8xf32>, vector<8x32xf32>, vector<16x32xf32> -> vector<16x32xf32>
    %71 = arith.addf %32, %70 : vector<16x32xf32>
    %c1 = arith.constant 1 : index
    %c0_45 = arith.constant 0 : index
    %c0_46 = arith.constant 0 : index
    %72 = vector.load %arg6[%c1, %c0_45, %c0_46] : memref<4x32x8xf32, #tpu.memory_space<vmem>>, vector<1x32x8xf32>
    %73 = vector.shape_cast %72 : vector<1x32x8xf32> to vector<32x8xf32>
    %cst_47 = arith.constant dense<0.000000e+00> : vector<16x8xf32>
    %74 = tpu.matmul %31, %73, %cst_47 {dimension_numbers = #tpu.dot_dimension_numbers<[1], [0], [0], [1], [0, 0, 1, 1], [], []>} : vector<16x32xf32>, vector<32x8xf32>, vector<16x8xf32> -> vector<16x8xf32>
    %c1_48 = arith.constant 1 : index
    %c0_49 = arith.constant 0 : index
    %c0_50 = arith.constant 0 : index
    %75 = vector.load %arg7[%c1_48, %c0_49, %c0_50] : memref<4x1x8xf32, #tpu.memory_space<vmem>>, vector<1x1x8xf32>
    %76 = vector.shape_cast %75 : vector<1x1x8xf32> to vector<1x8xf32>
    %77 = vector.broadcast %76 : vector<1x8xf32> to vector<16x8xf32>
    %78 = arith.addf %74, %77 : vector<16x8xf32>
    %c1_51 = arith.constant 1 : index
    %c0_52 = arith.constant 0 : index
    %c0_53 = arith.constant 0 : index
    %79 = vector.load %arg8[%c1_51, %c0_52, %c0_53] : memref<4x32x8xf32, #tpu.memory_space<vmem>>, vector<1x32x8xf32>
    %80 = vector.shape_cast %79 : vector<1x32x8xf32> to vector<32x8xf32>
    %cst_54 = arith.constant dense<0.000000e+00> : vector<16x8xf32>
    %81 = tpu.matmul %31, %80, %cst_54 {dimension_numbers = #tpu.dot_dimension_numbers<[1], [0], [0], [1], [0, 0, 1, 1], [], []>} : vector<16x32xf32>, vector<32x8xf32>, vector<16x8xf32> -> vector<16x8xf32>
    %c1_55 = arith.constant 1 : index
    %c0_56 = arith.constant 0 : index
    %c0_57 = arith.constant 0 : index
    %82 = vector.load %arg9[%c1_55, %c0_56, %c0_57] : memref<4x1x8xf32, #tpu.memory_space<vmem>>, vector<1x1x8xf32>
    %83 = vector.shape_cast %82 : vector<1x1x8xf32> to vector<1x8xf32>
    %84 = vector.broadcast %83 : vector<1x8xf32> to vector<16x8xf32>
    %85 = arith.addf %81, %84 : vector<16x8xf32>
    %c1_58 = arith.constant 1 : index
    %c0_59 = arith.constant 0 : index
    %c0_60 = arith.constant 0 : index
    %86 = vector.load %arg10[%c1_58, %c0_59, %c0_60] : memref<4x32x8xf32, #tpu.memory_space<vmem>>, vector<1x32x8xf32>
    %87 = vector.shape_cast %86 : vector<1x32x8xf32> to vector<32x8xf32>
    %cst_61 = arith.constant dense<0.000000e+00> : vector<16x8xf32>
    %88 = tpu.matmul %31, %87, %cst_61 {dimension_numbers = #tpu.dot_dimension_numbers<[1], [0], [0], [1], [0, 0, 1, 1], [], []>} : vector<16x32xf32>, vector<32x8xf32>, vector<16x8xf32> -> vector<16x8xf32>
    %c1_62 = arith.constant 1 : index
    %c0_63 = arith.constant 0 : index
    %c0_64 = arith.constant 0 : index
    %89 = vector.load %arg11[%c1_62, %c0_63, %c0_64] : memref<4x1x8xf32, #tpu.memory_space<vmem>>, vector<1x1x8xf32>
    %90 = vector.shape_cast %89 : vector<1x1x8xf32> to vector<1x8xf32>
    %91 = vector.broadcast %90 : vector<1x8xf32> to vector<16x8xf32>
    %92 = arith.addf %88, %91 : vector<16x8xf32>
    %cst_65 = arith.constant dense<0.000000e+00> : vector<16x16xf32>
    %93 = tpu.matmul %78, %85, %cst_65 {dimension_numbers = #tpu.dot_dimension_numbers<[1], [1], [0], [0], [0, 0, 1, 0], [], []>} : vector<16x8xf32>, vector<16x8xf32>, vector<16x16xf32> -> vector<16x16xf32>
    %cst_66 = arith.constant 0.353553385 : f32
    %94 = vector.broadcast %cst_66 : f32 to vector<16x16xf32>
    %95 = arith.mulf %93, %94 : vector<16x16xf32>
    %cst_67 = arith.constant dense<0xFF800000> : vector<16xf32>
    %96 = vector.multi_reduction <maximumf>, %95, %cst_67 [1] : vector<16x16xf32> to vector<16xf32>
    %97 = vector.shape_cast %96 : vector<16xf32> to vector<16x1xf32>
    %98 = vector.broadcast %97 : vector<16x1xf32> to vector<16x16xf32>
    %99 = arith.subf %95, %98 : vector<16x16xf32>
    %100 = math.exp %99 : vector<16x16xf32>
    %cst_68 = arith.constant dense<0.000000e+00> : vector<16xf32>
    %101 = vector.multi_reduction <add>, %100, %cst_68 [1] : vector<16x16xf32> to vector<16xf32>
    %102 = vector.shape_cast %101 : vector<16xf32> to vector<16x1xf32>
    %103 = tpu.reciprocal %102 {approx = true} : vector<16x1xf32> -> vector<16x1xf32>
    %104 = vector.broadcast %103 : vector<16x1xf32> to vector<16x16xf32>
    %105 = arith.mulf %100, %104 : vector<16x16xf32>
    %cst_69 = arith.constant dense<0.000000e+00> : vector<16x8xf32>
    %106 = tpu.matmul %105, %92, %cst_69 {dimension_numbers = #tpu.dot_dimension_numbers<[1], [0], [0], [1], [0, 0, 1, 1], [], []>} : vector<16x16xf32>, vector<16x8xf32>, vector<16x8xf32> -> vector<16x8xf32>
    %c1_70 = arith.constant 1 : index
    %c0_71 = arith.constant 0 : index
    %c0_72 = arith.constant 0 : index
    %107 = vector.load %arg12[%c1_70, %c0_71, %c0_72] : memref<4x8x32xf32, #tpu.memory_space<vmem>>, vector<1x8x32xf32>
    %108 = vector.shape_cast %107 : vector<1x8x32xf32> to vector<8x32xf32>
    %cst_73 = arith.constant dense<0.000000e+00> : vector<16x32xf32>
    %109 = tpu.matmul %106, %108, %cst_73 {dimension_numbers = #tpu.dot_dimension_numbers<[1], [0], [0], [1], [0, 0, 1, 1], [], []>} : vector<16x8xf32>, vector<8x32xf32>, vector<16x32xf32> -> vector<16x32xf32>
    %110 = arith.addf %71, %109 : vector<16x32xf32>
    %c2 = arith.constant 2 : index
    %c0_74 = arith.constant 0 : index
    %c0_75 = arith.constant 0 : index
    %111 = vector.load %arg6[%c2, %c0_74, %c0_75] : memref<4x32x8xf32, #tpu.memory_space<vmem>>, vector<1x32x8xf32>
    %112 = vector.shape_cast %111 : vector<1x32x8xf32> to vector<32x8xf32>
    %cst_76 = arith.constant dense<0.000000e+00> : vector<16x8xf32>
    %113 = tpu.matmul %31, %112, %cst_76 {dimension_numbers = #tpu.dot_dimension_numbers<[1], [0], [0], [1], [0, 0, 1, 1], [], []>} : vector<16x32xf32>, vector<32x8xf32>, vector<16x8xf32> -> vector<16x8xf32>
    %c2_77 = arith.constant 2 : index
    %c0_78 = arith.constant 0 : index
    %c0_79 = arith.constant 0 : index
    %114 = vector.load %arg7[%c2_77, %c0_78, %c0_79] : memref<4x1x8xf32, #tpu.memory_space<vmem>>, vector<1x1x8xf32>
    %115 = vector.shape_cast %114 : vector<1x1x8xf32> to vector<1x8xf32>
    %116 = vector.broadcast %115 : vector<1x8xf32> to vector<16x8xf32>
    %117 = arith.addf %113, %116 : vector<16x8xf32>
    %c2_80 = arith.constant 2 : index
    %c0_81 = arith.constant 0 : index
    %c0_82 = arith.constant 0 : index
    %118 = vector.load %arg8[%c2_80, %c0_81, %c0_82] : memref<4x32x8xf32, #tpu.memory_space<vmem>>, vector<1x32x8xf32>
    %119 = vector.shape_cast %118 : vector<1x32x8xf32> to vector<32x8xf32>
    %cst_83 = arith.constant dense<0.000000e+00> : vector<16x8xf32>
    %120 = tpu.matmul %31, %119, %cst_83 {dimension_numbers = #tpu.dot_dimension_numbers<[1], [0], [0], [1], [0, 0, 1, 1], [], []>} : vector<16x32xf32>, vector<32x8xf32>, vector<16x8xf32> -> vector<16x8xf32>
    %c2_84 = arith.constant 2 : index
    %c0_85 = arith.constant 0 : index
    %c0_86 = arith.constant 0 : index
    %121 = vector.load %arg9[%c2_84, %c0_85, %c0_86] : memref<4x1x8xf32, #tpu.memory_space<vmem>>, vector<1x1x8xf32>
    %122 = vector.shape_cast %121 : vector<1x1x8xf32> to vector<1x8xf32>
    %123 = vector.broadcast %122 : vector<1x8xf32> to vector<16x8xf32>
    %124 = arith.addf %120, %123 : vector<16x8xf32>
    %c2_87 = arith.constant 2 : index
    %c0_88 = arith.constant 0 : index
    %c0_89 = arith.constant 0 : index
    %125 = vector.load %arg10[%c2_87, %c0_88, %c0_89] : memref<4x32x8xf32, #tpu.memory_space<vmem>>, vector<1x32x8xf32>
    %126 = vector.shape_cast %125 : vector<1x32x8xf32> to vector<32x8xf32>
    %cst_90 = arith.constant dense<0.000000e+00> : vector<16x8xf32>
    %127 = tpu.matmul %31, %126, %cst_90 {dimension_numbers = #tpu.dot_dimension_numbers<[1], [0], [0], [1], [0, 0, 1, 1], [], []>} : vector<16x32xf32>, vector<32x8xf32>, vector<16x8xf32> -> vector<16x8xf32>
    %c2_91 = arith.constant 2 : index
    %c0_92 = arith.constant 0 : index
    %c0_93 = arith.constant 0 : index
    %128 = vector.load %arg11[%c2_91, %c0_92, %c0_93] : memref<4x1x8xf32, #tpu.memory_space<vmem>>, vector<1x1x8xf32>
    %129 = vector.shape_cast %128 : vector<1x1x8xf32> to vector<1x8xf32>
    %130 = vector.broadcast %129 : vector<1x8xf32> to vector<16x8xf32>
    %131 = arith.addf %127, %130 : vector<16x8xf32>
    %cst_94 = arith.constant dense<0.000000e+00> : vector<16x16xf32>
    %132 = tpu.matmul %117, %124, %cst_94 {dimension_numbers = #tpu.dot_dimension_numbers<[1], [1], [0], [0], [0, 0, 1, 0], [], []>} : vector<16x8xf32>, vector<16x8xf32>, vector<16x16xf32> -> vector<16x16xf32>
    %cst_95 = arith.constant 0.353553385 : f32
    %133 = vector.broadcast %cst_95 : f32 to vector<16x16xf32>
    %134 = arith.mulf %132, %133 : vector<16x16xf32>
    %cst_96 = arith.constant dense<0xFF800000> : vector<16xf32>
    %135 = vector.multi_reduction <maximumf>, %134, %cst_96 [1] : vector<16x16xf32> to vector<16xf32>
    %136 = vector.shape_cast %135 : vector<16xf32> to vector<16x1xf32>
    %137 = vector.broadcast %136 : vector<16x1xf32> to vector<16x16xf32>
    %138 = arith.subf %134, %137 : vector<16x16xf32>
    %139 = math.exp %138 : vector<16x16xf32>
    %cst_97 = arith.constant dense<0.000000e+00> : vector<16xf32>
    %140 = vector.multi_reduction <add>, %139, %cst_97 [1] : vector<16x16xf32> to vector<16xf32>
    %141 = vector.shape_cast %140 : vector<16xf32> to vector<16x1xf32>
    %142 = tpu.reciprocal %141 {approx = true} : vector<16x1xf32> -> vector<16x1xf32>
    %143 = vector.broadcast %142 : vector<16x1xf32> to vector<16x16xf32>
    %144 = arith.mulf %139, %143 : vector<16x16xf32>
    %cst_98 = arith.constant dense<0.000000e+00> : vector<16x8xf32>
    %145 = tpu.matmul %144, %131, %cst_98 {dimension_numbers = #tpu.dot_dimension_numbers<[1], [0], [0], [1], [0, 0, 1, 1], [], []>} : vector<16x16xf32>, vector<16x8xf32>, vector<16x8xf32> -> vector<16x8xf32>
    %c2_99 = arith.constant 2 : index
    %c0_100 = arith.constant 0 : index
    %c0_101 = arith.constant 0 : index
    %146 = vector.load %arg12[%c2_99, %c0_100, %c0_101] : memref<4x8x32xf32, #tpu.memory_space<vmem>>, vector<1x8x32xf32>
    %147 = vector.shape_cast %146 : vector<1x8x32xf32> to vector<8x32xf32>
    %cst_102 = arith.constant dense<0.000000e+00> : vector<16x32xf32>
    %148 = tpu.matmul %145, %147, %cst_102 {dimension_numbers = #tpu.dot_dimension_numbers<[1], [0], [0], [1], [0, 0, 1, 1], [], []>} : vector<16x8xf32>, vector<8x32xf32>, vector<16x32xf32> -> vector<16x32xf32>
    %149 = arith.addf %110, %148 : vector<16x32xf32>
    %c3 = arith.constant 3 : index
    %c0_103 = arith.constant 0 : index
    %c0_104 = arith.constant 0 : index
    %150 = vector.load %arg6[%c3, %c0_103, %c0_104] : memref<4x32x8xf32, #tpu.memory_space<vmem>>, vector<1x32x8xf32>
    %151 = vector.shape_cast %150 : vector<1x32x8xf32> to vector<32x8xf32>
    %cst_105 = arith.constant dense<0.000000e+00> : vector<16x8xf32>
    %152 = tpu.matmul %31, %151, %cst_105 {dimension_numbers = #tpu.dot_dimension_numbers<[1], [0], [0], [1], [0, 0, 1, 1], [], []>} : vector<16x32xf32>, vector<32x8xf32>, vector<16x8xf32> -> vector<16x8xf32>
    %c3_106 = arith.constant 3 : index
    %c0_107 = arith.constant 0 : index
    %c0_108 = arith.constant 0 : index
    %153 = vector.load %arg7[%c3_106, %c0_107, %c0_108] : memref<4x1x8xf32, #tpu.memory_space<vmem>>, vector<1x1x8xf32>
    %154 = vector.shape_cast %153 : vector<1x1x8xf32> to vector<1x8xf32>
    %155 = vector.broadcast %154 : vector<1x8xf32> to vector<16x8xf32>
    %156 = arith.addf %152, %155 : vector<16x8xf32>
    %c3_109 = arith.constant 3 : index
    %c0_110 = arith.constant 0 : index
    %c0_111 = arith.constant 0 : index
    %157 = vector.load %arg8[%c3_109, %c0_110, %c0_111] : memref<4x32x8xf32, #tpu.memory_space<vmem>>, vector<1x32x8xf32>
    %158 = vector.shape_cast %157 : vector<1x32x8xf32> to vector<32x8xf32>
    %cst_112 = arith.constant dense<0.000000e+00> : vector<16x8xf32>
    %159 = tpu.matmul %31, %158, %cst_112 {dimension_numbers = #tpu.dot_dimension_numbers<[1], [0], [0], [1], [0, 0, 1, 1], [], []>} : vector<16x32xf32>, vector<32x8xf32>, vector<16x8xf32> -> vector<16x8xf32>
    %c3_113 = arith.constant 3 : index
    %c0_114 = arith.constant 0 : index
    %c0_115 = arith.constant 0 : index
    %160 = vector.load %arg9[%c3_113, %c0_114, %c0_115] : memref<4x1x8xf32, #tpu.memory_space<vmem>>, vector<1x1x8xf32>
    %161 = vector.shape_cast %160 : vector<1x1x8xf32> to vector<1x8xf32>
    %162 = vector.broadcast %161 : vector<1x8xf32> to vector<16x8xf32>
    %163 = arith.addf %159, %162 : vector<16x8xf32>
    %c3_116 = arith.constant 3 : index
    %c0_117 = arith.constant 0 : index
    %c0_118 = arith.constant 0 : index
    %164 = vector.load %arg10[%c3_116, %c0_117, %c0_118] : memref<4x32x8xf32, #tpu.memory_space<vmem>>, vector<1x32x8xf32>
    %165 = vector.shape_cast %164 : vector<1x32x8xf32> to vector<32x8xf32>
    %cst_119 = arith.constant dense<0.000000e+00> : vector<16x8xf32>
    %166 = tpu.matmul %31, %165, %cst_119 {dimension_numbers = #tpu.dot_dimension_numbers<[1], [0], [0], [1], [0, 0, 1, 1], [], []>} : vector<16x32xf32>, vector<32x8xf32>, vector<16x8xf32> -> vector<16x8xf32>
    %c3_120 = arith.constant 3 : index
    %c0_121 = arith.constant 0 : index
    %c0_122 = arith.constant 0 : index
    %167 = vector.load %arg11[%c3_120, %c0_121, %c0_122] : memref<4x1x8xf32, #tpu.memory_space<vmem>>, vector<1x1x8xf32>
    %168 = vector.shape_cast %167 : vector<1x1x8xf32> to vector<1x8xf32>
    %169 = vector.broadcast %168 : vector<1x8xf32> to vector<16x8xf32>
    %170 = arith.addf %166, %169 : vector<16x8xf32>
    %cst_123 = arith.constant dense<0.000000e+00> : vector<16x16xf32>
    %171 = tpu.matmul %156, %163, %cst_123 {dimension_numbers = #tpu.dot_dimension_numbers<[1], [1], [0], [0], [0, 0, 1, 0], [], []>} : vector<16x8xf32>, vector<16x8xf32>, vector<16x16xf32> -> vector<16x16xf32>
    %cst_124 = arith.constant 0.353553385 : f32
    %172 = vector.broadcast %cst_124 : f32 to vector<16x16xf32>
    %173 = arith.mulf %171, %172 : vector<16x16xf32>
    %cst_125 = arith.constant dense<0xFF800000> : vector<16xf32>
    %174 = vector.multi_reduction <maximumf>, %173, %cst_125 [1] : vector<16x16xf32> to vector<16xf32>
    %175 = vector.shape_cast %174 : vector<16xf32> to vector<16x1xf32>
    %176 = vector.broadcast %175 : vector<16x1xf32> to vector<16x16xf32>
    %177 = arith.subf %173, %176 : vector<16x16xf32>
    %178 = math.exp %177 : vector<16x16xf32>
    %cst_126 = arith.constant dense<0.000000e+00> : vector<16xf32>
    %179 = vector.multi_reduction <add>, %178, %cst_126 [1] : vector<16x16xf32> to vector<16xf32>
    %180 = vector.shape_cast %179 : vector<16xf32> to vector<16x1xf32>
    %181 = tpu.reciprocal %180 {approx = true} : vector<16x1xf32> -> vector<16x1xf32>
    %182 = vector.broadcast %181 : vector<16x1xf32> to vector<16x16xf32>
    %183 = arith.mulf %178, %182 : vector<16x16xf32>
    %cst_127 = arith.constant dense<0.000000e+00> : vector<16x8xf32>
    %184 = tpu.matmul %183, %170, %cst_127 {dimension_numbers = #tpu.dot_dimension_numbers<[1], [0], [0], [1], [0, 0, 1, 1], [], []>} : vector<16x16xf32>, vector<16x8xf32>, vector<16x8xf32> -> vector<16x8xf32>
    %c3_128 = arith.constant 3 : index
    %c0_129 = arith.constant 0 : index
    %c0_130 = arith.constant 0 : index
    %185 = vector.load %arg12[%c3_128, %c0_129, %c0_130] : memref<4x8x32xf32, #tpu.memory_space<vmem>>, vector<1x8x32xf32>
    %186 = vector.shape_cast %185 : vector<1x8x32xf32> to vector<8x32xf32>
    %cst_131 = arith.constant dense<0.000000e+00> : vector<16x32xf32>
    %187 = tpu.matmul %184, %186, %cst_131 {dimension_numbers = #tpu.dot_dimension_numbers<[1], [0], [0], [1], [0, 0, 1, 1], [], []>} : vector<16x8xf32>, vector<8x32xf32>, vector<16x32xf32> -> vector<16x32xf32>
    %188 = arith.addf %149, %187 : vector<16x32xf32>
    %189 = arith.addf %1, %188 : vector<16x32xf32>
    %c0_132 = arith.constant 0 : index
    %c0_133 = arith.constant 0 : index
    %190 = vector.load %arg13[%c0_132, %c0_133] : memref<1x32xf32, #tpu.memory_space<vmem>>, vector<1x32xf32>
    %191 = vector.broadcast %190 : vector<1x32xf32> to vector<16x32xf32>
    %192 = arith.addf %189, %191 : vector<16x32xf32>
    %c0_134 = arith.constant 0 : index
    %c0_135 = arith.constant 0 : index
    %193 = vector.load %arg14[%c0_134, %c0_135] : memref<1x32xf32, #tpu.memory_space<vmem>>, vector<1x32xf32>
    %194 = vector.broadcast %193 : vector<1x32xf32> to vector<16x32xf32>
    %195 = arith.mulf %192, %194 : vector<16x32xf32>
    %c0_136 = arith.constant 0 : index
    %c0_137 = arith.constant 0 : index
    %196 = vector.load %arg15[%c0_136, %c0_137] : memref<1x32xf32, #tpu.memory_space<vmem>>, vector<1x32xf32>
    %197 = vector.broadcast %196 : vector<1x32xf32> to vector<16x32xf32>
    %198 = arith.addf %195, %197 : vector<16x32xf32>
    %cst_138 = arith.constant dense<0.000000e+00> : vector<16xf32>
    %199 = vector.multi_reduction <add>, %198, %cst_138 [1] : vector<16x32xf32> to vector<16xf32>
    %200 = vector.shape_cast %199 : vector<16xf32> to vector<16x1xf32>
    %cst_139 = arith.constant 3.200000e+01 : f32
    %201 = vector.broadcast %cst_139 : f32 to vector<16x1xf32>
    %202 = arith.divf %200, %201 : vector<16x1xf32>
    %203 = vector.broadcast %202 : vector<16x1xf32> to vector<16x32xf32>
    %204 = arith.subf %198, %203 : vector<16x32xf32>
    %205 = arith.mulf %204, %204 : vector<16x32xf32>
    %cst_140 = arith.constant dense<0.000000e+00> : vector<16xf32>
    %206 = vector.multi_reduction <add>, %205, %cst_140 [1] : vector<16x32xf32> to vector<16xf32>
    %207 = vector.shape_cast %206 : vector<16xf32> to vector<16x1xf32>
    %cst_141 = arith.constant 3.200000e+01 : f32
    %208 = vector.broadcast %cst_141 : f32 to vector<16x1xf32>
    %209 = arith.divf %207, %208 : vector<16x1xf32>
    %210 = vector.broadcast %202 : vector<16x1xf32> to vector<16x32xf32>
    %211 = arith.subf %198, %210 : vector<16x32xf32>
    %cst_142 = arith.constant 9.99999974E-6 : f32
    %212 = vector.broadcast %cst_142 : f32 to vector<16x1xf32>
    %213 = arith.addf %209, %212 : vector<16x1xf32>
    %214 = math.rsqrt %213 : vector<16x1xf32>
    %215 = vector.broadcast %214 : vector<16x1xf32> to vector<16x32xf32>
    %216 = arith.mulf %211, %215 : vector<16x32xf32>
    %217 = vector.broadcast %2 : vector<1x32xf32> to vector<16x32xf32>
    %218 = arith.mulf %216, %217 : vector<16x32xf32>
    %219 = vector.broadcast %3 : vector<1x32xf32> to vector<16x32xf32>
    %220 = arith.addf %218, %219 : vector<16x32xf32>
    %c0_143 = arith.constant 0 : index
    %c0_144 = arith.constant 0 : index
    %221 = vector.load %arg16[%c0_143, %c0_144] : memref<32x64xf32, #tpu.memory_space<vmem>>, vector<32x64xf32>
    %cst_145 = arith.constant dense<0.000000e+00> : vector<16x64xf32>
    %222 = tpu.matmul %220, %221, %cst_145 {dimension_numbers = #tpu.dot_dimension_numbers<[1], [0], [0], [1], [0, 0, 1, 1], [], []>} : vector<16x32xf32>, vector<32x64xf32>, vector<16x64xf32> -> vector<16x64xf32>
    %c0_146 = arith.constant 0 : index
    %c0_147 = arith.constant 0 : index
    %223 = vector.load %arg17[%c0_146, %c0_147] : memref<1x64xf32, #tpu.memory_space<vmem>>, vector<1x64xf32>
    %224 = vector.broadcast %223 : vector<1x64xf32> to vector<16x64xf32>
    %225 = arith.addf %222, %224 : vector<16x64xf32>
    %cst_148 = arith.constant 0.000000e+00 : f32
    %226 = vector.broadcast %cst_148 : f32 to vector<16x64xf32>
    %227 = arith.maximumf %225, %226 : vector<16x64xf32>
    %c0_149 = arith.constant 0 : index
    %c0_150 = arith.constant 0 : index
    %228 = vector.load %arg18[%c0_149, %c0_150] : memref<64x32xf32, #tpu.memory_space<vmem>>, vector<64x32xf32>
    %cst_151 = arith.constant dense<0.000000e+00> : vector<16x32xf32>
    %229 = tpu.matmul %227, %228, %cst_151 {dimension_numbers = #tpu.dot_dimension_numbers<[1], [0], [0], [1], [0, 0, 1, 1], [], []>} : vector<16x64xf32>, vector<64x32xf32>, vector<16x32xf32> -> vector<16x32xf32>
    %c0_152 = arith.constant 0 : index
    %c0_153 = arith.constant 0 : index
    %230 = vector.load %arg19[%c0_152, %c0_153] : memref<1x32xf32, #tpu.memory_space<vmem>>, vector<1x32xf32>
    %231 = vector.broadcast %230 : vector<1x32xf32> to vector<16x32xf32>
    %232 = arith.addf %229, %231 : vector<16x32xf32>
    %233 = arith.addf %192, %232 : vector<16x32xf32>
    %c0_154 = arith.constant 0 : index
    %c0_155 = arith.constant 0 : index
    %c0_156 = arith.constant 0 : index
    %234 = vector.load %arg20[%c0_154, %c0_155, %c0_156] : memref<1x16x32xf32, #tpu.memory_space<vmem>>, vector<1x16x32xf32>
    %235 = vector.shape_cast %234 : vector<1x16x32xf32> to vector<16x32xf32>
    %236 = vector.shape_cast %233 : vector<16x32xf32> to vector<1x16x32xf32>
    tpu.vector_store %arg20[%c0_154, %c0_155, %c0_156], %236 {strides = array<i32>} : memref<1x16x32xf32, #tpu.memory_space<vmem>>, vector<1x16x32xf32>,
    return
  }
  func.func @transform_0(%arg0: i32) -> (i32, i32, i32) {
    %c0_i32 = arith.constant 0 : i32
    %c0_i32_0 = arith.constant 0 : i32
    %c0_i32_1 = arith.constant 0 : i32
    return %arg0, %c0_i32, %c0_i32_0 : i32, i32, i32
  }
  func.func @transform_1(%arg0: i32) -> (i32, i32) {
    %c0_i32 = arith.constant 0 : i32
    %c0_i32_0 = arith.constant 0 : i32
    %c0_i32_1 = arith.constant 0 : i32
    return %c0_i32, %c0_i32_0 : i32, i32
  }
  func.func @transform_2(%arg0: i32) -> (i32, i32) {
    %c0_i32 = arith.constant 0 : i32
    %c0_i32_0 = arith.constant 0 : i32
    %c0_i32_1 = arith.constant 0 : i32
    return %c0_i32, %c0_i32_0 : i32, i32
  }
  func.func @transform_3(%arg0: i32) -> (i32, i32) {
    %c0_i32 = arith.constant 0 : i32
    %c0_i32_0 = arith.constant 0 : i32
    %c0_i32_1 = arith.constant 0 : i32
    return %c0_i32, %c0_i32_0 : i32, i32
  }
  func.func @transform_4(%arg0: i32) -> (i32, i32) {
    %c0_i32 = arith.constant 0 : i32
    %c0_i32_0 = arith.constant 0 : i32
    %c0_i32_1 = arith.constant 0 : i32
    return %c0_i32, %c0_i32_0 : i32, i32
  }
  func.func @transform_5(%arg0: i32) -> (i32, i32, i32) {
    %c0_i32 = arith.constant 0 : i32
    %c0_i32_0 = arith.constant 0 : i32
    %c0_i32_1 = arith.constant 0 : i32
    %c0_i32_2 = arith.constant 0 : i32
    return %c0_i32, %c0_i32_0, %c0_i32_1 : i32, i32, i32
  }
  func.func @transform_6(%arg0: i32) -> (i32, i32, i32) {
    %c0_i32 = arith.constant 0 : i32
    %c0_i32_0 = arith.constant 0 : i32
    %c0_i32_1 = arith.constant 0 : i32
    %c0_i32_2 = arith.constant 0 : i32
    return %c0_i32, %c0_i32_0, %c0_i32_1 : i32, i32, i32
  }
  func.func @transform_7(%arg0: i32) -> (i32, i32, i32) {
    %c0_i32 = arith.constant 0 : i32
    %c0_i32_0 = arith.constant 0 : i32
    %c0_i32_1 = arith.constant 0 : i32
    %c0_i32_2 = arith.constant 0 : i32
    return %c0_i32, %c0_i32_0, %c0_i32_1 : i32, i32, i32
  }
  func.func @transform_8(%arg0: i32) -> (i32, i32, i32) {
    %c0_i32 = arith.constant 0 : i32
    %c0_i32_0 = arith.constant 0 : i32
    %c0_i32_1 = arith.constant 0 : i32
    %c0_i32_2 = arith.constant 0 : i32
    return %c0_i32, %c0_i32_0, %c0_i32_1 : i32, i32, i32
  }
  func.func @transform_9(%arg0: i32) -> (i32, i32, i32) {
    %c0_i32 = arith.constant 0 : i32
    %c0_i32_0 = arith.constant 0 : i32
    %c0_i32_1 = arith.constant 0 : i32
    %c0_i32_2 = arith.constant 0 : i32
    return %c0_i32, %c0_i32_0, %c0_i32_1 : i32, i32, i32
  }
  func.func @transform_10(%arg0: i32) -> (i32, i32, i32) {
    %c0_i32 = arith.constant 0 : i32
    %c0_i32_0 = arith.constant 0 : i32
    %c0_i32_1 = arith.constant 0 : i32
    %c0_i32_2 = arith.constant 0 : i32
    return %c0_i32, %c0_i32_0, %c0_i32_1 : i32, i32, i32
  }
  func.func @transform_11(%arg0: i32) -> (i32, i32, i32) {
    %c0_i32 = arith.constant 0 : i32
    %c0_i32_0 = arith.constant 0 : i32
    %c0_i32_1 = arith.constant 0 : i32
    %c0_i32_2 = arith.constant 0 : i32
    return %c0_i32, %c0_i32_0, %c0_i32_1 : i32, i32, i32
  }
  func.func @transform_12(%arg0: i32) -> (i32, i32) {
    %c0_i32 = arith.constant 0 : i32
    %c0_i32_0 = arith.constant 0 : i32
    %c0_i32_1 = arith.constant 0 : i32
    return %c0_i32, %c0_i32_0 : i32, i32
  }
  func.func @transform_13(%arg0: i32) -> (i32, i32) {
    %c0_i32 = arith.constant 0 : i32
    %c0_i32_0 = arith.constant 0 : i32
    %c0_i32_1 = arith.constant 0 : i32
    return %c0_i32, %c0_i32_0 : i32, i32
  }
  func.func @transform_14(%arg0: i32) -> (i32, i32) {
    %c0_i32 = arith.constant 0 : i32
    %c0_i32_0 = arith.constant 0 : i32
    %c0_i32_1 = arith.constant 0 : i32
    return %c0_i32, %c0_i32_0 : i32, i32
  }
  func.func @transform_15(%arg0: i32) -> (i32, i32) {
    %c0_i32 = arith.constant 0 : i32
    %c0_i32_0 = arith.constant 0 : i32
    %c0_i32_1 = arith.constant 0 : i32
    return %c0_i32, %c0_i32_0 : i32, i32
  }
  func.func @transform_16(%arg0: i32) -> (i32, i32) {
    %c0_i32 = arith.constant 0 : i32
    %c0_i32_0 = arith.constant 0 : i32
    %c0_i32_1 = arith.constant 0 : i32
    return %c0_i32, %c0_i32_0 : i32, i32
  }
  func.func @transform_17(%arg0: i32) -> (i32, i32) {
    %c0_i32 = arith.constant 0 : i32
    %c0_i32_0 = arith.constant 0 : i32
    %c0_i32_1 = arith.constant 0 : i32
    return %c0_i32, %c0_i32_0 : i32, i32
  }
  func.func @transform_18(%arg0: i32) -> (i32, i32) {
    %c0_i32 = arith.constant 0 : i32
    %c0_i32_0 = arith.constant 0 : i32
    %c0_i32_1 = arith.constant 0 : i32
    return %c0_i32, %c0_i32_0 : i32, i32
  }
  func.func @transform_19(%arg0: i32) -> (i32, i32, i32) {
    %c0_i32 = arith.constant 0 : i32
    %c0_i32_0 = arith.constant 0 : i32
    %c0_i32_1 = arith.constant 0 : i32
    return %arg0, %c0_i32, %c0_i32_0 : i32, i32, i32
  }
}

</mosaic_0001>

<bundles_post_ra>
// kernel: _lambda_.2
= control target key start
LH: loop header
LB: loop body
LE: loop exit
PB: predicated region body
PF: predicated region fallthrough
CT: control target
= control target key end

     0   :  { %s3692_s0 = inlined_call_operand.hbm [shape: f32[2,16,32], index: 0, kind: input, shape index: {}]   ;;  %s3693_s1 = inlined_call_operand.hbm [shape: f32[3,32,64], index: 1, kind: input, shape index: {}]   ;;  %s3694_s2 = inlined_call_operand.hbm [shape: f32[3,1,64], index: 2, kind: input, shape index: {}]   ;;  %s3695_s3 = inlined_call_operand.hbm [shape: f32[3,17,64], index: 3, kind: input, shape index: {}]   ;;  %s3696_s4 = inlined_call_operand.hbm [shape: f32[3,1,64], index: 4, kind: input, shape index: {}]   ;;  %s3697_s5 = inlined_call_operand.hbm [shape: f32[3,1,64], index: 5, kind: input, shape index: {}]   ;;  %s3698_s6 = inlined_call_operand.hbm [shape: f32[3,5,64], index: 6, kind: input, shape index: {}]   ;;  %s3699_s7 = inlined_call_operand.hbm [shape: f32[3,64,32], index: 7, kind: input, shape index: {}]   ;;  %s3700_s8 = inlined_call_operand.hbm [shape: f32[3,1,32], index: 8, kind: input, shape index: {}]   ;;  %s3701_s9 = inlined_call_operand.hbm [shape: f32[2,16,32], index: 9, kind: output, shape index: {}]  }
   0x1   :  { %3710 = sst [smem:[#allocation26_spill]] %s3693_s1 }
   0x2   :  { %3711 = sst [smem:[#allocation27_spill]] %s3695_s3 }
   0x3   :  { %3712 = sst [smem:[#allocation28_spill]] %s3697_s5 }
   0x4   :  { %3713 = sst [smem:[#allocation29_spill]] %s3701_s9 }
   0x5   :  { %14 = vsyncpa [#allocation5], 0 }
   0x6   :  { %16 = vsyncpa [#allocation5 + $0x1], 0 }
   0x7   :  { %17 = vsyncpa [#allocation8], 0 }
   0x8   :  { %18 = vsyncpa [#allocation11], 0 }
   0x9   :  { %19 = vsyncpa [#allocation14], 0 }
   0xa   :  { %20 = vsyncpa [#allocation17], 0 }
   0xb   :  { %21 = vsyncpa [#allocation6], 0 }
   0xc   :  { %23 = vsyncpa [#allocation6 + $0x1], 0  ;;  %s3029_s30 = smov 0   ;;  %s3031_s10 = smov 0  }
   0xd   :  { %s3033_s11 = smov 0   ;;  %s3035_s12 = smov 0  }
   0xe LB: > { %s2953_s13 = smov [#allocation7]   ;;  %s3050_s15 = sadd.s32 4294967295, %s2951_s12   ;;  %s2951_s12 = sphi %s3035_s12, %s3744_s12   ;;  %s2947_s11 = sphi %s3033_s11, %s3743_s11   ;;  %s2943_s10 = sphi %s3031_s10, %s3742_s10   ;;  %s2939_s30 = sphi %s3029_s30, %s3741_s30  }
   0xf   : > { %s266_s14 = sshll.u32 %s2953_s13, 4  ;;  %p2156_p0 = scmp.ge.s32.totalorder %s2951_s12, 1  ;;  %s3055_s14 = int_to_ptr.vmem [resolvable:$true] %s266_s14 }
  0x10   : > { %p3703_p1 = scmp.eq.s32.totalorder %s3050_s15, 0  ;;  %p254_p2 = scmp.lt.s32.totalorder %s2951_s12, 3 }
  0x11   : > { %s2954_s17 = smov [#allocation10]   ;;  %s2955_s20 = smov [#allocation13]  }
  0x12   : > { %p3057_p3 = pnand %p2156_p0, %p254_p2  ;;  %s292_s18 = sshll.u32 %s2954_s17, 4  ;;  %s3070_s18 = int_to_ptr.vmem [resolvable:$true] %s292_s18 }
  0x13   : > { %s3072_s21 = sshll.u32 %s2955_s20, 4  ;;  %s3716_s1 = sld [smem:[#allocation26_spill]]  ;;  %s319_s21 = int_to_ptr.vmem [resolvable:$true] %s3072_s21 }
  0x14   : > { %s3714_s16 = scalar_select %p3057_p3, 1, 0 }
  0x15   : > { %p2469_p5 = pneg %p3057_p3 }
  0x17   : > { %p3066_p6 = pnand %p2469_p5, %p3703_p1 }
  0x19   : > { %s2615_s24 = scalar_lea.hbm %s3716_s1, 1536  ;;  %p3082_p8 = pneg %p3066_p6 }
  0x1a   : > { %p2616_p7 = scmp.ne.s32.totalorder %s3716_s1, %s2615_s24  ;;  %p2622_p11 = scmp.lt.u32.totalorder %s2615_s24, %s3716_s1 }
  0x1c   : > { %p2618_p9 = pnand %p3082_p8, %p2616_p7 }
  0x1e   : > { %p2619_p10 = pneg %p2618_p9 }
  0x20   : > { %p2624_p12 = pnand %p2622_p11, %p2619_p10 }
  0x22   : > { %2627 = shalt.err (!%p2624_p12)
}
  0x23   : > { %s2628_s13 = scalar_lea.vmem %s3055_s14, 1536  ;;  %p2636_p5 = scmp.lt.s32.totalorder %s3055_s14, %s3055_s14 }
  0x24   : > { %p2629_p13 = scmp.ne.s32.totalorder %s3055_s14, %s2628_s13  ;;  %p2637_p4 = scmp.lt.s32.totalorder %s2628_s13, %s2628_s13 }
  0x26   : > { %p2631_p0 = pnand %p2629_p13, %p3082_p8  ;;  %p2638_p7 = por %p2637_p4, %p2636_p5 }
  0x28   : > { %p2632_p2 = pneg %p2631_p0 }
  0x2a   : > { %p2639_p9 = pnand %p2638_p7, %p2632_p2 }
  0x2c   : > { %2642 = shalt.err (!%p2639_p9)
}
  0x2d   : > { %s3705_s17 = smov 128   ;;  %s3707_s20 = smov 8  }
  0x2e   : > { %2472 = dma.hbm_to_vmem [thread:$0]  (!%p3066_p6), %s3716_s1, 1536, %s3055_s14, [#allocation8], %s3705_s17, %s3705_s17, %s3707_s20  }
  0x2f   : > { %s3718_s3 = sld [smem:[#allocation27_spill]] }
  0x35   : > { %s2643_s26 = scalar_lea.hbm %s3718_s3, 1152 }
  0x36   : > { %p2644_p4 = scmp.ne.s32.totalorder %s3718_s3, %s2643_s26  ;;  %p2650_p12 = scmp.lt.u32.totalorder %s2643_s26, %s3718_s3 }
  0x38   : > { %p2646_p10 = pnand %p2644_p4, %p3082_p8 }
  0x3a   : > { %p2647_p11 = pneg %p2646_p10 }
  0x3c   : > { %p2652_p13 = pnand %p2650_p12, %p2647_p11 }
  0x3e   : > { %2655 = shalt.err (!%p2652_p13)
}
  0x3f   : > { %s2656_s14 = scalar_lea.vmem %s3070_s18, 1152  ;;  %p2664_p7 = scmp.lt.s32.totalorder %s3070_s18, %s3070_s18 }
  0x40   : > { %p2657_p0 = scmp.ne.s32.totalorder %s3070_s18, %s2656_s14  ;;  %p2665_p9 = scmp.lt.s32.totalorder %s2656_s14, %s2656_s14 }
  0x42   : > { %p2659_p2 = pnand %p2657_p0, %p3082_p8  ;;  %p2666_p4 = por %p2665_p9, %p2664_p7 }
  0x44   : > { %p2660_p5 = pneg %p2659_p2 }
  0x46   : > { %p2667_p10 = pnand %p2666_p4, %p2660_p5 }
  0x48   : > { %2670 = shalt.err (!%p2667_p10)
}
  0x49   : > { %2478 = dma.hbm_to_vmem [thread:$0]  (!%p3066_p6), %s3718_s3, 1152, %s3070_s18, [#allocation11], %s3705_s17, %s3705_s17, %s3707_s20  }
  0x4a   : > { %s3719_s5 = sld [smem:[#allocation28_spill]] }
  0x50   : > { %s2671_s25 = scalar_lea.hbm %s3719_s5, 48 }
  0x51   : > { %p2672_p11 = scmp.ne.s32.totalorder %s3719_s5, %s2671_s25  ;;  %p2678_p0 = scmp.lt.u32.totalorder %s2671_s25, %s3719_s5 }
  0x53   : > { %p2674_p12 = pnand %p2672_p11, %p3082_p8 }
  0x55   : > { %p2675_p13 = pneg %p2674_p12 }
  0x57   : > { %p2680_p2 = pnand %p2678_p0, %p2675_p13 }
  0x59   : > { %2683 = shalt.err (!%p2680_p2)
}
  0x5a   : > { %s2684_s14 = scalar_lea.vmem %s319_s21, 48  ;;  %s2691_s18 = scalar_lea.vmem %s319_s21, 64 }
  0x5b   : > { %p2685_p5 = scmp.ne.s32.totalorder %s319_s21, %s2684_s14  ;;  %p2692_p4 = scmp.lt.s32.totalorder %s319_s21, %s319_s21 }
  0x5c   : > { %p2693_p10 = scmp.lt.s32.totalorder %s2691_s18, %s2684_s14 }
  0x5d   : > { %p2687_p7 = pnand %p2685_p5, %p3082_p8 }
  0x5e   : > { %p2694_p1 = por %p2693_p10, %p2692_p4 }
  0x5f   : > { %p2688_p9 = pneg %p2687_p7 }
  0x61   : > { %p2695_p3 = pnand %p2694_p1, %p2688_p9 }
  0x63   : > { %2698 = shalt.err (!%p2695_p3)
}
  0x64   : > { %s2958_s9 = smov 16   ;;  %s2959_s22 = smov 1  }
  0x65   : > { %2484 = dma.hbm_to_vmem [thread:$0]  (!%p3066_p6), %s3719_s5, 48, %s319_s21, [#allocation14], %s2958_s9, %s2958_s9, %s2959_s22  }
  0x66   : > { %s2960_s25 = smov [#allocation16]   ;;  %s2961_s28 = smov [#allocation9]  }
  0x67   : > { %s344_s26 = sshll.u32 %s2960_s25, 4  ;;  %s279_s29 = sshll.u32 %s2961_s28, 4  ;;  %s345_s26 = int_to_ptr.vmem [resolvable:$true] %s344_s26  ;;  %s280_s29 = int_to_ptr.vmem [resolvable:$true] %s279_s29 }
  0x68   : > { %s2699_s18 = scalar_lea.hbm %s3699_s7, 3072 }
  0x69   : > { %p2700_p1 = scmp.ne.s32.totalorder %s3699_s7, %s2699_s18  ;;  %p2706_p12 = scmp.lt.u32.totalorder %s2699_s18, %s3699_s7 }
  0x6b   : > { %p2702_p3 = pnand %p2700_p1, %p3082_p8 }
  0x6d   : > { %p2703_p11 = pneg %p2702_p3 }
  0x6f   : > { %p2708_p13 = pnand %p2706_p12, %p2703_p11 }
  0x71   : > { %2711 = shalt.err (!%p2708_p13)
}
  0x72   : > { %s2712_s21 = scalar_lea.vmem %s345_s26, 3072  ;;  %p2720_p7 = scmp.lt.s32.totalorder %s345_s26, %s345_s26 }
  0x73   : > { %p2713_p0 = scmp.ne.s32.totalorder %s345_s26, %s2712_s21  ;;  %p2721_p9 = scmp.lt.s32.totalorder %s2712_s21, %s2712_s21 }
  0x75   : > { %p2715_p2 = pnand %p2713_p0, %p3082_p8  ;;  %p2722_p4 = por %p2721_p9, %p2720_p7 }
  0x77   : > { %p2716_p5 = pneg %p2715_p2 }
  0x79   : > { %p2723_p10 = pnand %p2722_p4, %p2716_p5 }
  0x7b   : > { %2726 = shalt.err (!%p2723_p10)
}
  0x7c   : > { %s3720_s17 = smov 8   ;;  %s3721_s20 = smov 128  }
  0x7d   : > { %2490 = dma.hbm_to_vmem [thread:$0]  (!%p3066_p6), %s3699_s7, 3072, %s345_s26, [#allocation17], %s3721_s20, %s3721_s20, %s3720_s17  }
  0x7e   : > { %s2727_s25 = scalar_lea.hbm %s3694_s2, 48 }
  0x7f   : > { %p2728_p1 = scmp.ne.s32.totalorder %s3694_s2, %s2727_s25  ;;  %p2734_p12 = scmp.lt.u32.totalorder %s2727_s25, %s3694_s2 }
  0x81   : > { %p2730_p3 = pnand %p2728_p1, %p3082_p8 }
  0x83   : > { %p2731_p11 = pneg %p2730_p3 }
  0x85   : > { %p2736_p13 = pnand %p2734_p12, %p2731_p11 }
  0x87   : > { %2739 = shalt.err (!%p2736_p13)
}
  0x88   : > { %s2740_s21 = scalar_lea.vmem %s280_s29, 48  ;;  %s2747_s26 = scalar_lea.vmem %s280_s29, 64 }
  0x89   : > { %p2741_p0 = scmp.ne.s32.totalorder %s280_s29, %s2740_s21  ;;  %p2748_p7 = scmp.lt.s32.totalorder %s280_s29, %s280_s29 }
  0x8a   : > { %p2749_p9 = scmp.lt.s32.totalorder %s2747_s26, %s2740_s21 }
  0x8b   : > { %p2743_p2 = pnand %p2741_p0, %p3082_p8 }
  0x8c   : > { %p2750_p4 = por %p2749_p9, %p2748_p7 }
  0x8d   : > { %p2744_p5 = pneg %p2743_p2 }
  0x8f   : > { %p2751_p10 = pnand %p2750_p4, %p2744_p5 }
  0x91   : > { %2754 = shalt.err (!%p2751_p10)
}
  0x92   : > { %2475 = dma.hbm_to_vmem [thread:$0]  (!%p3066_p6), %s3694_s2, 48, %s280_s29, [#allocation8], %s2958_s9, %s2958_s9, %s2959_s22  }
  0x93   : > { %s2962_s23 = smov [#allocation12]   ;;  %s2963_s25 = smov [#allocation15]  }
  0x94   : > { %s305_s24 = sshll.u32 %s2962_s23, 4  ;;  %s331_s28 = sshll.u32 %s2963_s25, 4  ;;  %s306_s24 = int_to_ptr.vmem [resolvable:$true] %s305_s24  ;;  %s332_s28 = int_to_ptr.vmem [resolvable:$true] %s331_s28 }
  0x95   : > { %s2755_s18 = scalar_lea.hbm %s3696_s4, 48 }
  0x96   : > { %p2756_p1 = scmp.ne.s32.totalorder %s3696_s4, %s2755_s18  ;;  %p2762_p12 = scmp.lt.u32.totalorder %s2755_s18, %s3696_s4 }
  0x98   : > { %p2758_p3 = pnand %p2756_p1, %p3082_p8 }
  0x9a   : > { %p2759_p11 = pneg %p2758_p3 }
  0x9c   : > { %p2764_p13 = pnand %p2762_p12, %p2759_p11 }
  0x9e   : > { %2767 = shalt.err (!%p2764_p13)
}
  0x9f   : > { %s2768_s29 = scalar_lea.vmem %s306_s24, 48  ;;  %s2775_s3 = scalar_lea.vmem %s306_s24, 64 }
  0xa0   : > { %p2769_p0 = scmp.ne.s32.totalorder %s306_s24, %s2768_s29  ;;  %p2776_p7 = scmp.lt.s32.totalorder %s306_s24, %s306_s24 }
  0xa1   : > { %p2777_p9 = scmp.lt.s32.totalorder %s2775_s3, %s2768_s29 }
  0xa2   : > { %p2771_p2 = pnand %p2769_p0, %p3082_p8 }
  0xa3   : > { %p2778_p4 = por %p2777_p9, %p2776_p7 }
  0xa4   : > { %p2772_p5 = pneg %p2771_p2 }
  0xa6   : > { %p2779_p10 = pnand %p2778_p4, %p2772_p5 }
  0xa8   : > { %2782 = shalt.err (!%p2779_p10)
}
  0xa9   : > { %2481 = dma.hbm_to_vmem [thread:$0]  (!%p3066_p6), %s3696_s4, 48, %s306_s24, [#allocation11], %s2958_s9, %s2958_s9, %s2959_s22  }
  0xaa   : > { %s2783_s14 = scalar_lea.hbm %s3698_s6, 384 }
  0xab   : > { %p2784_p1 = scmp.ne.s32.totalorder %s3698_s6, %s2783_s14  ;;  %p2790_p12 = scmp.lt.u32.totalorder %s2783_s14, %s3698_s6 }
  0xad   : > { %p2786_p3 = pnand %p2784_p1, %p3082_p8 }
  0xaf   : > { %p2787_p11 = pneg %p2786_p3 }
  0xb1   : > { %p2792_p13 = pnand %p2790_p12, %p2787_p11 }
  0xb3   : > { %2795 = shalt.err (!%p2792_p13)
}
  0xb4   : > { %s2796_s29 = scalar_lea.vmem %s332_s28, 384  ;;  %p2804_p7 = scmp.lt.s32.totalorder %s332_s28, %s332_s28 }
  0xb5   : > { %p2797_p0 = scmp.ne.s32.totalorder %s332_s28, %s2796_s29  ;;  %p2805_p9 = scmp.lt.s32.totalorder %s2796_s29, %s2796_s29 }
  0xb7   : > { %p2799_p2 = pnand %p2797_p0, %p3082_p8  ;;  %p2806_p4 = por %p2805_p9, %p2804_p7 }
  0xb9   : > { %p2800_p5 = pneg %p2799_p2 }
  0xbb   : > { %p2807_p10 = pnand %p2806_p4, %p2800_p5 }
  0xbd   : > { %2810 = shalt.err (!%p2807_p10)
}
  0xbe   : > { %2487 = dma.hbm_to_vmem [thread:$0]  (!%p3066_p6), %s3698_s6, 384, %s332_s28, [#allocation14], %s3721_s20, %s3721_s20, %s3720_s17  }
  0xbf   : > { %s2964_s5 = smov [#allocation18]   ;;  %s2811_s14 = scalar_lea.hbm %s3700_s8, 48 }
  0xc0   : > { %s357_s23 = sshll.u32 %s2964_s5, 4  ;;  %p2812_p1 = scmp.ne.s32.totalorder %s3700_s8, %s2811_s14  ;;  %s358_s23 = int_to_ptr.vmem [resolvable:$true] %s357_s23 }
  0xc1   : > { %p2818_p12 = scmp.lt.u32.totalorder %s2811_s14, %s3700_s8 }
  0xc2   : > { %p2814_p3 = pnand %p2812_p1, %p3082_p8 }
  0xc4   : > { %p2815_p11 = pneg %p2814_p3 }
  0xc6   : > { %p2820_p13 = pnand %p2818_p12, %p2815_p11 }
  0xc8   : > { %2823 = shalt.err (!%p2820_p13)
}
  0xc9   : > { %s2824_s28 = scalar_lea.vmem %s358_s23, 48  ;;  %s2831_s29 = scalar_lea.vmem %s358_s23, 64 }
  0xca   : > { %p2825_p0 = scmp.ne.s32.totalorder %s358_s23, %s2824_s28  ;;  %p2832_p7 = scmp.lt.s32.totalorder %s358_s23, %s358_s23 }
  0xcb   : > { %p2833_p9 = scmp.lt.s32.totalorder %s2831_s29, %s2824_s28 }
  0xcc   : > { %p2827_p2 = pnand %p2825_p0, %p3082_p8 }
  0xcd   : > { %p2834_p4 = por %p2833_p9, %p2832_p7 }
  0xce   : > { %p2828_p5 = pneg %p2827_p2 }
  0xd0   : > { %p2835_p10 = pnand %p2834_p4, %p2828_p5 }
  0xd2   : > { %2838 = shalt.err (!%p2835_p10)
}
  0xd3   : > { %2493 = dma.hbm_to_vmem [thread:$0]  (!%p3066_p6), %s3700_s8, 48, %s358_s23, [#allocation17], %s2958_s9, %s2958_s9, %s2959_s22  }
  0xd4   : > { %s2155_s19 = sadd.s32 4294967294, %s2951_s12   ;;  %s3261_s27 = sadd.s32 1, %s2951_s12  }
  0xd5   : > { %s33_s5 = ssub.s32 %s2951_s12, %s3261_s27  ;;  %s36_s25 = sadd.s32 1, %s2947_s11 }
  0xd6   : > { %p34_p8 = scmp.eq.s32.totalorder %s33_s5, 0  ;;  %p43_p1 = scmp.ne.s32.totalorder %s2947_s11, %s2943_s10 }
  0xd7   : > { %p44_p3 = scmp.eq.s32.totalorder %s2951_s12, 0  ;;  %p49_p11 = scmp.ne.s32.totalorder %s2943_s10, %s2939_s30 }
  0xd8   : > { %s3272_s13 = scalar_select %p34_p8, %s2947_s11, %s36_s25  }
  0xd9   : > { %p3274_p12 = por %p44_p3, %p43_p1  ;;  %p3723_p13 = scmp.eq.s32.totalorder %s3050_s15, 0 }
  0xda   : > { %p241_p0 = scmp.eq.s32.totalorder %s3050_s15, 1  ;;  %p247_p2 = scmp.eq.s32.totalorder %s2155_s19, 1 }
  0xdb   : > { %p3280_p6 = por %p3723_p13, %p49_p11  ;;  %p2510_p5 = scmp.lt.s32.totalorder %s2951_s12, 2 }
  0xdc   : > { %s371_s22 = sand.u32 1, %s2947_s11   ;;  %p3287_p7 = por %p241_p0, %p43_p1 }
  0xdd   : > { %p3291_p9 = por %p247_p2, %p49_p11  ;;  %s2166_s21 = sshll.u32 %s371_s22, 4 }
  0xde   : > { %s3725_s23 = scalar_select %p3287_p7, 1, 0 }
  0xdf   : > { %s3726_s18 = scalar_select %p3291_p9, 1, 0 }
  0xe0   : > { %s2221_s26 = sshll.u32 %s2951_s12, 8  ;;  %s375_s24 = scalar_lea.vmem [#allocation4], %s2166_s21 }
  0xe1   : > { %s3299_s29 = scalar_lea.hbm %s3692_s0, %s2221_s26  ;;  %s382_s3 = sshll.u32 %s375_s24, 4  ;;  %s3301_s3 = int_to_ptr.vmem [resolvable:$true] %s382_s3 }
  0xe2   : > { %p3305_p4 = pnand %p2510_p5, %p3274_p12  ;;  %s3309_s5 = scalar_lea.sflag [#allocation5], %s371_s22 }
  0xe3   : > { %s2839_s25 = scalar_lea.hbm %s3299_s29, 256  ;;  %s2844_s14 = scalar_lea.hbm %s3692_s0, 512 }
  0xe4   : > { %p2840_p10 = scmp.ne.s32.totalorder %s3299_s29, %s2839_s25  ;;  %p2841_p8 = pneg %p3305_p4 }
  0xe5   : > { %p2845_p11 = scmp.lt.u32.totalorder %s3299_s29, %s3692_s0  ;;  %p2846_p12 = scmp.lt.u32.totalorder %s2844_s14, %s2839_s25 }
  0xe6   : > { %p2842_p1 = pnand %p2841_p8, %p2840_p10  ;;  %p2848_p0 = scmp.lt.u32.totalorder %s2839_s25, %s3299_s29 }
  0xe7   : > { %p2847_p13 = por %p2846_p12, %p2845_p11 }
  0xe8   : > { %p2843_p3 = pneg %p2842_p1 }
  0xe9   : > { %p2849_p2 = por %p2848_p0, %p2847_p13 }
  0xeb   : > { %p2850_p5 = pnand %p2849_p2, %p2843_p3 }
  0xed   : > { %2853 = shalt.err (!%p2850_p5)
}
  0xee   : > { %s2854_s22 = scalar_lea.vmem %s3301_s3, 256  ;;  %s2965_s24 = smov [#allocation4]  }
  0xef   : > { %p2855_p10 = scmp.ne.s32.totalorder %s3301_s3, %s2854_s22  ;;  %s2859_s21 = sshll.u32 %s2965_s24, 4  ;;  %s2860_s21 = int_to_ptr.vmem [resolvable:$false] %s2859_s21 }
  0xf0   : > { %s2861_s26 = scalar_lea.vmem %s2860_s21, 512  ;;  %p2862_p7 = scmp.lt.s32.totalorder %s3301_s3, %s2860_s21 }
  0xf1   : > { %p2857_p1 = pnand %p2855_p10, %p2841_p8  ;;  %p2863_p11 = scmp.lt.s32.totalorder %s2861_s26, %s2854_s22 }
  0xf3   : > { %p2858_p9 = pneg %p2857_p1  ;;  %p2864_p12 = por %p2863_p11, %p2862_p7 }
  0xf5   : > { %p2865_p13 = pnand %p2864_p12, %p2858_p9 }
  0xf7   : > { %2868 = shalt.err (!%p2865_p13)
}
  0xf8   : > { %2497 = dma.hbm_to_vmem [thread:$0]  (!%p3305_p4), %s3299_s29, 256, %s3301_s3, %s3309_s5, %s3721_s20, %s3721_s20, %s3720_s17  }
  0xf9   : > { %p3728_p8 = scmp.ne.s32.totalorder %s3714_s16, 0 }
  0xfa   : > { %s3343_s25 = sand.u32 (!%p3728_p8), 1, %s2943_s10  }
  0xfb   : > { %394 = sbr.rel (%p3728_p8) target bundleno = 2706 (0xa92), region = 56  ;;  %s2170_s14 = sshll.u32 (!%p3728_p8), %s3343_s25, 4 }
  0xfc   : > { %s397_s1 = scalar_lea.sflag (!%p3728_p8), [#allocation5], %s3343_s25  ;;  %s400_s19 = scalar_lea.vmem (!%p3728_p8), [#allocation4], %s2170_s14 }
 0x102   : > { %2914 = dma.done.wait (%p3280_p6), %s397_s1, 256  }
 0x103   : > { %2916 = vsyncadd (%p3280_p6), %s397_s1, 4294967040  ;;  %p3729_p7 = scmp.eq.s32.totalorder %s3050_s15, 0 }
 0x105   : > { %2918 = dma.done.wait (%p3729_p7), [#allocation8], 1584   ;;  %p3730_p9 = pmov %p3729_p7 }
 0x106   : > { %p3731_p4 = pmov %p3729_p7 }
 0x107   : > { %2920 = vsyncadd (%p3730_p9), [#allocation8], 4294965712 }
 0x108   : > { %2922 = dma.done.wait (%p3731_p4), [#allocation11], 1200   ;;  %p3732_p3 = pmov %p3731_p4 }
 0x10a   : > { %2924 = vsyncadd (%p3732_p3), [#allocation11], 4294966096  ;;  %p3733_p0 = pmov %p3732_p3 }
 0x10c   : > { %2926 = dma.done.wait (%p3733_p0), [#allocation14], 432   ;;  %p3734_p2 = pmov %p3733_p0 }
 0x10d   : > { %p3735_p6 = pmov %p3733_p0 }
 0x10e   : > { %2928 = vsyncadd (%p3734_p2), [#allocation14], 4294966864 }
 0x10f   : > { %2930 = dma.done.wait (%p3735_p6), [#allocation17], 3120   ;;  %p3736_p5 = pmov %p3733_p0 }
 0x110   : > { %vm485_vm0 = vcmask 261120   ;;  %v474_v0 = vld [vmem:[#allocation7] sm:$0xff]  ;;  %v475_v1 = vld [vmem:[#allocation7 + $0x8] sm:$0xff]  ;;  %v476_v2 = vld [vmem:[#allocation7 + $0x10] sm:$0xff]  ;;  %vm469_vm1 = vcmask 523264   ;;  %v2966_v8 = vmov 0.0   ;;  %v588_v9 = vlaneseq }
 0x111   : > { %2932 = vsyncadd (%p3736_p5), [#allocation17], 4294964176  ;;  %v2361_v3 = vpack.c.bf16 %v475_v1, %v474_v0  ;;  %v477_v4 = vld [vmem:[#allocation7 + $0x18] sm:$0xff]  ;;  %v3369_v5 = vld [vmem:[%s400_s19] sm:$0xff]  ;;  %470 = vst.msk [vmem:[#allocation2] sm:$0xff] %vm469_vm1, %v2966_v8  ;;  %vm472_vm2 = vcmask 548864  }
 0x112   : > { %v2365_v6 = vpack.c.bf16 %v477_v4, %v476_v2  ;;  %2279 = vmatprep.mubr.msk.f32.mxu0 %vm485_vm0, %v3369_v5  ;;  %v3373_v7 = vld [vmem:[%s400_s19 + $0x8] sm:$0xff]  ;;  %471 = vst.msk [vmem:[#allocation2 + $0x8] sm:$0xff] %vm469_vm1, %v2966_v8  ;;  %v2967_v10 = vmov 1966171168   ;;  %v589_v12 = vshrl.u32 %v588_v9, 7  ;;  %s2968_s16 = smov 2  }
 0x113   : > { %2362 = vmatprep.subr.bf16.mxu0 %v2361_v3  ;;  %v788_v11 = vunpack.c.l.s4 %v2967_v10  ;;  %v3379_v14 = vld [vmem:[#allocation15] sm:$0x1f]  ;;  %473 = vst.msk [vmem:[#allocation3] sm:$0x1] %vm472_vm2, %v2966_v8  ;;  %s2969_s17 = smov 3   ;;  %v583_v24 = vld [vmem:[#allocation10] sm:$0xff] }
 0x114   : > { %2364 = vmatpush3.bf16.msra.mxu0 %v2361_v3  ;;  %v3393_v22 = vsub.s32 0, %v589_v12  ;;  %v2180_v23 = vld [vmem:[#allocation9] ss:$0 sm:$0xff]  ;;  %v3395_v25 = vsub.s32 1, %v589_v12  ;;  %v3401_v33 = vsub.s32 2, %v589_v12  ;;  %v3408_v40 = vsub.s32 3, %v589_v12 }
 0x115   : > { %2366 = vmatprep.subr.bf16.mxu0 %v2365_v6  ;;  %v789_v13 = vunpack.c.0.s8 %v788_v11  ;;  %v3416_v46 = vsub.s32 4, %v589_v12  ;;  %v3420_v51 = vsub.s32 5, %v589_v12  ;;  %v3426_v59 = vsub.s32 6, %v589_v12  ;;  %v584_v8 = vld [vmem:[#allocation10 + $0x8] sm:$0xff]  ;;  %s2970_s20 = smov 1   ;;  %s2971_s9 = smov 4  }
 0x116   : > { %v591_v29 = vrot.slane %v583_v24, %v3393_v22  ;;  %v601_v32 = vrot.slane %v583_v24, %v3395_v25  ;;  %v611_v39 = vrot.slane %v583_v24, %v3401_v33  ;;  %v621_v44 = vrot.slane %v583_v24, %v3408_v40  ;;  %s2972_s29 = smov 126   ;;  %s2973_s3 = smov 127  }
 0x117   : > { %v3381_v15 = vsub.s32 %v789_v13, %v589_v12  ;;  %v631_v50 = vrot.slane %v583_v24, %v3416_v46  ;;  %v641_v58 = vrot.slane %v583_v24, %v3420_v51  ;;  %v651_v63 = vrot.slane %v583_v24, %v3426_v59  ;;  %s2974_s5 = smov 125   ;;  %s2975_s28 = smov 124  }
 0x118   : > { %2368 = vmatpush3.bf16.msra.mxu0 %v2365_v6  ;;  %v3398_v31 = vld [vmem:[#allocation2] sm:$0xff]  ;;  %v3432_v0 = vsub.s32 7, %v589_v12  ;;  %vm780_vm3 = vcmask 532496   ;;  %s2222_s22 = sshll.u32 %s3050_s15, 8  ;;  %s466_s24 = scalar_lea.vmem [#allocation19], %s2170_s14 }
 0x119   : > { %v793_v16 = vrot.slane %v3379_v14, %v3381_v15  ;;  %v3403_v35 = vld [vmem:[#allocation2 + $0x1] sm:$0xff]  ;;  %v592_v37 = vmul.f32 %v591_v29, %v3398_v31  ;;  %s2006_s21 = sshll.u32 %s466_s24, 4  ;;  %s3737_s19 = sld [smem:[#allocation29_spill]]  ;;  %s3646_s21 = int_to_ptr.vmem [resolvable:$true] %s2006_s21 }
 0x11a   : > { %v602_v38 = vmul.f32 %v601_v32, %v3403_v35  ;;  %v3410_v41 = vld [vmem:[#allocation2 + $0x2] sm:$0xff]  ;;  %v661_v4 = vrot.slane %v583_v24, %v3432_v0  ;;  %s1993_s15 = scalar_lea.sflag [#allocation6], %s3343_s25  ;;  %s2869_s14 = scalar_lea.vmem %s3646_s21, 256 }
 0x11b   : > { %2280 = vmatmul.mubr.msk.f32.vlgmr.msra.gmra.mrb[0].mxu0 %vm485_vm0, %v3373_v7  ;;  %v801_v17 = vrot.slane %v793_v16, %v3381_v15  ;;  %v794_v18 = vcombine.high %v793_v16, %v793_v16  ;;  %v612_v43 = vmul.f32 %v611_v39, %v3410_v41  ;;  %v3414_v45 = vld [vmem:[#allocation2 + $0x3] sm:$0xff]  ;;  %p2870_p10 = scmp.ne.s32.totalorder %s3646_s21, %s2869_s14  ;;  %p3738_p1 = scmp.ne.s32.totalorder %s3725_s23, 0 }
 0x11c   : > { %v604_v42 = vadd.f32 %v602_v38, %v592_v37  ;;  %v622_v48 = vmul.f32 %v621_v44, %v3414_v45  ;;  %v3422_v54 = vld [vmem:[#allocation2 + $0x4] sm:$0xff]  ;;  %v697_v38 = vrot.slane %v584_v8, %v3408_v40 }
 0x11d   : > { %v818_v19 = vcombine.high %v801_v17, %v801_v17  ;;  %v3387_v20 = vrot.slane %v794_v18, %v3381_v15  ;;  %v632_v57 = vmul.f32 %v631_v50, %v3422_v54  ;;  %v3428_v60 = vld [vmem:[#allocation2 + $0x5] sm:$0xff]  ;;  %v670_v17 = vrot.slane %v584_v8, %v3393_v22  ;;  %p2871_p11 = pnand %p2870_p10, %p3738_p1 }
 0x11e   : > { %v614_v47 = vadd.f32 %v612_v43, %v604_v42  ;;  %v642_v62 = vmul.f32 %v641_v58, %v3428_v60  ;;  %v3434_v1 = vld [vmem:[#allocation2 + $0x6] sm:$0xff] }
 0x11f   : > { %819 = vrot.lane.b32.xlu1 %v818_v19, %s2968_s16  ;;  %v828_v21 = vcombine.high %v3387_v20, %v3387_v20  ;;  %v652_v3 = vmul.f32 %v651_v63, %v3434_v1  ;;  %v3438_v9 = vld [vmem:[#allocation2 + $0x7] sm:$0xff]  ;;  %p2872_p12 = pneg %p2871_p11 }
 0x120   : > { %v624_v56 = vadd.f32 %v622_v48, %v614_v47  ;;  %v662_v12 = vmul.f32 %v661_v4, %v3438_v9  ;;  %v3444_v18 = vld [vmem:[#allocation2 + $0x8] sm:$0xff] }
 0x121   : > { %v593_v24 = vmul.f32 %v591_v29, %v3444_v18 }
 0x122   : > { %v634_v61 = vadd.f32 %v632_v57, %v624_v56 }
 0x123   : > { %829 = vrot.lane.b32.xlu1 %v828_v21, %s2969_s17  ;;  %v671_v21 = vmul.f32 %v670_v17, %v3444_v18 }
 0x124   : > { %v644_v2 = vadd.f32 %v642_v62, %v634_v61 }
 0x126   : > { %v654_v16 = vadd.f32 %v652_v3, %v644_v2 }
 0x128   : > { %v664_v19 = vadd.f32 %v662_v12, %v654_v16 }
 0x1ee   : > { %v2281_v26 = vpop.f32.mrb[0].mxu0 }
 0x1ef   : > { %v564_v27 = vadd.f32 %v2281_v26, %v2180_v23  ;;  %v558_v28 = vpop.f32.mrb[1].mxu0 }
 0x1f0   : > { %v559_v30 = vadd.f32 %v2180_v23, %v558_v28  ;;  %v679_v23 = vrot.slane %v584_v8, %v3395_v25  ;;  %v673_v28 = vadd.f32 %v671_v21, %v664_v19 }
 0x1f1   : > { %v2184_v34 = vmul.f32 -1.442695, %v564_v27 }
 0x1f2   : > { %v2183_v36 = vmul.f32 -1.442695, %v559_v30 }
 0x1f3   : > { %2579 = vpow2.f32 %v2184_v34 }
 0x1f4   : > { %2581 = vpow2.f32 %v2183_v36 }
 0x1fd   : > { %v2580_v49 = vpop.eup %2579 }
 0x1fe   : > { %v2582_v52 = vpop.eup %2581  ;;  %v574_v53 = vadd.f32 1.0, %v2580_v49 }
 0x1ff   : > { %v573_v55 = vadd.f32 1.0, %v2582_v52 }
 0x200   : > { %2583 = vrcp.f32 %v574_v53 }
 0x201   : > { %2585 = vrcp.f32 %v573_v55  ;;  %v706_v55 = vrot.slane %v584_v8, %v3416_v46 }
 0x20a   : > { %v2584_v6 = vpop.eup %2583 }
 0x20b   : > { %v2586_v10 = vpop.eup %2585  ;;  %v580_v11 = vmul.f32 %v2584_v6, %v564_v27 }
 0x20c   : > { %v579_v13 = vmul.f32 %v2586_v10, %v559_v30  ;;  %v688_v30 = vrot.slane %v584_v8, %v3401_v33 }
 0x20d   : > { %582 = vst.msk [vmem:[#allocation2 + $0x18] sm:$0xff] %vm469_vm1, %v580_v11  ;;  %v715_v11 = vrot.slane %v584_v8, %v3420_v51 }
 0x20e   : > { %581 = vst.msk [vmem:[#allocation2 + $0x10] sm:$0xff] %vm469_vm1, %v579_v13 }
 0x215   : > { %v597_v26 = vld [vmem:[#allocation2 + $0x9] sm:$0xff] }
 0x216   : > { %v607_v27 = vld [vmem:[#allocation2 + $0xa] sm:$0xff]  ;;  %v603_v34 = vmul.f32 %v601_v32, %v597_v26  ;;  %v680_v36 = vmul.f32 %v679_v23, %v597_v26  ;;  %v724_v26 = vrot.slane %v584_v8, %v3426_v59 }
 0x217   : > { %v617_v37 = vld [vmem:[#allocation2 + $0xb] sm:$0xff]  ;;  %v613_v43 = vmul.f32 %v611_v39, %v607_v27  ;;  %v689_v49 = vmul.f32 %v688_v30, %v607_v27 }
 0x218   : > { %v605_v42 = vadd.f32 %v603_v34, %v593_v24  ;;  %v627_v47 = vld [vmem:[#allocation2 + $0xc] sm:$0xff]  ;;  %v682_v48 = vadd.f32 %v680_v36, %v673_v28  ;;  %v623_v53 = vmul.f32 %v621_v44, %v617_v37  ;;  %v698_v57 = vmul.f32 %v697_v38, %v617_v37 }
 0x219   : > { %v637_v29 = vld [vmem:[#allocation2 + $0xd] sm:$0xff]  ;;  %v633_v62 = vmul.f32 %v631_v50, %v627_v47  ;;  %v707_v10 = vmul.f32 %v706_v55, %v627_v47 }
 0x21a   : > { %v615_v52 = vadd.f32 %v613_v43, %v605_v42  ;;  %v691_v56 = vadd.f32 %v689_v49, %v682_v48  ;;  %v647_v2 = vld [vmem:[#allocation2 + $0xe] sm:$0xff]  ;;  %v643_v6 = vmul.f32 %v641_v58, %v637_v29  ;;  %v716_v24 = vmul.f32 %v715_v11, %v637_v29 }
 0x21b   : > { %v657_v39 = vld [vmem:[#allocation2 + $0xf] sm:$0xff]  ;;  %v653_v16 = vmul.f32 %v651_v63, %v647_v2  ;;  %v725_v42 = vmul.f32 %v724_v26, %v647_v2  ;;  %v733_v43 = vrot.slane %v584_v8, %v3432_v0  ;;  %v729_v2 = vld [vmem:[#allocation2 + $0x17] sm:$0xff] }
 0x21c   : > { %v625_v61 = vadd.f32 %v623_v53, %v615_v52  ;;  %v700_v32 = vadd.f32 %v698_v57, %v691_v56  ;;  %v666_v19 = vld [vmem:[#allocation2 + $0x10] sm:$0xff]  ;;  %v663_v21 = vmul.f32 %v661_v4, %v657_v39 }
 0x21d   : > { %v675_v27 = vld [vmem:[#allocation2 + $0x11] sm:$0xff]  ;;  %v672_v50 = vmul.f32 %v670_v17, %v666_v19  ;;  %v734_v29 = vmul.f32 %v733_v43, %v657_v39 }
 0x21e   : > { %v635_v3 = vadd.f32 %v633_v62, %v625_v61  ;;  %v709_v12 = vadd.f32 %v707_v10, %v700_v32  ;;  %v684_v36 = vld [vmem:[#allocation2 + $0x12] sm:$0xff]  ;;  %v681_v58 = vmul.f32 %v679_v23, %v675_v27 }
 0x21f   : > { %v693_v47 = vld [vmem:[#allocation2 + $0x13] sm:$0xff]  ;;  %v690_v63 = vmul.f32 %v688_v30, %v684_v36  ;;  %v2186_v30 = vld [vmem:[#allocation12] ss:$0 sm:$0xff] }
 0x220   : > { %v645_v13 = vadd.f32 %v643_v6, %v635_v3  ;;  %v718_v34 = vadd.f32 %v716_v24, %v709_v12  ;;  %v702_v52 = vld [vmem:[#allocation2 + $0x14] sm:$0xff]  ;;  %v699_v4 = vmul.f32 %v697_v38, %v693_v47  ;;  %v2187_v24 = vld [vmem:[#allocation13] ss:$0 sm:$0xff]  ;;  %v838_v47 = vcombine.high %v3379_v14, %v3379_v14 }
 0x221   : > { %v2185_v56 = vld [vmem:[#allocation10 + $0x10] ss:$0 sm:$0xff]  ;;  %v708_v62 = vmul.f32 %v706_v55, %v702_v52  ;;  %v720_v32 = vld [vmem:[#allocation2 + $0x16] sm:$0xff] }
 0x222   : > { %v655_v44 = vadd.f32 %v653_v16, %v645_v13  ;;  %v727_v49 = vadd.f32 %v725_v42, %v718_v34  ;;  %v711_v57 = vld [vmem:[#allocation2 + $0x15] sm:$0xff]  ;;  %v743_v23 = vmul.f32 %v2185_v56, %v666_v19  ;;  %v726_v8 = vmul.f32 %v724_v26, %v720_v32  ;;  %v876_v32 = vld [vmem:[#allocation16] sm:$0xff] }
 0x223   : > { %v717_v6 = vmul.f32 %v715_v11, %v711_v57  ;;  %v738_v16 = vld [vmem:[#allocation2 + $0x18] sm:$0xff] }
 0x224   : > { %v665_v28 = vadd.f32 %v663_v21, %v655_v44  ;;  %v736_v17 = vadd.f32 %v734_v29, %v727_v49  ;;  %v735_v44 = vmul.f32 %v733_v43, %v729_v2  ;;  %v744_v38 = vmul.f32 %v2185_v56, %v738_v16  ;;  %v879_v2 = vld [vmem:[#allocation16 + $0x18] sm:$0xff] }
 0x226   : > { %v674_v37 = vadd.f32 %v672_v50, %v665_v28  ;;  %v745_v13 = vadd.f32 %v743_v23, %v736_v17 }
 0x228   : > { %v683_v48 = vadd.f32 %v681_v58, %v674_v37  ;;  %v754_v39 = vmul.f32 %v2186_v30, %v745_v13  ;;  %v881_v13 = vld [vmem:[#allocation16 + $0x28] sm:$0xff] }
 0x22a   : > { %v692_v53 = vadd.f32 %v690_v63, %v683_v48  ;;  %v3455_v55 = vadd.f32 %v2187_v24, %v754_v39  ;;  %v845_v63 = vrot.slane %v838_v47, %v3381_v15 }
 0x22c   : > { %v701_v61 = vadd.f32 %v699_v4, %v692_v53  ;;  %v765_v11 = vsel %vm469_vm1, %v3455_v55, 0.0  ;;  %v852_v49 = vrot.slane %v845_v63, %v3381_v15  ;;  %v820_v53 = vpop.permute.xlu1 %819 }
 0x22e   : > { %v710_v3 = vadd.f32 %v708_v62, %v701_v61 }
 0x230   : > { %v719_v10 = vadd.f32 %v717_v6, %v710_v3  ;;  %v830_v61 = vpop.permute.xlu1 %829  ;;  %v877_v3 = vld [vmem:[#allocation16 + $0x8] sm:$0xff]  ;;  %v878_v6 = vld [vmem:[#allocation16 + $0x10] sm:$0xff] }
 0x231   : > { %v2369_v23 = vpack.c.bf16 %v877_v3, %v876_v32  ;;  %v2192_v32 = vld [vmem:[#allocation9 + $0x1] ss:$0 sm:$0xff] }
 0x232   : > { %v728_v12 = vadd.f32 %v726_v8, %v719_v10  ;;  %v2373_v10 = vpack.c.bf16 %v879_v2, %v878_v6  ;;  %v880_v8 = vld [vmem:[#allocation16 + $0x20] sm:$0xff]  ;;  %v1087_v6 = vld [vmem:[#allocation10 + $0x18] sm:$0xff] }
 0x233   : > { %2370 = vmatprep.subr.bf16.mxu1 %v2369_v23  ;;  %v2377_v16 = vpack.c.bf16 %v881_v13, %v880_v8  ;;  %v1095_v13 = vrot.slane %v1087_v6, %v3393_v22 }
 0x234   : > { %v737_v21 = vadd.f32 %v735_v44, %v728_v12  ;;  %2372 = vmatpush3.bf16.msra.mxu1 %v2369_v23  ;;  %v883_v12 = vld [vmem:[#allocation16 + $0x38] sm:$0xff] }
 0x235   : > { %2374 = vmatprep.subr.bf16.mxu1 %v2373_v10 }
 0x236   : > { %v746_v27 = vadd.f32 %v744_v38, %v737_v21  ;;  %v977_v21 = vld [vmem:[#allocation7 + $0x20] sm:$0xff]  ;;  %v978_v38 = vld [vmem:[#allocation7 + $0x28] sm:$0xff] }
 0x237   : > { %v2385_v39 = vpack.c.bf16 %v978_v38, %v977_v21  ;;  %v1115_v21 = vrot.slane %v1087_v6, %v3401_v33 }
 0x238   : > { %v755_v28 = vmul.f32 %v2186_v30, %v746_v27  ;;  %v882_v30 = vld [vmem:[#allocation16 + $0x30] sm:$0xff]  ;;  %2376 = vmatpush3.bf16.msra.mxu1 %v2373_v10 }
 0x239   : > { %2378 = vmatprep.subr.bf16.mxu1 %v2377_v16  ;;  %v2381_v44 = vpack.c.bf16 %v883_v12, %v882_v30  ;;  %2386 = vmatprep.subr.bf16.mxu0 %v2385_v39  ;;  %v1096_v12 = vmul.f32 %v1095_v13, %v3398_v31 }
 0x23a   : > { %v3457_v50 = vadd.f32 %v2187_v24, %v755_v28  ;;  %2388 = vmatpush3.bf16.msra.mxu0 %v2385_v39  ;;  %v1116_v39 = vmul.f32 %v1115_v21, %v3410_v41 }
 0x23c   : > { %v766_v19 = vsel %vm469_vm1, %v3457_v50, 0.0  ;;  %2380 = vmatpush3.bf16.msra.mxu1 %v2377_v16  ;;  %v1105_v16 = vrot.slane %v1087_v6, %v3395_v25 }
 0x23d   : > { %v767_v26 = vadd.f32 %v766_v19, %v765_v11  ;;  %2382 = vmatprep.subr.bf16.mxu1 %v2381_v44 }
 0x23f   : > { %v768_v34 = vrot.slane %v767_v26, 4 }
 0x240   : > { %2384 = vmatpush3.bf16.msra.mxu1 %v2381_v44  ;;  %v1106_v44 = vmul.f32 %v1105_v16, %v3403_v35 }
 0x241   : > { %v769_v36 = vadd.f32 %v768_v34, %v767_v26 }
 0x242   : > { %v1108_v38 = vadd.f32 %v1106_v44, %v1096_v12 }
 0x243   : > { %v770_v37 = vrot.slane %v769_v36, 2 }
 0x245   : > { %v771_v58 = vadd.f32 %v770_v37, %v769_v36 }
 0x247   : > { %v772_v42 = vrot.slane %v771_v58, 1 }
 0x249   : > { %v773_v43 = vadd.f32 %v772_v42, %v771_v58 }
 0x24b   : > { %v775_v48 = vmul.f32 0.0625, %v773_v43 }
 0x24d   : > { %777 = vrot.lane.b32.xlu0 %v775_v48, %s2968_s16 }
 0x251   : > { %809 = vrot.lane.b32.xlu0 %v3387_v20, %s2970_s20 }
 0x255   : > { %853 = vrot.lane.b32.xlu0 %v852_v49, %s2971_s9  ;;  %v979_v49 = vld [vmem:[#allocation7 + $0x30] sm:$0xff] }
 0x2bf   : > { %v778_v52 = vpop.permute.xlu0 %777 }
 0x2c0   : > { %781 = vst.msk [vmem:[#allocation3] sm:$0x1] %vm780_vm3, %v778_v52  ;;  %v980_v52 = vld [vmem:[#allocation7 + $0x38] sm:$0xff] }
 0x2c3   : > { %v810_v4 = vpop.permute.xlu0 %809 }
 0x2c7   : > { %v783_v29 = vld [vmem:[#allocation3] sm:$0x1]  ;;  %v854_v62 = vpop.permute.xlu0 %853 }
 0x2c8   : > { %v822_v56 = vmul.f32 %v820_v53, %v783_v29  ;;  %v812_v57 = vmul.f32 %v810_v4, %v783_v29  ;;  %v832_v20 = vmul.f32 %v830_v61, %v783_v29  ;;  %v856_v17 = vmul.f32 %v854_v62, %v783_v29 }
 0x2c9   : > { %v784_v24 = vmul.f32 %v783_v29, %v3379_v14  ;;  %v2389_v53 = vpack.c.bf16 %v980_v52, %v979_v49  ;;  %v1165_v49 = vrot.slane %v1087_v6, %v3432_v0 }
 0x2ca   : > { %824 = vrot.lane.b32.xlu0 %v822_v56, %s2972_s29  ;;  %814 = vrot.lane.b32.xlu1 %v812_v57, %s2973_s3  ;;  %v2191_v56 = vld [vmem:[#allocation18] ss:$0 sm:$0xff] }
 0x2cb   : > { %2390 = vmatprep.subr.bf16.mxu0 %v2389_v53 }
 0x2cc   : > { %2392 = vmatpush3.bf16.msra.mxu0 %v2389_v53  ;;  %v1088_v53 = vld [vmem:[#allocation10 + $0x20] sm:$0xff] }
 0x2cd   : > { %v1201_v44 = vrot.slane %v1088_v53, %v3408_v40 }
 0x2ce   : > { %834 = vrot.lane.b32.xlu1 %v832_v20, %s2974_s5  ;;  %858 = vrot.lane.b32.xlu0 %v856_v17, %s2975_s28 }
 0x33c   : > { %v815_v27 = vpop.permute.xlu1 %814  ;;  %v825_v28 = vpop.permute.xlu0 %824 }
 0x33d   : > { %v817_v11 = vadd.f32 %v815_v27, %v784_v24  ;;  %v1125_v24 = vrot.slane %v1087_v6, %v3408_v40 }
 0x33f   : > { %v827_v19 = vadd.f32 %v825_v28, %v817_v11  ;;  %v1118_v28 = vadd.f32 %v1116_v39, %v1108_v38  ;;  %v1126_v11 = vmul.f32 %v1125_v24, %v3414_v45 }
 0x340   : > { %v835_v26 = vpop.permute.xlu1 %834  ;;  %v859_v36 = vpop.permute.xlu0 %858 }
 0x341   : > { %v837_v34 = vadd.f32 %v835_v26, %v827_v19  ;;  %v1135_v19 = vrot.slane %v1087_v6, %v3416_v46 }
 0x343   : > { %v861_v37 = vadd.f32 %v859_v36, %v837_v34 }
 0x345   : > { %v2188_v58 = vmul.f32 -1.442695, %v861_v37  ;;  %v1128_v37 = vadd.f32 %v1126_v11, %v1118_v28 }
 0x347   : > { %2587 = vpow2.f32 %v2188_v58  ;;  %v1136_v58 = vmul.f32 %v1135_v19, %v3422_v54 }
 0x351   : > { %v2588_v42 = vpop.eup %2587 }
 0x352   : > { %v865_v43 = vadd.f32 1.0, %v2588_v42  ;;  %v1145_v42 = vrot.slane %v1087_v6, %v3420_v51 }
 0x354   : > { %2589 = vrcp.f32 %v865_v43  ;;  %v1138_v43 = vadd.f32 %v1136_v58, %v1128_v37 }
 0x35e   : > { %v2590_v47 = vpop.eup %2589 }
 0x35f   : > { %v872_v48 = vrot.slane %v2590_v47, %v3393_v22  ;;  %v1146_v47 = vmul.f32 %v1145_v42, %v3428_v60 }
 0x361   : > { %v874_v63 = vmul.f32 %v872_v48, %v3455_v55  ;;  %v875_v14 = vmul.f32 %v872_v48, %v3457_v50  ;;  %v3492_v50 = vld [vmem:[#allocation15 + $0x8] sm:$0x1f]  ;;  %v1155_v48 = vrot.slane %v1087_v6, %v3426_v59 }
 0x362   : > { %v3496_v20 = vrot.slane %v3492_v50, %v3381_v15 }
 0x363   : > { %2298 = vmatprep.mubr.msk.f32.mxu1 %vm469_vm1, %v874_v63  ;;  %v1148_v63 = vadd.f32 %v1146_v47, %v1138_v43 }
 0x364   : > { %2299 = vmatmul.mubr.msk.f32.vlgmr.msra.gmra.mrb[0].mxu1 %vm469_vm1, %v875_v14  ;;  %v1156_v14 = vmul.f32 %v1155_v48, %v3434_v1 }
 0x437   : > { %v2300_v4 = vpop.f32.mrb[0].mxu1 }
 0x438   : > { %v966_v29 = vadd.f32 %v2300_v4, %v3373_v7  ;;  %v956_v57 = vpop.f32.mrb[1].mxu1  ;;  %v1299_v7 = vcombine.high %v3496_v20, %v3496_v20 }
 0x439   : > { %v965_v61 = vadd.f32 %v956_v57, %v3369_v5  ;;  %v1158_v57 = vadd.f32 %v1156_v14, %v1148_v63 }
 0x43a   : > { %v3486_v55 = vadd.f32 %v2191_v56, %v966_v29  ;;  %v1313_v5 = vrot.slane %v1299_v7, %v3381_v15  ;;  %v1174_v7 = vrot.slane %v1088_v53, %v3393_v22 }
 0x43b   : > { %v3484_v62 = vadd.f32 %v2191_v56, %v965_v61  ;;  %v1166_v61 = vmul.f32 %v1165_v49, %v3438_v9 }
 0x43c   : > { %1314 = vrot.lane.b32.xlu0 %v1313_v5, %s2970_s20  ;;  %v1333_v17 = vcombine.high %v1313_v5, %v1313_v5 }
 0x43d   : > { %2309 = vmatprep.mubr.msk.f32.mxu0 %vm485_vm0, %v3484_v62  ;;  %v1168_v5 = vadd.f32 %v1166_v61, %v1158_v57 }
 0x43e   : > { %2310 = vmatmul.mubr.msk.f32.vlgmr.msra.gmra.mrb[2].mxu0 %vm485_vm0, %v3486_v55 }
 0x440   : > { %1334 = vrot.lane.b32.xlu0 %v1333_v17, %s2969_s17  ;;  %v1175_v17 = vmul.f32 %v1174_v7, %v3444_v18 }
 0x511   : > { %v2311_v3 = vpop.f32.mrb[2].mxu0 }
 0x512   : > { %v1067_v23 = vadd.f32 %v2311_v3, %v2192_v32  ;;  %v1061_v2 = vpop.f32.mrb[3].mxu0  ;;  %v1097_v3 = vmul.f32 %v1095_v13, %v3444_v18 }
 0x513   : > { %v1062_v10 = vadd.f32 %v2192_v32, %v1061_v2  ;;  %v1183_v32 = vrot.slane %v1088_v53, %v3395_v25 }
 0x514   : > { %v2196_v8 = vmul.f32 -1.442695, %v1067_v23 }
 0x515   : > { %v2195_v30 = vmul.f32 -1.442695, %v1062_v10 }
 0x516   : > { %2591 = vpow2.f32 %v2196_v8 }
 0x517   : > { %2593 = vpow2.f32 %v2195_v30 }
 0x520   : > { %v2592_v27 = vpop.eup %2591 }
 0x521   : > { %v2594_v26 = vpop.eup %2593  ;;  %v1077_v34 = vadd.f32 1.0, %v2592_v27 }
 0x522   : > { %v1076_v36 = vadd.f32 1.0, %v2594_v26 }
 0x523   : > { %2595 = vrcp.f32 %v1077_v34 }
 0x524   : > { %2597 = vrcp.f32 %v1076_v36  ;;  %v1210_v36 = vrot.slane %v1088_v53, %v3416_v46 }
 0x52d   : > { %v2596_v52 = vpop.eup %2595 }
 0x52e   : > { %v2598_v4 = vpop.eup %2597  ;;  %v1083_v29 = vmul.f32 %v2596_v52, %v1067_v23  ;;  %v1177_v23 = vadd.f32 %v1175_v17, %v1168_v5 }
 0x52f   : > { %v1082_v56 = vmul.f32 %v2598_v4, %v1062_v10  ;;  %v1192_v10 = vrot.slane %v1088_v53, %v3401_v33 }
 0x530   : > { %1085 = vst.msk [vmem:[#allocation2 + $0x18] sm:$0xff] %vm469_vm1, %v1083_v29  ;;  %v1219_v29 = vrot.slane %v1088_v53, %v3420_v51 }
 0x531   : > { %1084 = vst.msk [vmem:[#allocation2 + $0x10] sm:$0xff] %vm469_vm1, %v1082_v56 }
 0x538   : > { %v1101_v6 = vld [vmem:[#allocation2 + $0x9] sm:$0xff] }
 0x539   : > { %v1111_v2 = vld [vmem:[#allocation2 + $0xa] sm:$0xff]  ;;  %v1107_v8 = vmul.f32 %v1105_v16, %v1101_v6  ;;  %v1184_v30 = vmul.f32 %v1183_v32, %v1101_v6  ;;  %v1228_v6 = vrot.slane %v1088_v53, %v3426_v59 }
 0x53a   : > { %v1121_v12 = vld [vmem:[#allocation2 + $0xb] sm:$0xff]  ;;  %v1117_v39 = vmul.f32 %v1115_v21, %v1111_v2  ;;  %v1193_v11 = vmul.f32 %v1192_v10, %v1111_v2 }
 0x53b   : > { %v1109_v38 = vadd.f32 %v1107_v8, %v1097_v3  ;;  %v1131_v27 = vld [vmem:[#allocation2 + $0xc] sm:$0xff]  ;;  %v1186_v28 = vadd.f32 %v1184_v30, %v1177_v23  ;;  %v1127_v34 = vmul.f32 %v1125_v24, %v1121_v12  ;;  %v1202_v58 = vmul.f32 %v1201_v44, %v1121_v12 }
 0x53c   : > { %v1141_v13 = vld [vmem:[#allocation2 + $0xd] sm:$0xff]  ;;  %v1137_v47 = vmul.f32 %v1135_v19, %v1131_v27  ;;  %v1211_v4 = vmul.f32 %v1210_v36, %v1131_v27 }
 0x53d   : > { %v1119_v26 = vadd.f32 %v1117_v39, %v1109_v38  ;;  %v1195_v37 = vadd.f32 %v1193_v11, %v1186_v28  ;;  %v1151_v63 = vld [vmem:[#allocation2 + $0xe] sm:$0xff]  ;;  %v1147_v52 = vmul.f32 %v1145_v42, %v1141_v13  ;;  %v1220_v3 = vmul.f32 %v1219_v29, %v1141_v13 }
 0x53e   : > { %v1161_v21 = vld [vmem:[#allocation2 + $0xf] sm:$0xff]  ;;  %v1157_v57 = vmul.f32 %v1155_v48, %v1151_v63  ;;  %v1229_v38 = vmul.f32 %v1228_v6, %v1151_v63  ;;  %v1237_v39 = vrot.slane %v1088_v53, %v3432_v0  ;;  %v1233_v63 = vld [vmem:[#allocation2 + $0x17] sm:$0xff] }
 0x53f   : > { %v1129_v43 = vadd.f32 %v1127_v34, %v1119_v26  ;;  %v1204_v16 = vadd.f32 %v1202_v58, %v1195_v37  ;;  %v1170_v5 = vld [vmem:[#allocation2 + $0x10] sm:$0xff]  ;;  %v1167_v17 = vmul.f32 %v1165_v49, %v1161_v21  ;;  %v2197_v37 = vld [vmem:[#allocation10 + $0x28] ss:$0 sm:$0xff] }
 0x540   : > { %v1179_v2 = vld [vmem:[#allocation2 + $0x11] sm:$0xff]  ;;  %v1176_v19 = vmul.f32 %v1174_v7, %v1170_v5  ;;  %v1238_v13 = vmul.f32 %v1237_v39, %v1161_v21 }
 0x541   : > { %v1139_v14 = vadd.f32 %v1137_v47, %v1129_v43  ;;  %v1213_v61 = vadd.f32 %v1211_v4, %v1204_v16  ;;  %v1188_v30 = vld [vmem:[#allocation2 + $0x12] sm:$0xff]  ;;  %v1185_v42 = vmul.f32 %v1183_v32, %v1179_v2  ;;  %v1247_v32 = vmul.f32 %v2197_v37, %v1170_v5 }
 0x542   : > { %v1197_v27 = vld [vmem:[#allocation2 + $0x13] sm:$0xff]  ;;  %v1194_v48 = vmul.f32 %v1192_v10, %v1188_v30  ;;  %v2198_v10 = vld [vmem:[#allocation12 + $0x1] ss:$0 sm:$0xff] }
 0x543   : > { %v1149_v56 = vadd.f32 %v1147_v52, %v1139_v14  ;;  %v1222_v8 = vadd.f32 %v1220_v3, %v1213_v61  ;;  %v1206_v26 = vld [vmem:[#allocation2 + $0x14] sm:$0xff]  ;;  %v1203_v49 = vmul.f32 %v1201_v44, %v1197_v27  ;;  %v2199_v3 = vld [vmem:[#allocation13 + $0x1] ss:$0 sm:$0xff]  ;;  %v1306_v27 = vrot.slane %v3496_v20, %v3381_v15  ;;  %v1315_v20 = vpop.permute.xlu0 %1314 }
 0x544   : > { %v1215_v58 = vld [vmem:[#allocation2 + $0x15] sm:$0xff]  ;;  %v1212_v47 = vmul.f32 %v1210_v36, %v1206_v26 }
 0x545   : > { %v1159_v24 = vadd.f32 %v1157_v57, %v1149_v56  ;;  %v1231_v11 = vadd.f32 %v1229_v38, %v1222_v8  ;;  %v1224_v16 = vld [vmem:[#allocation2 + $0x16] sm:$0xff]  ;;  %v1221_v52 = vmul.f32 %v1219_v29, %v1215_v58 }
 0x546   : > { %v1230_v53 = vmul.f32 %v1228_v6, %v1224_v16  ;;  %v1242_v57 = vld [vmem:[#allocation2 + $0x18] sm:$0xff] }
 0x547   : > { %v1169_v23 = vadd.f32 %v1167_v17, %v1159_v24  ;;  %v1240_v7 = vadd.f32 %v1238_v13, %v1231_v11  ;;  %v1239_v24 = vmul.f32 %v1237_v39, %v1233_v63  ;;  %v1248_v44 = vmul.f32 %v2197_v37, %v1242_v57  ;;  %v1384_v63 = vld [vmem:[#allocation16 + $0x50] sm:$0xff]  ;;  %v1386_v57 = vld [vmem:[#allocation16 + $0x60] sm:$0xff] }
 0x548   : > { %v1323_v11 = vcombine.high %v1306_v27, %v1306_v27 }
 0x549   : > { %v1178_v12 = vadd.f32 %v1176_v19, %v1169_v23  ;;  %v1249_v56 = vadd.f32 %v1247_v32, %v1240_v7  ;;  %v1335_v7 = vpop.permute.xlu0 %1334  ;;  %v1383_v32 = vld [vmem:[#allocation16 + $0x48] sm:$0xff] }
 0x54b   : > { %v1187_v28 = vadd.f32 %v1185_v42, %v1178_v12  ;;  %v1259_v21 = vmul.f32 %v2198_v10, %v1249_v56 }
 0x54d   : > { %v1196_v34 = vadd.f32 %v1194_v48, %v1187_v28  ;;  %v3531_v36 = vadd.f32 %v2199_v3, %v1259_v21  ;;  %v1343_v28 = vcombine.high %v3492_v50, %v3492_v50  ;;  %v1484_v21 = vld [vmem:[#allocation7 + $0x40] sm:$0xff] }
 0x54f   : > { %v1205_v43 = vadd.f32 %v1203_v49, %v1196_v34  ;;  %v1271_v29 = vsel %vm469_vm1, %v3531_v36, 0.0  ;;  %v1350_v26 = vrot.slane %v1343_v28, %v3381_v15 }
 0x551   : > { %v1214_v14 = vadd.f32 %v1212_v47, %v1205_v43  ;;  %v1357_v34 = vrot.slane %v1350_v26, %v3381_v15 }
 0x553   : > { %v1223_v4 = vadd.f32 %v1221_v52, %v1214_v14  ;;  %v1382_v52 = vld [vmem:[#allocation16 + $0x40] sm:$0xff] }
 0x555   : > { %v1232_v61 = vadd.f32 %v1230_v53, %v1223_v4  ;;  %v2393_v4 = vpack.c.bf16 %v1383_v32, %v1382_v52  ;;  %v1385_v53 = vld [vmem:[#allocation16 + $0x58] sm:$0xff]  ;;  %v2204_v52 = vld [vmem:[#allocation9 + $0x2] ss:$0 sm:$0xff] }
 0x556   : > { %v2397_v56 = vpack.c.bf16 %v1385_v53, %v1384_v63  ;;  %v1594_v63 = vld [vmem:[#allocation10 + $0x30] sm:$0xff] }
 0x557   : > { %v1241_v17 = vadd.f32 %v1239_v24, %v1232_v61  ;;  %2394 = vmatprep.subr.bf16.mxu0 %v2393_v4  ;;  %v1388_v24 = vld [vmem:[#allocation16 + $0x70] sm:$0xff] }
 0x558   : > { %2396 = vmatpush3.bf16.msra.mxu0 %v2393_v4 }
 0x559   : > { %v1250_v2 = vadd.f32 %v1248_v44, %v1241_v17  ;;  %2398 = vmatprep.subr.bf16.mxu0 %v2397_v56  ;;  %v1389_v17 = vld [vmem:[#allocation16 + $0x78] sm:$0xff] }
 0x55a   : > { %v2405_v44 = vpack.c.bf16 %v1389_v17, %v1388_v24 }
 0x55b   : > { %v1260_v23 = vmul.f32 %v2198_v10, %v1250_v2  ;;  %v1387_v10 = vld [vmem:[#allocation16 + $0x68] sm:$0xff] }
 0x55c   : > { %v2401_v61 = vpack.c.bf16 %v1387_v10, %v1386_v57  ;;  %2400 = vmatpush3.bf16.msra.mxu0 %v2397_v56  ;;  %v1602_v10 = vrot.slane %v1594_v63, %v3393_v22 }
 0x55d   : > { %v3533_v19 = vadd.f32 %v2199_v3, %v1260_v23  ;;  %v1485_v3 = vld [vmem:[#allocation7 + $0x48] sm:$0xff] }
 0x55e   : > { %2402 = vmatprep.subr.bf16.mxu0 %v2401_v61  ;;  %v2409_v2 = vpack.c.bf16 %v1485_v3, %v1484_v21  ;;  %v1603_v17 = vmul.f32 %v1602_v10, %v3398_v31  ;;  %v1622_v21 = vrot.slane %v1594_v63, %v3401_v33 }
 0x55f   : > { %v1272_v5 = vsel %vm469_vm1, %v3533_v19, 0.0 }
 0x560   : > { %v1273_v6 = vadd.f32 %v1272_v5, %v1271_v29  ;;  %2404 = vmatpush3.bf16.msra.mxu0 %v2401_v61  ;;  %2410 = vmatprep.subr.bf16.mxu1 %v2409_v2  ;;  %v1612_v61 = vrot.slane %v1594_v63, %v3395_v25 }
 0x561   : > { %2406 = vmatprep.subr.bf16.mxu0 %v2405_v44  ;;  %2412 = vmatpush3.bf16.msra.mxu1 %v2409_v2  ;;  %v1623_v2 = vmul.f32 %v1622_v21, %v3410_v41 }
 0x562   : > { %v1274_v8 = vrot.slane %v1273_v6, 4 }
 0x564   : > { %v1275_v30 = vadd.f32 %v1274_v8, %v1273_v6  ;;  %2408 = vmatpush3.bf16.msra.mxu0 %v2405_v44  ;;  %v1613_v44 = vmul.f32 %v1612_v61, %v3403_v35 }
 0x566   : > { %v1276_v12 = vrot.slane %v1275_v30, 2  ;;  %v1615_v3 = vadd.f32 %v1613_v44, %v1603_v17 }
 0x568   : > { %v1277_v42 = vadd.f32 %v1276_v12, %v1275_v30 }
 0x56a   : > { %v1278_v38 = vrot.slane %v1277_v42, 1 }
 0x56c   : > { %v1279_v39 = vadd.f32 %v1278_v38, %v1277_v42 }
 0x56e   : > { %v1280_v48 = vmul.f32 0.0625, %v1279_v39 }
 0x570   : > { %1282 = vrot.lane.b32.xlu1 %v1280_v48, %s2968_s16 }
 0x574   : > { %1324 = vrot.lane.b32.xlu1 %v1323_v11, %s2968_s16 }
 0x578   : > { %1358 = vrot.lane.b32.xlu1 %v1357_v34, %s2971_s9  ;;  %v1486_v34 = vld [vmem:[#allocation7 + $0x50] sm:$0xff] }
 0x5e2   : > { %v1283_v49 = vpop.permute.xlu1 %1282 }
 0x5e3   : > { %1285 = vst.msk [vmem:[#allocation3] sm:$0x1] %vm780_vm3, %v1283_v49  ;;  %v1487_v49 = vld [vmem:[#allocation7 + $0x58] sm:$0xff] }
 0x5e6   : > { %v1325_v13 = vpop.permute.xlu1 %1324 }
 0x5ea   : > { %v1288_v37 = vld [vmem:[#allocation3] sm:$0x1]  ;;  %v1359_v47 = vpop.permute.xlu1 %1358 }
 0x5eb   : > { %v1327_v58 = vmul.f32 %v1325_v13, %v1288_v37  ;;  %v1317_v43 = vmul.f32 %v1315_v20, %v1288_v37  ;;  %v1361_v16 = vmul.f32 %v1359_v47, %v1288_v37  ;;  %v1337_v14 = vmul.f32 %v1335_v7, %v1288_v37 }
 0x5ec   : > { %v1289_v23 = vmul.f32 %v1288_v37, %v3492_v50  ;;  %v2413_v13 = vpack.c.bf16 %v1487_v49, %v1486_v34 }
 0x5ed   : > { %1329 = vrot.lane.b32.xlu1 %v1327_v58, %s2972_s29  ;;  %1319 = vrot.lane.b32.xlu0 %v1317_v43, %s2973_s3  ;;  %v2203_v58 = vld [vmem:[#allocation18 + $0x1] ss:$0 sm:$0xff] }
 0x5ee   : > { %2414 = vmatprep.subr.bf16.mxu1 %v2413_v13 }
 0x5ef   : > { %2416 = vmatpush3.bf16.msra.mxu1 %v2413_v13 }
 0x5f1   : > { %1363 = vrot.lane.b32.xlu1 %v1361_v16, %s2975_s28  ;;  %1339 = vrot.lane.b32.xlu0 %v1337_v14, %s2974_s5 }
 0x65f   : > { %v1330_v29 = vpop.permute.xlu1 %1329  ;;  %v1320_v5 = vpop.permute.xlu0 %1319 }
 0x660   : > { %v1322_v6 = vadd.f32 %v1320_v5, %v1289_v23  ;;  %v1632_v23 = vrot.slane %v1594_v63, %v3408_v40  ;;  %v1625_v5 = vadd.f32 %v1623_v2, %v1615_v3 }
 0x662   : > { %v1332_v8 = vadd.f32 %v1330_v29, %v1322_v6  ;;  %v1633_v6 = vmul.f32 %v1632_v23, %v3414_v45 }
 0x663   : > { %v1340_v30 = vpop.permute.xlu0 %1339  ;;  %v1364_v42 = vpop.permute.xlu1 %1363 }
 0x664   : > { %v1342_v12 = vadd.f32 %v1340_v30, %v1332_v8  ;;  %v1642_v8 = vrot.slane %v1594_v63, %v3416_v46  ;;  %v1635_v31 = vadd.f32 %v1633_v6, %v1625_v5 }
 0x666   : > { %v1366_v38 = vadd.f32 %v1364_v42, %v1342_v12  ;;  %v1643_v35 = vmul.f32 %v1642_v8, %v3422_v54 }
 0x668   : > { %v2200_v39 = vmul.f32 -1.442695, %v1366_v38  ;;  %v1652_v38 = vrot.slane %v1594_v63, %v3420_v51 }
 0x66a   : > { %2599 = vpow2.f32 %v2200_v39  ;;  %v1645_v39 = vadd.f32 %v1643_v35, %v1635_v31  ;;  %v1653_v41 = vmul.f32 %v1652_v38, %v3428_v60 }
 0x674   : > { %v2600_v27 = vpop.eup %2599 }
 0x675   : > { %v1370_v28 = vadd.f32 1.0, %v2600_v27  ;;  %v1662_v27 = vrot.slane %v1594_v63, %v3426_v59 }
 0x677   : > { %2601 = vrcp.f32 %v1370_v28  ;;  %v1655_v28 = vadd.f32 %v1653_v41, %v1645_v39  ;;  %v1663_v45 = vmul.f32 %v1662_v27, %v3434_v1 }
 0x679   : > { %v1665_v54 = vadd.f32 %v1663_v45, %v1655_v28 }
 0x681   : > { %v2602_v48 = vpop.eup %2601 }
 0x682   : > { %v1377_v11 = vrot.slane %v2602_v48, %v3393_v22  ;;  %v1672_v48 = vrot.slane %v1594_v63, %v3432_v0 }
 0x684   : > { %v1379_v26 = vmul.f32 %v1377_v11, %v3531_v36  ;;  %v1380_v50 = vmul.f32 %v1377_v11, %v3533_v19  ;;  %v3569_v19 = vld [vmem:[#allocation15 + $0x10] sm:$0x1f]  ;;  %v1673_v13 = vmul.f32 %v1672_v48, %v3438_v9 }
 0x685   : > { %v3573_v16 = vrot.slane %v3569_v19, %v3381_v15 }
 0x686   : > { %2328 = vmatprep.mubr.msk.f32.mxu0 %vm469_vm1, %v1379_v26  ;;  %v1595_v26 = vld [vmem:[#allocation10 + $0x38] sm:$0xff]  ;;  %v1675_v60 = vadd.f32 %v1673_v13, %v1665_v54 }
 0x687   : > { %2329 = vmatmul.mubr.msk.f32.vlgmr.msra.gmra.mrb[4].mxu0 %vm469_vm1, %v1380_v50  ;;  %v1690_v1 = vrot.slane %v1595_v26, %v3395_v25  ;;  %v1708_v9 = vrot.slane %v1595_v26, %v3408_v40  ;;  %v1717_v25 = vrot.slane %v1595_v26, %v3416_v46  ;;  %v1726_v40 = vrot.slane %v1595_v26, %v3420_v51 }
 0x688   : > { %v1735_v39 = vrot.slane %v1595_v26, %v3426_v59  ;;  %v1744_v51 = vrot.slane %v1595_v26, %v3432_v0 }
 0x75a   : > { %v2330_v20 = vpop.f32.mrb[4].mxu0 }
 0x75b   : > { %v1472_v37 = vadd.f32 %v2330_v20, %v3486_v55  ;;  %v1462_v43 = vpop.f32.mrb[5].mxu0  ;;  %v1806_v55 = vcombine.high %v3573_v16, %v3573_v16  ;;  %v1681_v20 = vrot.slane %v1595_v26, %v3393_v22 }
 0x75c   : > { %v1471_v47 = vadd.f32 %v1462_v43, %v3484_v62 }
 0x75d   : > { %v3563_v36 = vadd.f32 %v2203_v58, %v1472_v37  ;;  %v1820_v62 = vrot.slane %v1806_v55, %v3381_v15  ;;  %v1682_v37 = vmul.f32 %v1681_v20, %v3444_v18 }
 0x75e   : > { %v3561_v7 = vadd.f32 %v2203_v58, %v1471_v47  ;;  %v1604_v58 = vmul.f32 %v1602_v10, %v3444_v18 }
 0x75f   : > { %1821 = vrot.lane.b32.xlu1 %v1820_v62, %s2970_s20  ;;  %v1840_v14 = vcombine.high %v1820_v62, %v1820_v62  ;;  %v1684_v55 = vadd.f32 %v1682_v37, %v1675_v60  ;;  %v1699_v62 = vrot.slane %v1595_v26, %v3401_v33 }
 0x760   : > { %2339 = vmatprep.mubr.msk.f32.mxu1 %vm485_vm0, %v3561_v7 }
 0x761   : > { %2340 = vmatmul.mubr.msk.f32.vlgmr.msra.gmra.mrb[2].mxu1 %vm485_vm0, %v3563_v36 }
 0x763   : > { %1841 = vrot.lane.b32.xlu1 %v1840_v14, %s2969_s17  ;;  %s2976_s17 = smov [#allocation19]  }
 0x764   : > { %s2873_s20 = sshll.u32 %s2976_s17, 4  ;;  %s2874_s20 = int_to_ptr.vmem [resolvable:$false] %s2873_s20 }
 0x765   : > { %p2876_p13 = scmp.lt.s32.totalorder %s3646_s21, %s2874_s20 }
 0x834   : > { %v2341_v32 = vpop.f32.mrb[2].mxu1 }
 0x835   : > { %v1574_v4 = vadd.f32 %v2341_v32, %v2204_v52  ;;  %v1568_v53 = vpop.f32.mrb[3].mxu1 }
 0x836   : > { %v1569_v56 = vadd.f32 %v2204_v52, %v1568_v53 }
 0x837   : > { %v2208_v57 = vmul.f32 -1.442695, %v1574_v4 }
 0x838   : > { %v2207_v24 = vmul.f32 -1.442695, %v1569_v56 }
 0x839   : > { %2603 = vpow2.f32 %v2208_v57 }
 0x83a   : > { %2605 = vpow2.f32 %v2207_v24 }
 0x843   : > { %v2604_v29 = vpop.eup %2603 }
 0x844   : > { %v2606_v30 = vpop.eup %2605  ;;  %v1584_v12 = vadd.f32 1.0, %v2604_v29 }
 0x845   : > { %v1583_v42 = vadd.f32 1.0, %v2606_v30 }
 0x846   : > { %2607 = vrcp.f32 %v1584_v12 }
 0x847   : > { %2609 = vrcp.f32 %v1583_v42 }
 0x850   : > { %v2608_v11 = vpop.eup %2607 }
 0x851   : > { %v2610_v50 = vpop.eup %2609  ;;  %v1590_v34 = vmul.f32 %v2608_v11, %v1574_v4 }
 0x852   : > { %v1589_v49 = vmul.f32 %v2610_v50, %v1569_v56 }
 0x853   : > { %1592 = vst.msk [vmem:[#allocation2 + $0x18] sm:$0xff] %vm469_vm1, %v1590_v34 }
 0x854   : > { %1591 = vst.msk [vmem:[#allocation2 + $0x10] sm:$0xff] %vm469_vm1, %v1589_v49 }
 0x85b   : > { %v1608_v43 = vld [vmem:[#allocation2 + $0x9] sm:$0xff]  ;;  %v1686_v41 = vld [vmem:[#allocation2 + $0x11] sm:$0xff] }
 0x85c   : > { %v1618_v47 = vld [vmem:[#allocation2 + $0xa] sm:$0xff]  ;;  %v1614_v14 = vmul.f32 %v1612_v61, %v1608_v43  ;;  %v1691_v52 = vmul.f32 %v1690_v1, %v1608_v43  ;;  %v1695_v11 = vld [vmem:[#allocation2 + $0x12] sm:$0xff]  ;;  %v2209_v43 = vld [vmem:[#allocation10 + $0x40] ss:$0 sm:$0xff] }
 0x85d   : > { %v1628_v32 = vld [vmem:[#allocation2 + $0xb] sm:$0xff]  ;;  %v1624_v4 = vmul.f32 %v1622_v21, %v1618_v47  ;;  %v1700_v57 = vmul.f32 %v1699_v62, %v1618_v47  ;;  %v1704_v49 = vld [vmem:[#allocation2 + $0x13] sm:$0xff] }
 0x85e   : > { %v1616_v63 = vadd.f32 %v1614_v14, %v1604_v58  ;;  %v1638_v53 = vld [vmem:[#allocation2 + $0xc] sm:$0xff]  ;;  %v1693_v56 = vadd.f32 %v1691_v52, %v1684_v55  ;;  %v1634_v17 = vmul.f32 %v1632_v23, %v1628_v32  ;;  %v1709_v44 = vmul.f32 %v1708_v9, %v1628_v32  ;;  %v1713_v60 = vld [vmem:[#allocation2 + $0x14] sm:$0xff] }
 0x85f   : > { %v1648_v18 = vld [vmem:[#allocation2 + $0xd] sm:$0xff]  ;;  %v1644_v2 = vmul.f32 %v1642_v8, %v1638_v53  ;;  %v1718_v6 = vmul.f32 %v1717_v25, %v1638_v53  ;;  %v1722_v59 = vld [vmem:[#allocation2 + $0x15] sm:$0xff]  ;;  %v1719_v55 = vmul.f32 %v1717_v25, %v1713_v60 }
 0x860   : > { %v1626_v24 = vadd.f32 %v1624_v4, %v1616_v63  ;;  %v1702_v10 = vadd.f32 %v1700_v57, %v1693_v56  ;;  %v1658_v33 = vld [vmem:[#allocation2 + $0xe] sm:$0xff]  ;;  %v1654_v5 = vmul.f32 %v1652_v38, %v1648_v18  ;;  %v1727_v46 = vmul.f32 %v1726_v40, %v1648_v18  ;;  %v1731_v14 = vld [vmem:[#allocation2 + $0x16] sm:$0xff] }
 0x861   : > { %v1668_v21 = vld [vmem:[#allocation2 + $0xf] sm:$0xff]  ;;  %v1664_v12 = vmul.f32 %v1662_v27, %v1658_v33  ;;  %v1692_v38 = vmul.f32 %v1690_v1, %v1686_v41  ;;  %v1736_v34 = vmul.f32 %v1735_v39, %v1658_v33  ;;  %v1701_v27 = vmul.f32 %v1699_v62, %v1695_v11  ;;  %v1740_v63 = vld [vmem:[#allocation2 + $0x17] sm:$0xff]  ;;  %v1822_v41 = vpop.permute.xlu1 %1821 }
 0x862   : > { %v1636_v3 = vadd.f32 %v1634_v17, %v1626_v24  ;;  %v1711_v61 = vadd.f32 %v1709_v44, %v1702_v10  ;;  %v1677_v31 = vld [vmem:[#allocation2 + $0x10] sm:$0xff]  ;;  %v1674_v35 = vmul.f32 %v1672_v48, %v1668_v21  ;;  %v1710_v48 = vmul.f32 %v1708_v9, %v1704_v49  ;;  %v1749_v53 = vld [vmem:[#allocation2 + $0x18] sm:$0xff]  ;;  %v2210_v62 = vld [vmem:[#allocation12 + $0x2] ss:$0 sm:$0xff] }
 0x863   : > { %v1683_v8 = vmul.f32 %v1681_v20, %v1677_v31  ;;  %v1745_v58 = vmul.f32 %v1744_v51, %v1668_v21  ;;  %v1728_v32 = vmul.f32 %v1726_v40, %v1722_v59  ;;  %v1754_v1 = vmul.f32 %v2209_v43, %v1677_v31  ;;  %v2211_v18 = vld [vmem:[#allocation13 + $0x2] ss:$0 sm:$0xff]  ;;  %v1891_v49 = vld [vmem:[#allocation16 + $0x90] sm:$0xff] }
 0x864   : > { %v1646_v29 = vadd.f32 %v1644_v2, %v1636_v3  ;;  %v1720_v42 = vadd.f32 %v1718_v6, %v1711_v61  ;;  %v1737_v0 = vmul.f32 %v1735_v39, %v1731_v14  ;;  %v1746_v57 = vmul.f32 %v1744_v51, %v1740_v63  ;;  %v1890_v51 = vld [vmem:[#allocation16 + $0x88] sm:$0xff]  ;;  %v1893_v60 = vld [vmem:[#allocation16 + $0xa0] sm:$0xff] }
 0x865   : > { %v1755_v9 = vmul.f32 %v2209_v43, %v1749_v53  ;;  %v1842_v11 = vpop.permute.xlu1 %1841  ;;  %v1896_v43 = vld [vmem:[#allocation16 + $0xb8] sm:$0xff] }
 0x866   : > { %v1656_v30 = vadd.f32 %v1654_v5, %v1646_v29  ;;  %v1729_v45 = vadd.f32 %v1727_v46, %v1720_v42  ;;  %v1850_v42 = vcombine.high %v3569_v19, %v3569_v19 }
 0x868   : > { %v1666_v23 = vadd.f32 %v1664_v12, %v1656_v30  ;;  %v1738_v13 = vadd.f32 %v1736_v34, %v1729_v45  ;;  %v1813_v12 = vrot.slane %v3573_v16, %v3381_v15 }
 0x86a   : > { %v1676_v28 = vadd.f32 %v1674_v35, %v1666_v23  ;;  %v1747_v20 = vadd.f32 %v1745_v58, %v1738_v13  ;;  %v1830_v23 = vcombine.high %v1813_v12, %v1813_v12  ;;  %v1857_v35 = vrot.slane %v1850_v42, %v3381_v15  ;;  %v1895_v58 = vld [vmem:[#allocation16 + $0xb0] sm:$0xff] }
 0x86b   : > { %v2429_v59 = vpack.c.bf16 %v1896_v43, %v1895_v58 }
 0x86c   : > { %v1685_v50 = vadd.f32 %v1683_v8, %v1676_v28  ;;  %v1756_v26 = vadd.f32 %v1754_v1, %v1747_v20  ;;  %v1864_v46 = vrot.slane %v1857_v35, %v3381_v15  ;;  %v1889_v15 = vld [vmem:[#allocation16 + $0x80] sm:$0xff] }
 0x86e   : > { %v1694_v54 = vadd.f32 %v1692_v38, %v1685_v50  ;;  %v1766_v17 = vmul.f32 %v2210_v62, %v1756_v26 }
 0x870   : > { %v1703_v37 = vadd.f32 %v1701_v27, %v1694_v54  ;;  %v3608_v25 = vadd.f32 %v2211_v18, %v1766_v17  ;;  %v2417_v54 = vpack.c.bf16 %v1890_v51, %v1889_v15  ;;  %v1892_v27 = vld [vmem:[#allocation16 + $0x98] sm:$0xff] }
 0x871   : > { %v2421_v13 = vpack.c.bf16 %v1892_v27, %v1891_v49 }
 0x872   : > { %v1712_v47 = vadd.f32 %v1710_v48, %v1703_v37  ;;  %v1778_v2 = vsel %vm469_vm1, %v3608_v25, 0.0  ;;  %v1894_v37 = vld [vmem:[#allocation16 + $0xa8] sm:$0xff]  ;;  %2418 = vmatprep.subr.bf16.mxu1 %v2417_v54 }
 0x873   : > { %2420 = vmatpush3.bf16.msra.mxu1 %v2417_v54  ;;  %v2425_v48 = vpack.c.bf16 %v1894_v37, %v1893_v60 }
 0x874   : > { %v1721_v52 = vadd.f32 %v1719_v55, %v1712_v47  ;;  %2422 = vmatprep.subr.bf16.mxu1 %v2421_v13 }
 0x876   : > { %v1730_v4 = vadd.f32 %v1728_v32, %v1721_v52 }
 0x877   : > { %2424 = vmatpush3.bf16.msra.mxu1 %v2421_v13 }
 0x878   : > { %v1739_v56 = vadd.f32 %v1737_v0, %v1730_v4  ;;  %2426 = vmatprep.subr.bf16.mxu1 %v2425_v48 }
 0x87a   : > { %v1748_v24 = vadd.f32 %v1746_v57, %v1739_v56 }
 0x87b   : > { %2428 = vmatpush3.bf16.msra.mxu1 %v2425_v48 }
 0x87c   : > { %v1757_v10 = vadd.f32 %v1755_v9, %v1748_v24  ;;  %2430 = vmatprep.subr.bf16.mxu1 %v2429_v59  ;;  %v2215_v9 = vld [vmem:[#allocation18 + $0x2] ss:$0 sm:$0xff] }
 0x87e   : > { %v1767_v44 = vmul.f32 %v2210_v62, %v1757_v10 }
 0x87f   : > { %2432 = vmatpush3.bf16.msra.mxu1 %v2429_v59 }
 0x880   : > { %v3610_v3 = vadd.f32 %v2211_v18, %v1767_v44 }
 0x882   : > { %v1779_v33 = vsel %vm469_vm1, %v3610_v3, 0.0 }
 0x883   : > { %v1780_v61 = vadd.f32 %v1779_v33, %v1778_v2 }
 0x885   : > { %v1781_v29 = vrot.slane %v1780_v61, 4 }
 0x887   : > { %v1782_v5 = vadd.f32 %v1781_v29, %v1780_v61 }
 0x889   : > { %v1783_v6 = vrot.slane %v1782_v5, 2 }
 0x88b   : > { %v1784_v40 = vadd.f32 %v1783_v6, %v1782_v5 }
 0x88d   : > { %v1785_v21 = vrot.slane %v1784_v40, 1 }
 0x88f   : > { %v1786_v30 = vadd.f32 %v1785_v21, %v1784_v40 }
 0x891   : > { %v1787_v31 = vmul.f32 0.0625, %v1786_v30 }
 0x893   : > { %1789 = vrot.lane.b32.xlu0 %v1787_v31, %s2968_s16 }
 0x897   : > { %1831 = vrot.lane.b32.xlu0 %v1830_v23, %s2968_s16  ;;  %s3644_s16 = scalar_lea.hbm %s3737_s19, %s2222_s22 }
 0x89b   : > { %1865 = vrot.lane.b32.xlu0 %v1864_v46, %s2971_s9  ;;  %s2875_s9 = scalar_lea.vmem %s2874_s20, 512 }
 0x89c   : > { %p2877_p8 = scmp.lt.s32.totalorder %s2875_s9, %s2869_s14 }
 0x89e   : > { %p2878_p7 = por %p2877_p8, %p2876_p13 }
 0x8a0   : > { %p2879_p9 = pnand %p2878_p7, %p2872_p12 }
 0x905   : > { %v1790_v39 = vpop.permute.xlu0 %1789 }
 0x906   : > { %1792 = vst.msk [vmem:[#allocation3] sm:$0x1] %vm780_vm3, %v1790_v39 }
 0x909   : > { %v1832_v16 = vpop.permute.xlu0 %1831 }
 0x90d   : > { %v1795_v28 = vld [vmem:[#allocation3] sm:$0x1]  ;;  %v1866_v50 = vpop.permute.xlu0 %1865 }
 0x90e   : > { %v1824_v8 = vmul.f32 %v1822_v41, %v1795_v28  ;;  %v1834_v45 = vmul.f32 %v1832_v16, %v1795_v28  ;;  %v1844_v38 = vmul.f32 %v1842_v11, %v1795_v28  ;;  %v1868_v34 = vmul.f32 %v1866_v50, %v1795_v28 }
 0x90f   : > { %v1796_v47 = vmul.f32 %v1795_v28, %v3569_v19 }
 0x910   : > { %1826 = vrot.lane.b32.xlu1 %v1824_v8, %s2973_s3  ;;  %1836 = vrot.lane.b32.xlu0 %v1834_v45, %s2972_s29 }
 0x914   : > { %1846 = vrot.lane.b32.xlu1 %v1844_v38, %s2974_s5  ;;  %1870 = vrot.lane.b32.xlu0 %v1868_v34, %s2975_s28 }
 0x982   : > { %v1827_v55 = vpop.permute.xlu1 %1826  ;;  %v1837_v20 = vpop.permute.xlu0 %1836 }
 0x983   : > { %v1829_v14 = vadd.f32 %v1827_v55, %v1796_v47 }
 0x985   : > { %v1839_v52 = vadd.f32 %v1837_v20, %v1829_v14 }
 0x986   : > { %v1847_v32 = vpop.permute.xlu1 %1846  ;;  %v1871_v63 = vpop.permute.xlu0 %1870 }
 0x987   : > { %v1849_v1 = vadd.f32 %v1847_v32, %v1839_v52 }
 0x989   : > { %v1873_v4 = vadd.f32 %v1871_v63, %v1849_v1 }
 0x98b   : > { %v2212_v0 = vmul.f32 -1.442695, %v1873_v4 }
 0x98d   : > { %2611 = vpow2.f32 %v2212_v0 }
 0x997   : > { %v2612_v26 = vpop.eup %2611 }
 0x998   : > { %v1877_v53 = vadd.f32 1.0, %v2612_v26 }
 0x99a   : > { %2613 = vrcp.f32 %v1877_v53 }
 0x9a4   : > { %v2614_v62 = vpop.eup %2613 }
 0x9a5   : > { %v1884_v56 = vrot.slane %v2614_v62, %v3393_v22 }
 0x9a7   : > { %v1886_v19 = vmul.f32 %v1884_v56, %v3608_v25  ;;  %v1887_v57 = vmul.f32 %v1884_v56, %v3610_v3 }
 0x9a9   : > { %2358 = vmatprep.mubr.msk.f32.mxu1 %vm469_vm1, %v1886_v19 }
 0x9aa   : > { %2359 = vmatmul.mubr.msk.f32.vlgmr.msra.gmra.mrb[4].mxu1 %vm469_vm1, %v1887_v57 }
 0xa7d   : > { %v2360_v24 = vpop.f32.mrb[4].mxu1 }
 0xa7e   : > { %v1979_v17 = vadd.f32 %v2360_v24, %v3563_v36  ;;  %v1969_v18 = vpop.f32.mrb[5].mxu1 }
 0xa7f   : > { %v1978_v22 = vadd.f32 %v1969_v18, %v3561_v7 }
 0xa80   : > { %v1989_v10 = vadd.f32 %v2215_v9, %v1979_v17 }
 0xa81   : > { %v1988_v44 = vadd.f32 %v2215_v9, %v1978_v22 }
 0xa82   : > { %1991 = vst.msk [vmem:[%s466_s24 + $0x8] sm:$0xff] %vm485_vm0, %v1989_v10 }
 0xa83   : > { %1990 = vst.msk [vmem:[%s466_s24] sm:$0xff] %vm485_vm0, %v1988_v44 }
 0xa84   : > { %2882 = shalt.err (!%p2879_p9)
}
 0xa85   : > { %s2883_s29 = scalar_lea.hbm %s3644_s16, 256  ;;  %s2887_s28 = scalar_lea.hbm %s3737_s19, 512 }
 0xa86   : > { %p2884_p4 = scmp.ne.s32.totalorder %s3644_s16, %s2883_s29  ;;  %p2888_p2 = scmp.lt.u32.totalorder %s3644_s16, %s3737_s19 }
 0xa87   : > { %p2889_p6 = scmp.lt.u32.totalorder %s2887_s28, %s2883_s29  ;;  %p2891_p10 = scmp.lt.u32.totalorder %s2883_s29, %s3644_s16 }
 0xa88   : > { %p2885_p3 = pnand %p2884_p4, %p3738_p1 }
 0xa89   : > { %p2890_p5 = por %p2889_p6, %p2888_p2 }
 0xa8a   : > { %p2886_p0 = pneg %p2885_p3 }
 0xa8b   : > { %p2892_p11 = por %p2891_p10, %p2890_p5 }
 0xa8d   : > { %p2893_p12 = pnand %p2892_p11, %p2886_p0 }
 0xa8f   : > { %2896 = shalt.err (!%p2893_p12)
}
 0xa90   : > { %s2977_s26 = smov 128   ;;  %s2978_s1 = smov 8  }
 0xa91   : > { %2467 = dma.vmem_to_hbm [thread:$0]  (%p3738_p1), %s3646_s21, 256, %s3644_s16, %s1993_s15, %s2977_s26, %s2977_s26, %s2978_s1  }
 0xa92 PF: > { %s2021_s14 = sand.u32 1, %s2939_s30   ;;  %p3739_p13 = scmp.ne.s32.totalorder %s3726_s18, 0 }
 0xa93   : > { %p3740_p8 = scmp.ge.s32.totalorder %s2951_s12, 2  ;;  %s2022_s17 = scalar_lea.sflag [#allocation6], %s2021_s14 }
 0xa95   : > { %p2499_p7 = pnand %p3740_p8, %p3739_p13 }
 0xa97   : > { %2934 = dma.done.wait (!%p2499_p7), %s2022_s17, 256  }
 0xa98   : > { %2936 = vsyncadd (!%p2499_p7), %s2022_s17, 4294967040  ;;  %p26_p9 = scmp.ge.s32.totalorder %s3261_s27, 4   ;;  %s3741_s30 = smov %s2943_s10 }
 0xa99   : > { %s3742_s10 = smov %s2947_s11  ;;  %s3743_s11 = smov %s3272_s13 }
 0xa9a   : > { %s3744_s12 = smov %s3261_s27  ;;  %28 = sbr.rel (!%p26_p9) target bundleno = 14 (0xe), region = 149 }
 0xaa1   :  { %2027 = vsyncpa [#allocation5], 1 }
 0xaa2   :  { %2029 = vsyncpa [#allocation5 + $0x1], 1 }
 0xaa3   :  { %2030 = vsyncpa [#allocation8], 1 }
 0xaa4   :  { %2031 = vsyncpa [#allocation11], 1 }
 0xaa5   :  { %2032 = vsyncpa [#allocation14], 1 }
 0xaa6   :  { %2033 = vsyncpa [#allocation17], 1 }
 0xaa7   :  { %2034 = vsyncpa [#allocation6], 1 }
 0xaa8   :  { %2036 = vsyncpa [#allocation6 + $0x1], 1 }

// kernel: _lambda_.3
= control target key start
LH: loop header
LB: loop body
LE: loop exit
PB: predicated region body
PF: predicated region fallthrough
CT: control target
= control target key end

     0   :  { %s6093_s0 = inlined_call_operand.hbm [shape: f32[2,16,32], index: 0, kind: input, shape index: {}]   ;;  %s6094_s1 = inlined_call_operand.hbm [shape: f32[1,32], index: 1, kind: input, shape index: {}]   ;;  %s6095_s2 = inlined_call_operand.hbm [shape: f32[1,32], index: 2, kind: input, shape index: {}]   ;;  %s6096_s3 = inlined_call_operand.hbm [shape: f32[1,32], index: 3, kind: input, shape index: {}]   ;;  %s6097_s4 = inlined_call_operand.hbm [shape: f32[1,32], index: 4, kind: input, shape index: {}]   ;;  %s6098_s5 = inlined_call_operand.hbm [shape: f32[4,32,8], index: 5, kind: input, shape index: {}]   ;;  %s6099_s6 = inlined_call_operand.hbm [shape: f32[4,1,8], index: 6, kind: input, shape index: {}]   ;;  %s6100_s7 = inlined_call_operand.hbm [shape: f32[4,32,8], index: 7, kind: input, shape index: {}]   ;;  %s6101_s8 = inlined_call_operand.hbm [shape: f32[4,1,8], index: 8, kind: input, shape index: {}]   ;;  %s6102_s9 = inlined_call_operand.hbm [shape: f32[4,32,8], index: 9, kind: input, shape index: {}]   ;;  %s6103_s10 = inlined_call_operand.hbm [shape: f32[4,1,8], index: 10, kind: input, shape index: {}]   ;;  %s6104_s11 = inlined_call_operand.hbm [shape: f32[4,8,32], index: 11, kind: input, shape index: {}]   ;;  %s6105_s12 = inlined_call_operand.hbm [shape: f32[1,32], index: 12, kind: input, shape index: {}]   ;;  %s6106_s13 = inlined_call_operand.hbm [shape: f32[1,32], index: 13, kind: input, shape index: {}]   ;;  %s6107_s14 = inlined_call_operand.hbm [shape: f32[1,32], index: 14, kind: input, shape index: {}]   ;;  %s6108_s15 = inlined_call_operand.hbm [shape: f32[32,64], index: 15, kind: input, shape index: {}]   ;;  %s6109_s16 = inlined_call_operand.hbm [shape: f32[1,64], index: 16, kind: input, shape index: {}]   ;;  %s6110_s17 = inlined_call_operand.hbm [shape: f32[64,32], index: 17, kind: input, shape index: {}]   ;;  %s6111_s18 = inlined_call_operand.hbm [shape: f32[1,32], index: 18, kind: input, shape index: {}]   ;;  %s6112_s19 = inlined_call_operand.hbm [shape: f32[2,16,32], index: 19, kind: output, shape index: {}]  }
   0x1   :  { %6136 = sst [smem:[#allocation50_spill]] %s6093_s0 }
   0x2   :  { %6137 = sst [smem:[#allocation51_spill]] %s6094_s1 }
   0x3   :  { %6138 = sst [smem:[#allocation52_spill]] %s6095_s2 }
   0x4   :  { %6139 = sst [smem:[#allocation53_spill]] %s6096_s3 }
   0x5   :  { %6140 = sst [smem:[#allocation54_spill]] %s6097_s4 }
   0x6   :  { %6141 = sst [smem:[#allocation55_spill]] %s6098_s5 }
   0x7   :  { %6142 = sst [smem:[#allocation56_spill]] %s6109_s16 }
   0x8   :  { %6143 = sst [smem:[#allocation57_spill]] %s6111_s18 }
   0x9   :  { %6144 = sst [smem:[#allocation58_spill]] %s6112_s19 }
   0xa   :  { %24 = vsyncpa [#allocation3], 0 }
   0xb   :  { %26 = vsyncpa [#allocation3 + $0x1], 0 }
   0xc   :  { %27 = vsyncpa [#allocation6], 0 }
   0xd   :  { %28 = vsyncpa [#allocation9], 0 }
   0xe   :  { %29 = vsyncpa [#allocation12], 0 }
   0xf   :  { %30 = vsyncpa [#allocation15], 0 }
  0x10   :  { %31 = vsyncpa [#allocation18], 0 }
  0x11   :  { %32 = vsyncpa [#allocation21], 0 }
  0x12   :  { %33 = vsyncpa [#allocation24], 0 }
  0x13   :  { %34 = vsyncpa [#allocation27], 0 }
  0x14   :  { %35 = vsyncpa [#allocation30], 0 }
  0x15   :  { %36 = vsyncpa [#allocation4], 0 }
  0x16   :  { %38 = vsyncpa [#allocation4 + $0x1], 0  ;;  %s5309_s0 = smov 0   ;;  %s5311_s30 = smov 0  }
  0x17   :  { %s5313_s20 = smov 0   ;;  %s5315_s21 = smov 0  }
  0x18 LB: > { %6145 = sst [smem:[#allocation44_spill]] %s5169_s0  ;;  %s5183_s1 = smov [#allocation5]   ;;  %s5181_s21 = sphi %s5315_s21, %s6211_s21   ;;  %s5177_s20 = sphi %s5313_s20, %s6210_s20   ;;  %s5173_s30 = sphi %s5311_s30, %s6209_s30   ;;  %s5169_s0 = sphi %s5309_s0, %s6208_s0  }
  0x19   : > { %6146 = sst [smem:[#allocation45_spill]] %s5173_s30  ;;  %s492_s22 = sshll.u32 %s5183_s1, 4  ;;  %s5335_s22 = int_to_ptr.vmem [resolvable:$true] %s492_s22 }
  0x1a   : > { %6147 = sst [smem:[#allocation46_spill]] %s5177_s20  ;;  %s5330_s2 = sadd.s32 4294967295, %s5181_s21  }
  0x1b   : > { %6148 = sst [smem:[#allocation47_spill]] %s5181_s21  ;;  %p3604_p0 = scmp.ge.s32.totalorder %s5181_s21, 1 }
  0x1c   : > { %6149 = sst [smem:[#allocation48_spill]] %s5330_s2  ;;  %p6130_p1 = scmp.eq.s32.totalorder %s5330_s2, 0 }
  0x1d   : > { %p479_p2 = scmp.lt.s32.totalorder %s5181_s21, 3  ;;  %s5184_s24 = smov [#allocation8]  }
  0x1e   : > { %s514_s25 = sshll.u32 %s5184_s24, 4  ;;  %s5185_s3 = smov [#allocation11]   ;;  %s5344_s25 = int_to_ptr.vmem [resolvable:$true] %s514_s25 }
  0x1f   : > { %p5337_p3 = pnand %p3604_p0, %p479_p2  ;;  %s535_s26 = sshll.u32 %s5185_s3, 4  ;;  %s5352_s26 = int_to_ptr.vmem [resolvable:$true] %s535_s26 }
  0x20   : > { %s6153_s1 = sld [smem:[#allocation51_spill]] }
  0x21   : > { %s6150_s23 = scalar_select %p5337_p3, 1, 0 }
  0x22   : > { %p4348_p5 = pneg %p5337_p3 }
  0x23   : > { %6151 = sst [smem:[#allocation49_spill]] %s6150_s23 }
  0x24   : > { %p5348_p6 = pnand %p4348_p5, %p6130_p1 }
  0x26   : > { %s4545_s19 = scalar_lea.hbm %s6153_s1, 16  ;;  %p5362_p8 = pneg %p5348_p6 }
  0x27   : > { %p4546_p7 = scmp.ne.s32.totalorder %s6153_s1, %s4545_s19  ;;  %p4552_p11 = scmp.lt.u32.totalorder %s4545_s19, %s6153_s1 }
  0x29   : > { %p4548_p9 = pnand %p5362_p8, %p4546_p7 }
  0x2b   : > { %p4549_p10 = pneg %p4548_p9 }
  0x2d   : > { %p4554_p12 = pnand %p4552_p11, %p4549_p10 }
  0x2f   : > { %4557 = shalt.err (!%p4554_p12)
}
  0x30   : > { %s4558_s0 = scalar_lea.vmem %s5335_s22, 16  ;;  %s4565_s23 = scalar_lea.vmem %s5335_s22, 32 }
  0x31   : > { %p4559_p13 = scmp.ne.s32.totalorder %s5335_s22, %s4558_s0  ;;  %p4566_p5 = scmp.lt.s32.totalorder %s5335_s22, %s5335_s22 }
  0x32   : > { %p4567_p7 = scmp.lt.s32.totalorder %s4565_s23, %s4558_s0 }
  0x33   : > { %p4561_p0 = pnand %p4559_p13, %p5362_p8 }
  0x34   : > { %p4568_p9 = por %p4567_p7, %p4566_p5 }
  0x35   : > { %p4562_p2 = pneg %p4561_p0 }
  0x37   : > { %p4569_p4 = pnand %p4568_p9, %p4562_p2 }
  0x39   : > { %4572 = shalt.err (!%p4569_p4)
}
  0x3a   : > { %4351 = dma.hbm_to_vmem [thread:$0]  (!%p5348_p6), %s6153_s1, 16, %s5335_s22, [#allocation6]  }
  0x3b   : > { %s6155_s3 = sld [smem:[#allocation53_spill]] }
  0x41   : > { %s4573_s30 = scalar_lea.hbm %s6155_s3, 16 }
  0x42   : > { %p4574_p10 = scmp.ne.s32.totalorder %s6155_s3, %s4573_s30  ;;  %p4580_p4 = scmp.lt.u32.totalorder %s4573_s30, %s6155_s3 }
  0x44   : > { %p4576_p11 = pnand %p4574_p10, %p5362_p8 }
  0x46   : > { %p4577_p12 = pneg %p4576_p11 }
  0x48   : > { %p4582_p13 = pnand %p4580_p4, %p4577_p12 }
  0x4a   : > { %4585 = shalt.err (!%p4582_p13)
}
  0x4b   : > { %s4586_s22 = scalar_lea.vmem %s5344_s25, 16  ;;  %s4593_s20 = scalar_lea.vmem %s5344_s25, 32 }
  0x4c   : > { %p4587_p0 = scmp.ne.s32.totalorder %s5344_s25, %s4586_s22  ;;  %p4594_p7 = scmp.lt.s32.totalorder %s5344_s25, %s5344_s25 }
  0x4d   : > { %p4595_p9 = scmp.lt.s32.totalorder %s4593_s20, %s4586_s22 }
  0x4e   : > { %p4589_p2 = pnand %p4587_p0, %p5362_p8 }
  0x4f   : > { %p4596_p10 = por %p4595_p9, %p4594_p7 }
  0x50   : > { %p4590_p5 = pneg %p4589_p2 }
  0x52   : > { %p4597_p11 = pnand %p4596_p10, %p4590_p5 }
  0x54   : > { %4600 = shalt.err (!%p4597_p11)
}
  0x55   : > { %4357 = dma.hbm_to_vmem [thread:$0]  (!%p5348_p6), %s6155_s3, 16, %s5344_s25, [#allocation9]  }
  0x56   : > { %s6156_s5 = sld [smem:[#allocation55_spill]] }
  0x5c   : > { %s4601_s28 = scalar_lea.hbm %s6156_s5, 2048 }
  0x5d   : > { %p4602_p12 = scmp.ne.s32.totalorder %s6156_s5, %s4601_s28  ;;  %p4608_p0 = scmp.lt.u32.totalorder %s4601_s28, %s6156_s5 }
  0x5f   : > { %p4604_p4 = pnand %p4602_p12, %p5362_p8 }
  0x61   : > { %p4605_p13 = pneg %p4604_p4 }
  0x63   : > { %p4610_p2 = pnand %p4608_p0, %p4605_p13 }
  0x65   : > { %4613 = shalt.err (!%p4610_p2)
}
  0x66   : > { %s4614_s25 = scalar_lea.vmem %s5352_s26, 2048  ;;  %p4622_p10 = scmp.lt.s32.totalorder %s5352_s26, %s5352_s26 }
  0x67   : > { %p4615_p5 = scmp.ne.s32.totalorder %s5352_s26, %s4614_s25  ;;  %p4623_p11 = scmp.lt.s32.totalorder %s4614_s25, %s4614_s25 }
  0x69   : > { %p4617_p7 = pnand %p4615_p5, %p5362_p8  ;;  %p4624_p12 = por %p4623_p11, %p4622_p10 }
  0x6b   : > { %p4618_p9 = pneg %p4617_p7 }
  0x6d   : > { %p4625_p4 = pnand %p4624_p12, %p4618_p9 }
  0x6f   : > { %4628 = shalt.err (!%p4625_p4)
}
  0x70   : > { %s6132_s20 = smov 128   ;;  %s6133_s30 = smov 8  }
  0x71   : > { %4363 = dma.hbm_to_vmem [thread:$0]  (!%p5348_p6), %s6156_s5, 2048, %s5352_s26, [#allocation12], %s6132_s20, %s6132_s20, %s6133_s30  }
  0x72   : > { %s5188_s2 = smov [#allocation14]   ;;  %s5189_s29 = smov [#allocation17]  }
  0x73   : > { %s561_s28 = sshll.u32 %s5188_s2, 4  ;;  %s587_s0 = sshll.u32 %s5189_s29, 4  ;;  %s562_s28 = int_to_ptr.vmem [resolvable:$true] %s561_s28  ;;  %s588_s0 = int_to_ptr.vmem [resolvable:$true] %s587_s0 }
  0x74   : > { %s4629_s25 = scalar_lea.hbm %s6100_s7, 2048 }
  0x75   : > { %p4630_p13 = scmp.ne.s32.totalorder %s6100_s7, %s4629_s25  ;;  %p4636_p5 = scmp.lt.u32.totalorder %s4629_s25, %s6100_s7 }
  0x77   : > { %p4632_p0 = pnand %p4630_p13, %p5362_p8 }
  0x79   : > { %p4633_p2 = pneg %p4632_p0 }
  0x7b   : > { %p4638_p7 = pnand %p4636_p5, %p4633_p2 }
  0x7d   : > { %4641 = shalt.err (!%p4638_p7)
}
  0x7e   : > { %s4642_s26 = scalar_lea.vmem %s562_s28, 2048  ;;  %p4650_p12 = scmp.lt.s32.totalorder %s562_s28, %s562_s28 }
  0x7f   : > { %p4643_p9 = scmp.ne.s32.totalorder %s562_s28, %s4642_s26  ;;  %p4651_p4 = scmp.lt.s32.totalorder %s4642_s26, %s4642_s26 }
  0x81   : > { %p4645_p10 = pnand %p4643_p9, %p5362_p8  ;;  %p4652_p1 = por %p4651_p4, %p4650_p12 }
  0x83   : > { %p4646_p11 = pneg %p4645_p10 }
  0x85   : > { %p4653_p3 = pnand %p4652_p1, %p4646_p11 }
  0x87   : > { %4656 = shalt.err (!%p4653_p3)
}
  0x88   : > { %4369 = dma.hbm_to_vmem [thread:$0]  (!%p5348_p6), %s6100_s7, 2048, %s562_s28, [#allocation15], %s6132_s20, %s6132_s20, %s6133_s30  }
  0x89   : > { %s4657_s21 = scalar_lea.hbm %s6102_s9, 2048 }
  0x8a   : > { %p4658_p1 = scmp.ne.s32.totalorder %s6102_s9, %s4657_s21  ;;  %p4664_p0 = scmp.lt.u32.totalorder %s4657_s21, %s6102_s9 }
  0x8c   : > { %p4660_p3 = pnand %p4658_p1, %p5362_p8 }
  0x8e   : > { %p4661_p13 = pneg %p4660_p3 }
  0x90   : > { %p4666_p2 = pnand %p4664_p0, %p4661_p13 }
  0x92   : > { %4669 = shalt.err (!%p4666_p2)
}
  0x93   : > { %s4670_s22 = scalar_lea.vmem %s588_s0, 2048  ;;  %p4678_p10 = scmp.lt.s32.totalorder %s588_s0, %s588_s0 }
  0x94   : > { %p4671_p5 = scmp.ne.s32.totalorder %s588_s0, %s4670_s22  ;;  %p4679_p11 = scmp.lt.s32.totalorder %s4670_s22, %s4670_s22 }
  0x96   : > { %p4673_p7 = pnand %p4671_p5, %p5362_p8  ;;  %p4680_p12 = por %p4679_p11, %p4678_p10 }
  0x98   : > { %p4674_p9 = pneg %p4673_p7 }
  0x9a   : > { %p4681_p4 = pnand %p4680_p12, %p4674_p9 }
  0x9c   : > { %4684 = shalt.err (!%p4681_p4)
}
  0x9d   : > { %4375 = dma.hbm_to_vmem [thread:$0]  (!%p5348_p6), %s6102_s9, 2048, %s588_s0, [#allocation18], %s6132_s20, %s6132_s20, %s6133_s30  }
  0x9e   : > { %s5190_s26 = smov [#allocation20]   ;;  %s5191_s18 = smov [#allocation23]  }
  0x9f   : > { %s613_s16 = sshll.u32 %s5190_s26, 4  ;;  %s638_s1 = sshll.u32 %s5191_s18, 4  ;;  %s614_s16 = int_to_ptr.vmem [resolvable:$true] %s613_s16  ;;  %s639_s1 = int_to_ptr.vmem [resolvable:$true] %s638_s1 }
  0xa0   : > { %s4685_s19 = scalar_lea.hbm %s6104_s11, 512 }
  0xa1   : > { %p4686_p1 = scmp.ne.s32.totalorder %s6104_s11, %s4685_s19  ;;  %p4692_p0 = scmp.lt.u32.totalorder %s4685_s19, %s6104_s11 }
  0xa3   : > { %p4688_p3 = pnand %p4686_p1, %p5362_p8 }
  0xa5   : > { %p4689_p13 = pneg %p4688_p3 }
  0xa7   : > { %p4694_p2 = pnand %p4692_p0, %p4689_p13 }
  0xa9   : > { %4697 = shalt.err (!%p4694_p2)
}
  0xaa   : > { %s4698_s0 = scalar_lea.vmem %s614_s16, 512  ;;  %p4706_p10 = scmp.lt.s32.totalorder %s614_s16, %s614_s16 }
  0xab   : > { %p4699_p5 = scmp.ne.s32.totalorder %s614_s16, %s4698_s0  ;;  %p4707_p11 = scmp.lt.s32.totalorder %s4698_s0, %s4698_s0 }
  0xad   : > { %p4701_p7 = pnand %p4699_p5, %p5362_p8  ;;  %p4708_p12 = por %p4707_p11, %p4706_p10 }
  0xaf   : > { %p4702_p9 = pneg %p4701_p7 }
  0xb1   : > { %p4709_p4 = pnand %p4708_p12, %p4702_p9 }
  0xb3   : > { %4712 = shalt.err (!%p4709_p4)
}
  0xb4   : > { %4381 = dma.hbm_to_vmem [thread:$0]  (!%p5348_p6), %s6104_s11, 512, %s614_s16, [#allocation21], %s6132_s20, %s6132_s20, %s6133_s30  }
  0xb5   : > { %s4713_s3 = scalar_lea.hbm %s6106_s13, 16 }
  0xb6   : > { %p4714_p1 = scmp.ne.s32.totalorder %s6106_s13, %s4713_s3  ;;  %p4720_p0 = scmp.lt.u32.totalorder %s4713_s3, %s6106_s13 }
  0xb8   : > { %p4716_p3 = pnand %p4714_p1, %p5362_p8 }
  0xba   : > { %p4717_p13 = pneg %p4716_p3 }
  0xbc   : > { %p4722_p2 = pnand %p4720_p0, %p4717_p13 }
  0xbe   : > { %4725 = shalt.err (!%p4722_p2)
}
  0xbf   : > { %s4726_s23 = scalar_lea.vmem %s639_s1, 16  ;;  %s4733_s16 = scalar_lea.vmem %s639_s1, 32 }
  0xc0   : > { %p4727_p5 = scmp.ne.s32.totalorder %s639_s1, %s4726_s23  ;;  %p4734_p10 = scmp.lt.s32.totalorder %s639_s1, %s639_s1 }
  0xc1   : > { %p4735_p11 = scmp.lt.s32.totalorder %s4733_s16, %s4726_s23 }
  0xc2   : > { %p4729_p7 = pnand %p4727_p5, %p5362_p8 }
  0xc3   : > { %p4736_p12 = por %p4735_p11, %p4734_p10 }
  0xc4   : > { %p4730_p9 = pneg %p4729_p7 }
  0xc6   : > { %p4737_p4 = pnand %p4736_p12, %p4730_p9 }
  0xc8   : > { %4740 = shalt.err (!%p4737_p4)
}
  0xc9   : > { %4387 = dma.hbm_to_vmem [thread:$0]  (!%p5348_p6), %s6106_s13, 16, %s639_s1, [#allocation24]  }
  0xca   : > { %s5192_s28 = smov [#allocation26]   ;;  %s5193_s26 = smov [#allocation29]  }
  0xcb   : > { %s659_s25 = sshll.u32 %s5192_s28, 4  ;;  %s683_s18 = sshll.u32 %s5193_s26, 4  ;;  %s660_s25 = int_to_ptr.vmem [resolvable:$true] %s659_s25  ;;  %s684_s18 = int_to_ptr.vmem [resolvable:$true] %s683_s18 }
  0xcc   : > { %s4741_s19 = scalar_lea.hbm %s6108_s15, 512 }
  0xcd   : > { %p4742_p1 = scmp.ne.s32.totalorder %s6108_s15, %s4741_s19  ;;  %p4748_p0 = scmp.lt.u32.totalorder %s4741_s19, %s6108_s15 }
  0xcf   : > { %p4744_p3 = pnand %p4742_p1, %p5362_p8 }
  0xd1   : > { %p4745_p13 = pneg %p4744_p3 }
  0xd3   : > { %p4750_p2 = pnand %p4748_p0, %p4745_p13 }
  0xd5   : > { %4753 = shalt.err (!%p4750_p2)
}
  0xd6   : > { %s4754_s1 = scalar_lea.vmem %s660_s25, 512  ;;  %p4762_p10 = scmp.lt.s32.totalorder %s660_s25, %s660_s25 }
  0xd7   : > { %p4755_p5 = scmp.ne.s32.totalorder %s660_s25, %s4754_s1  ;;  %p4763_p11 = scmp.lt.s32.totalorder %s4754_s1, %s4754_s1 }
  0xd9   : > { %p4757_p7 = pnand %p4755_p5, %p5362_p8  ;;  %p4764_p12 = por %p4763_p11, %p4762_p10 }
  0xdb   : > { %p4758_p9 = pneg %p4757_p7 }
  0xdd   : > { %p4765_p4 = pnand %p4764_p12, %p4758_p9 }
  0xdf   : > { %4768 = shalt.err (!%p4765_p4)
}
  0xe0   : > { %4393 = dma.hbm_to_vmem [thread:$0]  (!%p5348_p6), %s6108_s15, 512, %s660_s25, [#allocation27], %s6132_s20, %s6132_s20, %s6133_s30  }
  0xe1   : > { %s4769_s3 = scalar_lea.hbm %s6110_s17, 1024 }
  0xe2   : > { %p4770_p1 = scmp.ne.s32.totalorder %s6110_s17, %s4769_s3  ;;  %p4776_p0 = scmp.lt.u32.totalorder %s4769_s3, %s6110_s17 }
  0xe4   : > { %p4772_p3 = pnand %p4770_p1, %p5362_p8 }
  0xe6   : > { %p4773_p13 = pneg %p4772_p3 }
  0xe8   : > { %p4778_p2 = pnand %p4776_p0, %p4773_p13 }
  0xea   : > { %4781 = shalt.err (!%p4778_p2)
}
  0xeb   : > { %s4782_s23 = scalar_lea.vmem %s684_s18, 1024  ;;  %p4790_p10 = scmp.lt.s32.totalorder %s684_s18, %s684_s18 }
  0xec   : > { %p4783_p5 = scmp.ne.s32.totalorder %s684_s18, %s4782_s23  ;;  %p4791_p11 = scmp.lt.s32.totalorder %s4782_s23, %s4782_s23 }
  0xee   : > { %p4785_p7 = pnand %p4783_p5, %p5362_p8  ;;  %p4792_p12 = por %p4791_p11, %p4790_p10 }
  0xf0   : > { %p4786_p9 = pneg %p4785_p7 }
  0xf2   : > { %p4793_p4 = pnand %p4792_p12, %p4786_p9 }
  0xf4   : > { %4796 = shalt.err (!%p4793_p4)
}
  0xf5   : > { %4399 = dma.hbm_to_vmem [thread:$0]  (!%p5348_p6), %s6110_s17, 1024, %s684_s18, [#allocation30], %s6132_s20, %s6132_s20, %s6133_s30  }
  0xf6   : > { %s5194_s1 = smov [#allocation7]   ;;  %s5195_s0 = smov [#allocation10]  }
  0xf7   : > { %s503_s22 = sshll.u32 %s5194_s1, 4  ;;  %s525_s28 = sshll.u32 %s5195_s0, 4  ;;  %s504_s22 = int_to_ptr.vmem [resolvable:$true] %s503_s22  ;;  %s526_s28 = int_to_ptr.vmem [resolvable:$true] %s525_s28 }
  0xf8   : > { %s6157_s21 = sld [smem:[#allocation52_spill]] }
  0xfe   : > { %s6158_s19 = smov %s6157_s21  ;;  %s4797_s2 = scalar_lea.hbm %s6157_s21, 16 }
  0xff   : > { %p4798_p1 = scmp.ne.s32.totalorder %s6158_s19, %s4797_s2  ;;  %p4804_p0 = scmp.lt.u32.totalorder %s4797_s2, %s6158_s19 }
 0x101   : > { %p4800_p3 = pnand %p4798_p1, %p5362_p8 }
 0x103   : > { %p4801_p13 = pneg %p4800_p3 }
 0x105   : > { %p4806_p2 = pnand %p4804_p0, %p4801_p13 }
 0x107   : > { %4809 = shalt.err (!%p4806_p2)
}
 0x108   : > { %s4810_s18 = scalar_lea.vmem %s504_s22, 16  ;;  %s4817_s16 = scalar_lea.vmem %s504_s22, 32 }
 0x109   : > { %p4811_p5 = scmp.ne.s32.totalorder %s504_s22, %s4810_s18  ;;  %p4818_p10 = scmp.lt.s32.totalorder %s504_s22, %s504_s22 }
 0x10a   : > { %p4819_p11 = scmp.lt.s32.totalorder %s4817_s16, %s4810_s18 }
 0x10b   : > { %p4813_p7 = pnand %p4811_p5, %p5362_p8 }
 0x10c   : > { %p4820_p12 = por %p4819_p11, %p4818_p10 }
 0x10d   : > { %p4814_p9 = pneg %p4813_p7 }
 0x10f   : > { %p4821_p4 = pnand %p4820_p12, %p4814_p9 }
 0x111   : > { %4824 = shalt.err (!%p4821_p4)
}
 0x112   : > { %4354 = dma.hbm_to_vmem [thread:$0]  (!%p5348_p6), %s6158_s19, 16, %s504_s22, [#allocation6]  }
 0x113   : > { %s6159_s4 = sld [smem:[#allocation54_spill]] }
 0x119   : > { %s4825_s3 = scalar_lea.hbm %s6159_s4, 16 }
 0x11a   : > { %p4826_p1 = scmp.ne.s32.totalorder %s6159_s4, %s4825_s3  ;;  %p4832_p0 = scmp.lt.u32.totalorder %s4825_s3, %s6159_s4 }
 0x11c   : > { %p4828_p3 = pnand %p4826_p1, %p5362_p8 }
 0x11e   : > { %p4829_p13 = pneg %p4828_p3 }
 0x120   : > { %p4834_p2 = pnand %p4832_p0, %p4829_p13 }
 0x122   : > { %4837 = shalt.err (!%p4834_p2)
}
 0x123   : > { %s4838_s25 = scalar_lea.vmem %s526_s28, 16  ;;  %s4845_s22 = scalar_lea.vmem %s526_s28, 32 }
 0x124   : > { %p4839_p5 = scmp.ne.s32.totalorder %s526_s28, %s4838_s25  ;;  %p4846_p10 = scmp.lt.s32.totalorder %s526_s28, %s526_s28 }
 0x125   : > { %p4847_p11 = scmp.lt.s32.totalorder %s4845_s22, %s4838_s25 }
 0x126   : > { %p4841_p7 = pnand %p4839_p5, %p5362_p8 }
 0x127   : > { %p4848_p12 = por %p4847_p11, %p4846_p10 }
 0x128   : > { %p4842_p9 = pneg %p4841_p7 }
 0x12a   : > { %p4849_p4 = pnand %p4848_p12, %p4842_p9 }
 0x12c   : > { %4852 = shalt.err (!%p4849_p4)
}
 0x12d   : > { %4360 = dma.hbm_to_vmem [thread:$0]  (!%p5348_p6), %s6159_s4, 16, %s526_s28, [#allocation9]  }
 0x12e   : > { %s5196_s1 = smov [#allocation13]   ;;  %s4853_s3 = scalar_lea.hbm %s6099_s6, 64 }
 0x12f   : > { %s548_s0 = sshll.u32 %s5196_s1, 4  ;;  %p4854_p1 = scmp.ne.s32.totalorder %s6099_s6, %s4853_s3  ;;  %s549_s0 = int_to_ptr.vmem [resolvable:$true] %s548_s0 }
 0x130   : > { %p4860_p0 = scmp.lt.u32.totalorder %s4853_s3, %s6099_s6 }
 0x131   : > { %p4856_p3 = pnand %p4854_p1, %p5362_p8 }
 0x133   : > { %p4857_p13 = pneg %p4856_p3 }
 0x135   : > { %p4862_p2 = pnand %p4860_p0, %p4857_p13 }
 0x137   : > { %4865 = shalt.err (!%p4862_p2)
}
 0x138   : > { %s4866_s28 = scalar_lea.vmem %s549_s0, 64  ;;  %p4874_p10 = scmp.lt.s32.totalorder %s549_s0, %s549_s0 }
 0x139   : > { %p4867_p5 = scmp.ne.s32.totalorder %s549_s0, %s4866_s28  ;;  %p4875_p11 = scmp.lt.s32.totalorder %s4866_s28, %s4866_s28 }
 0x13b   : > { %p4869_p7 = pnand %p4867_p5, %p5362_p8  ;;  %p4876_p12 = por %p4875_p11, %p4874_p10 }
 0x13d   : > { %p4870_p9 = pneg %p4869_p7 }
 0x13f   : > { %p4877_p4 = pnand %p4876_p12, %p4870_p9 }
 0x141   : > { %4880 = shalt.err (!%p4877_p4)
}
 0x142   : > { %s5197_s25 = smov 16   ;;  %s5198_s22 = smov 1  }
 0x143   : > { %4366 = dma.hbm_to_vmem [thread:$0]  (!%p5348_p6), %s6099_s6, 64, %s549_s0, [#allocation12], %s5197_s25, %s5197_s25, %s5198_s22  }
 0x144   : > { %s5199_s1 = smov [#allocation16]   ;;  %s5200_s26 = smov [#allocation19]  }
 0x145   : > { %s574_s5 = sshll.u32 %s5199_s1, 4  ;;  %s600_s3 = sshll.u32 %s5200_s26, 4  ;;  %s575_s5 = int_to_ptr.vmem [resolvable:$true] %s574_s5  ;;  %s5614_s3 = int_to_ptr.vmem [resolvable:$true] %s600_s3 }
 0x146   : > { %s4881_s29 = scalar_lea.hbm %s6101_s8, 64 }
 0x147   : > { %p4882_p1 = scmp.ne.s32.totalorder %s6101_s8, %s4881_s29  ;;  %p4888_p0 = scmp.lt.u32.totalorder %s4881_s29, %s6101_s8 }
 0x149   : > { %p4884_p3 = pnand %p4882_p1, %p5362_p8 }
 0x14b   : > { %p4885_p13 = pneg %p4884_p3 }
 0x14d   : > { %p4890_p2 = pnand %p4888_p0, %p4885_p13 }
 0x14f   : > { %4893 = shalt.err (!%p4890_p2)
}
 0x150   : > { %s4894_s16 = scalar_lea.vmem %s575_s5, 64  ;;  %p4902_p10 = scmp.lt.s32.totalorder %s575_s5, %s575_s5 }
 0x151   : > { %p4895_p5 = scmp.ne.s32.totalorder %s575_s5, %s4894_s16  ;;  %p4903_p11 = scmp.lt.s32.totalorder %s4894_s16, %s4894_s16 }
 0x153   : > { %p4897_p7 = pnand %p4895_p5, %p5362_p8  ;;  %p4904_p12 = por %p4903_p11, %p4902_p10 }
 0x155   : > { %p4898_p9 = pneg %p4897_p7 }
 0x157   : > { %p4905_p4 = pnand %p4904_p12, %p4898_p9 }
 0x159   : > { %4908 = shalt.err (!%p4905_p4)
}
 0x15a   : > { %4372 = dma.hbm_to_vmem [thread:$0]  (!%p5348_p6), %s6101_s8, 64, %s575_s5, [#allocation15], %s5197_s25, %s5197_s25, %s5198_s22  }
 0x15b   : > { %s4909_s29 = scalar_lea.hbm %s6103_s10, 64 }
 0x15c   : > { %p4910_p1 = scmp.ne.s32.totalorder %s6103_s10, %s4909_s29  ;;  %p4916_p0 = scmp.lt.u32.totalorder %s4909_s29, %s6103_s10 }
 0x15e   : > { %p4912_p3 = pnand %p4910_p1, %p5362_p8 }
 0x160   : > { %p4913_p13 = pneg %p4912_p3 }
 0x162   : > { %p4918_p2 = pnand %p4916_p0, %p4913_p13 }
 0x164   : > { %4921 = shalt.err (!%p4918_p2)
}
 0x165   : > { %s4922_s5 = scalar_lea.vmem %s5614_s3, 64  ;;  %p4930_p10 = scmp.lt.s32.totalorder %s5614_s3, %s5614_s3 }
 0x166   : > { %p4923_p5 = scmp.ne.s32.totalorder %s5614_s3, %s4922_s5  ;;  %p4931_p11 = scmp.lt.s32.totalorder %s4922_s5, %s4922_s5 }
 0x168   : > { %p4925_p7 = pnand %p4923_p5, %p5362_p8  ;;  %p4932_p12 = por %p4931_p11, %p4930_p10 }
 0x16a   : > { %p4926_p9 = pneg %p4925_p7 }
 0x16c   : > { %p4933_p4 = pnand %p4932_p12, %p4926_p9 }
 0x16e   : > { %4936 = shalt.err (!%p4933_p4)
}
 0x16f   : > { %4378 = dma.hbm_to_vmem [thread:$0]  (!%p5348_p6), %s6103_s10, 64, %s5614_s3, [#allocation18], %s5197_s25, %s5197_s25, %s5198_s22  }
 0x170   : > { %s5201_s26 = smov [#allocation22]   ;;  %s5202_s2 = smov [#allocation25]  }
 0x171   : > { %s627_s21 = sshll.u32 %s5201_s26, 4  ;;  %s649_s29 = sshll.u32 %s5202_s2, 4  ;;  %s628_s21 = int_to_ptr.vmem [resolvable:$true] %s627_s21  ;;  %s5663_s29 = int_to_ptr.vmem [resolvable:$true] %s649_s29 }
 0x172   : > { %s4937_s18 = scalar_lea.hbm %s6105_s12, 16 }
 0x173   : > { %p4938_p1 = scmp.ne.s32.totalorder %s6105_s12, %s4937_s18  ;;  %p4944_p0 = scmp.lt.u32.totalorder %s4937_s18, %s6105_s12 }
 0x175   : > { %p4940_p3 = pnand %p4938_p1, %p5362_p8 }
 0x177   : > { %p4941_p13 = pneg %p4940_p3 }
 0x179   : > { %p4946_p2 = pnand %p4944_p0, %p4941_p13 }
 0x17b   : > { %4949 = shalt.err (!%p4946_p2)
}
 0x17c   : > { %s4950_s22 = scalar_lea.vmem %s628_s21, 16  ;;  %s4957_s3 = scalar_lea.vmem %s628_s21, 32 }
 0x17d   : > { %p4951_p5 = scmp.ne.s32.totalorder %s628_s21, %s4950_s22  ;;  %p4958_p10 = scmp.lt.s32.totalorder %s628_s21, %s628_s21 }
 0x17e   : > { %p4959_p11 = scmp.lt.s32.totalorder %s4957_s3, %s4950_s22 }
 0x17f   : > { %p4953_p7 = pnand %p4951_p5, %p5362_p8 }
 0x180   : > { %p4960_p12 = por %p4959_p11, %p4958_p10 }
 0x181   : > { %p4954_p9 = pneg %p4953_p7 }
 0x183   : > { %p4961_p4 = pnand %p4960_p12, %p4954_p9 }
 0x185   : > { %4964 = shalt.err (!%p4961_p4)
}
 0x186   : > { %4384 = dma.hbm_to_vmem [thread:$0]  (!%p5348_p6), %s6105_s12, 16, %s628_s21, [#allocation21]  }
 0x187   : > { %s4965_s28 = scalar_lea.hbm %s6107_s14, 16 }
 0x188   : > { %p4966_p1 = scmp.ne.s32.totalorder %s6107_s14, %s4965_s28  ;;  %p4972_p0 = scmp.lt.u32.totalorder %s4965_s28, %s6107_s14 }
 0x18a   : > { %p4968_p3 = pnand %p4966_p1, %p5362_p8 }
 0x18c   : > { %p4969_p13 = pneg %p4968_p3 }
 0x18e   : > { %p4974_p2 = pnand %p4972_p0, %p4969_p13 }
 0x190   : > { %4977 = shalt.err (!%p4974_p2)
}
 0x191   : > { %s4978_s21 = scalar_lea.vmem %s5663_s29, 16  ;;  %s4985_s25 = scalar_lea.vmem %s5663_s29, 32 }
 0x192   : > { %p4979_p5 = scmp.ne.s32.totalorder %s5663_s29, %s4978_s21  ;;  %p4986_p10 = scmp.lt.s32.totalorder %s5663_s29, %s5663_s29 }
 0x193   : > { %p4987_p11 = scmp.lt.s32.totalorder %s4985_s25, %s4978_s21 }
 0x194   : > { %p4981_p7 = pnand %p4979_p5, %p5362_p8 }
 0x195   : > { %p4988_p12 = por %p4987_p11, %p4986_p10 }
 0x196   : > { %p4982_p9 = pneg %p4981_p7 }
 0x198   : > { %p4989_p4 = pnand %p4988_p12, %p4982_p9 }
 0x19a   : > { %4992 = shalt.err (!%p4989_p4)
}
 0x19b   : > { %4390 = dma.hbm_to_vmem [thread:$0]  (!%p5348_p6), %s6107_s14, 16, %s5663_s29, [#allocation24]  }
 0x19c   : > { %s5203_s1 = smov [#allocation28]   ;;  %s5204_s2 = smov [#allocation31]  }
 0x19d   : > { %s673_s26 = sshll.u32 %s5203_s1, 4  ;;  %s697_s23 = sshll.u32 %s5204_s2, 4  ;;  %s674_s26 = int_to_ptr.vmem [resolvable:$true] %s673_s26  ;;  %s5707_s23 = int_to_ptr.vmem [resolvable:$true] %s697_s23 }
 0x19e   : > { %s6160_s0 = sld [smem:[#allocation56_spill]] }
 0x1a4   : > { %s6161_s5 = smov %s6160_s0  ;;  %s4993_s16 = scalar_lea.hbm %s6160_s0, 16 }
 0x1a5   : > { %p4994_p1 = scmp.ne.s32.totalorder %s6161_s5, %s4993_s16  ;;  %p5000_p0 = scmp.lt.u32.totalorder %s4993_s16, %s6161_s5 }
 0x1a7   : > { %p4996_p3 = pnand %p4994_p1, %p5362_p8 }
 0x1a9   : > { %p4997_p13 = pneg %p4996_p3 }
 0x1ab   : > { %p5002_p2 = pnand %p5000_p0, %p4997_p13 }
 0x1ad   : > { %5005 = shalt.err (!%p5002_p2)
}
 0x1ae   : > { %s5006_s3 = scalar_lea.vmem %s674_s26, 16  ;;  %s5013_s1 = scalar_lea.vmem %s674_s26, 32 }
 0x1af   : > { %p5007_p5 = scmp.ne.s32.totalorder %s674_s26, %s5006_s3  ;;  %p5014_p10 = scmp.lt.s32.totalorder %s674_s26, %s674_s26 }
 0x1b0   : > { %p5015_p11 = scmp.lt.s32.totalorder %s5013_s1, %s5006_s3 }
 0x1b1   : > { %p5009_p7 = pnand %p5007_p5, %p5362_p8 }
 0x1b2   : > { %p5016_p12 = por %p5015_p11, %p5014_p10 }
 0x1b3   : > { %p5010_p9 = pneg %p5009_p7 }
 0x1b5   : > { %p5017_p4 = pnand %p5016_p12, %p5010_p9 }
 0x1b7   : > { %5020 = shalt.err (!%p5017_p4)
}
 0x1b8   : > { %4396 = dma.hbm_to_vmem [thread:$0]  (!%p5348_p6), %s6161_s5, 16, %s674_s26, [#allocation27]  }
 0x1b9   : > { %s6162_s16 = sld [smem:[#allocation57_spill]] }
 0x1bf   : > { %s5021_s21 = scalar_lea.hbm %s6162_s16, 16 }
 0x1c0   : > { %p5022_p1 = scmp.ne.s32.totalorder %s6162_s16, %s5021_s21  ;;  %p5028_p0 = scmp.lt.u32.totalorder %s5021_s21, %s6162_s16 }
 0x1c2   : > { %p5024_p3 = pnand %p5022_p1, %p5362_p8 }
 0x1c4   : > { %p5025_p13 = pneg %p5024_p3 }
 0x1c6   : > { %p5030_p2 = pnand %p5028_p0, %p5025_p13 }
 0x1c8   : > { %5033 = shalt.err (!%p5030_p2)
}
 0x1c9   : > { %s5034_s26 = scalar_lea.vmem %s5707_s23, 16  ;;  %s5041_s1 = scalar_lea.vmem %s5707_s23, 32 }
 0x1ca   : > { %p5035_p5 = scmp.ne.s32.totalorder %s5707_s23, %s5034_s26  ;;  %p5042_p10 = scmp.lt.s32.totalorder %s5707_s23, %s5707_s23 }
 0x1cb   : > { %p5043_p11 = scmp.lt.s32.totalorder %s5041_s1, %s5034_s26 }
 0x1cc   : > { %p5037_p7 = pnand %p5035_p5, %p5362_p8 }
 0x1cd   : > { %p5044_p12 = por %p5043_p11, %p5042_p10 }
 0x1ce   : > { %p5038_p9 = pneg %p5037_p7 }
 0x1d0   : > { %p5045_p4 = pnand %p5044_p12, %p5038_p9 }
 0x1d2   : > { %5048 = shalt.err (!%p5045_p4)
}
 0x1d3   : > { %s6163_s18 = sld [smem:[#allocation47_spill]]  ;;  %s6164_s0 = sld [smem:[#allocation46_spill]] }
 0x1d4   : > { %s6165_s24 = sld [smem:[#allocation45_spill]]  ;;  %s6166_s21 = sld [smem:[#allocation44_spill]] }
 0x1d5   : > { %s6167_s25 = sld [smem:[#allocation48_spill]]  ;;  %s6173_s30 = sld [smem:[#allocation50_spill]] }
 0x1d6   : > { %4402 = dma.hbm_to_vmem [thread:$0]  (!%p5348_p6), %s6162_s16, 16, %s5707_s23, [#allocation30]  }
 0x1d9   : > { %s3603_s27 = sadd.s32 4294967294, %s6163_s18   ;;  %s5753_s22 = sadd.s32 1, %s6163_s18  }
 0x1da   : > { %s48_s29 = ssub.s32 %s6163_s18, %s5753_s22  ;;  %s51_s3 = sadd.s32 1, %s6164_s0 }
 0x1db   : > { %p49_p8 = scmp.eq.s32.totalorder %s48_s29, 0  ;;  %p58_p1 = scmp.ne.s32.totalorder %s6164_s0, %s6165_s24 }
 0x1dc   : > { %p59_p3 = scmp.eq.s32.totalorder %s6163_s18, 0  ;;  %p64_p13 = scmp.ne.s32.totalorder %s6165_s24, %s6166_s21 }
 0x1dd   : > { %s5764_s26 = scalar_select %p49_p8, %s6164_s0, %s51_s3  }
 0x1de   : > { %p5766_p0 = por %p59_p3, %p58_p1  ;;  %p6169_p2 = scmp.eq.s32.totalorder %s6167_s25, 0 }
 0x1df   : > { %p466_p5 = scmp.eq.s32.totalorder %s6167_s25, 1  ;;  %p472_p7 = scmp.eq.s32.totalorder %s3603_s27, 1 }
 0x1e0   : > { %p5772_p6 = por %p6169_p2, %p64_p13  ;;  %p4429_p9 = scmp.lt.s32.totalorder %s6163_s18, 2 }
 0x1e1   : > { %s708_s2 = sand.u32 1, %s6164_s0   ;;  %p5779_p10 = por %p466_p5, %p58_p1 }
 0x1e2   : > { %p5783_p11 = por %p472_p7, %p64_p13  ;;  %s3624_s21 = sshll.u32 %s708_s2, 4 }
 0x1e3   : > { %s6171_s28 = scalar_select %p5779_p10, 1, 0 }
 0x1e4   : > { %s6172_s24 = scalar_select %p5783_p11, 1, 0 }
 0x1e5   : > { %s3734_s29 = sshll.u32 %s6163_s18, 8  ;;  %s6174_s4 = smov %s6173_s30 }
 0x1e6   : > { %s5791_s5 = scalar_lea.hbm %s6173_s30, %s3734_s29  ;;  %s712_s0 = scalar_lea.vmem [#allocation2], %s3624_s21 }
 0x1e7   : > { %s719_s25 = sshll.u32 %s712_s0, 4  ;;  %p5797_p12 = pnand %p4429_p9, %p5766_p0  ;;  %s5793_s25 = int_to_ptr.vmem [resolvable:$true] %s719_s25 }
 0x1e8   : > { %s5801_s18 = scalar_lea.sflag [#allocation3], %s708_s2  ;;  %s5049_s20 = scalar_lea.hbm %s5791_s5, 256 }
 0x1e9   : > { %p5050_p4 = scmp.ne.s32.totalorder %s5791_s5, %s5049_s20  ;;  %p5051_p8 = pneg %p5797_p12 }
 0x1ea   : > { %s5054_s1 = scalar_lea.hbm %s6174_s4, 512  ;;  %p5055_p13 = scmp.lt.u32.totalorder %s5791_s5, %s6174_s4 }
 0x1eb   : > { %p5052_p1 = pnand %p5051_p8, %p5050_p4  ;;  %p5056_p0 = scmp.lt.u32.totalorder %s5054_s1, %s5049_s20 }
 0x1ec   : > { %p5058_p5 = scmp.lt.u32.totalorder %s5049_s20, %s5791_s5 }
 0x1ed   : > { %p5053_p3 = pneg %p5052_p1  ;;  %p5057_p2 = por %p5056_p0, %p5055_p13 }
 0x1ef   : > { %p5059_p7 = por %p5058_p5, %p5057_p2 }
 0x1f1   : > { %p5060_p9 = pnand %p5059_p7, %p5053_p3 }
 0x1f3   : > { %5063 = shalt.err (!%p5060_p9)
}
 0x1f4   : > { %s5064_s2 = scalar_lea.vmem %s5793_s25, 256  ;;  %s5205_s0 = smov [#allocation2]  }
 0x1f5   : > { %p5065_p4 = scmp.ne.s32.totalorder %s5793_s25, %s5064_s2  ;;  %s5069_s30 = sshll.u32 %s5205_s0, 4  ;;  %s5070_s30 = int_to_ptr.vmem [resolvable:$false] %s5069_s30 }
 0x1f6   : > { %s5071_s21 = scalar_lea.vmem %s5070_s30, 512  ;;  %p5072_p10 = scmp.lt.s32.totalorder %s5793_s25, %s5070_s30 }
 0x1f7   : > { %p5067_p1 = pnand %p5065_p4, %p5051_p8  ;;  %p5073_p13 = scmp.lt.s32.totalorder %s5071_s21, %s5064_s2 }
 0x1f9   : > { %p5068_p11 = pneg %p5067_p1  ;;  %p5074_p0 = por %p5073_p13, %p5072_p10 }
 0x1fb   : > { %p5075_p2 = pnand %p5074_p0, %p5068_p11 }
 0x1fd   : > { %5078 = shalt.err (!%p5075_p2)
}
 0x1fe   : > { %s6176_s20 = smov 8   ;;  %s6177_s1 = smov 128  }
 0x1ff   : > { %4406 = dma.hbm_to_vmem [thread:$0]  (!%p5797_p12), %s5791_s5, 256, %s5793_s25, %s5801_s18, %s6177_s1, %s6177_s1, %s6176_s20  }
 0x200   : > { %s6178_s29 = sld [smem:[#allocation49_spill]] }
 0x206   : > { %p6179_p8 = scmp.ne.s32.totalorder %s6178_s29, 0 }
 0x207   : > { %s6180_s3 = sld [smem:[#allocation45_spill]] (!%p6179_p8) }
 0x208   : > { %731 = sbr.rel (%p6179_p8) target bundleno = 5573 (0x15c5), region = 96 }
 0x20d   : > { %s5835_s0 = sand.u32 (!%p6179_p8), 1, %s6180_s3  }
 0x20e   : > { %s3628_s2 = sshll.u32 (!%p6179_p8), %s5835_s0, 4  ;;  %s734_s30 = scalar_lea.sflag (!%p6179_p8), [#allocation3], %s5835_s0 }
 0x20f   : > { %s737_s27 = scalar_lea.vmem [#allocation2], %s3628_s2 }
 0x210   : > { %5124 = dma.done.wait (%p5772_p6), %s734_s30, 256  }
 0x211   : > { %5126 = vsyncadd (%p5772_p6), %s734_s30, 4294967040  ;;  %s6181_s5 = sld [smem:[#allocation48_spill]] }
 0x217   : > { %p6182_p10 = scmp.eq.s32.totalorder %s6181_s5, 0 }
 0x219   : > { %5128 = dma.done.wait (%p6182_p10), [#allocation6], 32   ;;  %p6183_p11 = pmov %p6182_p10 }
 0x21a   : > { %p6184_p12 = pmov %p6182_p10 }
 0x21b   : > { %5130 = vsyncadd (%p6183_p11), [#allocation6], 4294967264 }
 0x21c   : > { %5132 = dma.done.wait (%p6184_p12), [#allocation9], 32   ;;  %p6185_p3 = pmov %p6182_p10 }
 0x21e   : > { %5134 = vsyncadd (%p6185_p3), [#allocation9], 4294967264  ;;  %p6186_p5 = pmov %p6185_p3 }
 0x21f   : > { %p6187_p7 = pmov %p6185_p3 }
 0x220   : > { %5136 = dma.done.wait (%p6186_p5), [#allocation12], 2112  }
 0x221   : > { %5138 = vsyncadd (%p6187_p7), [#allocation12], 4294965184  ;;  %p6188_p6 = pmov %p6185_p3 }
 0x222   : > { %p6189_p9 = pmov %p6185_p3 }
 0x223   : > { %5140 = dma.done.wait (%p6188_p6), [#allocation15], 2112  }
 0x224   : > { %5142 = vsyncadd (%p6189_p9), [#allocation15], 4294965184  ;;  %p6190_p4 = pmov %p6185_p3 }
 0x225   : > { %p6191_p1 = pmov %p6185_p3 }
 0x226   : > { %5144 = dma.done.wait (%p6190_p4), [#allocation18], 2112  }
 0x227   : > { %5146 = vsyncadd (%p6191_p1), [#allocation18], 4294965184  ;;  %p6192_p13 = pmov %p6191_p1 }
 0x228   : > { %p6193_p0 = pmov %p6191_p1 }
 0x229   : > { %5148 = dma.done.wait (%p6192_p13), [#allocation21], 528  }
 0x22a   : > { %5150 = vsyncadd (%p6193_p0), [#allocation21], 4294966768  ;;  %p6194_p2 = pmov %p6193_p0 }
 0x22b   : > { %p6195_p8 = pmov %p6193_p0 }
 0x22c   : > { %5152 = dma.done.wait (%p6194_p2), [#allocation24], 32  }
 0x22d   : > { %5154 = vsyncadd (%p6195_p8), [#allocation24], 4294967264  ;;  %p6196_p10 = pmov %p6193_p0 }
 0x22e   : > { %p6197_p11 = pmov %p6193_p0 }
 0x22f   : > { %5156 = dma.done.wait (%p6196_p10), [#allocation27], 528  }
 0x230   : > { %5158 = vsyncadd (%p6197_p11), [#allocation27], 4294966768  ;;  %p6198_p12 = pmov %p6193_p0 }
 0x231   : > { %p6199_p3 = pmov %p6193_p0 }
 0x232   : > { %5160 = dma.done.wait (%p6198_p12), [#allocation30], 1040  }
 0x233   : > { %5162 = vsyncadd (%p6199_p3), [#allocation30], 4294966256  ;;  %v5881_v0 = vld [vmem:[%s737_s27] sm:$0xff]  ;;  %v5884_v4 = vld [vmem:[%s737_s27 + $0x8] sm:$0xff]  ;;  %vm886_vm0 = vcmask 261120   ;;  %vm1194_vm1 = vcmask 64512  }
 0x234   : > { %v3648_v1 = vld [vmem:[#allocation5] ss:$0 sm:$0xff]  ;;  %v3649_v2 = vld [vmem:[#allocation7] ss:$0 sm:$0xff]  ;;  %v930_v20 = vld [vmem:[#allocation11] sm:$0xff]  ;;  %vm1284_vm3 = vcmask 130048  }
 0x235   : > { %v875_v3 = vmul.f32 %v3648_v1, %v5881_v0  ;;  %v876_v5 = vmul.f32 %v3648_v1, %v5884_v4  ;;  %v931_v21 = vld [vmem:[#allocation11 + $0x8] sm:$0xff]  ;;  %v1109_v24 = vld [vmem:[#allocation17 + $0x8] sm:$0xff]  ;;  %v933_v27 = vld [vmem:[#allocation11 + $0x18] sm:$0xff]  ;;  %vm3259_vm4 = vcmask 523264   ;;  %s3735_s23 = sshll.u32 %s6181_s5, 8  ;;  %s863_s25 = scalar_lea.vmem [#allocation32], %s3628_s2 }
 0x236   : > { %v4106_v22 = vpack.c.bf16 %v931_v21, %v930_v20  ;;  %v1108_v23 = vld [vmem:[#allocation17] sm:$0xff]  ;;  %v932_v26 = vld [vmem:[#allocation11 + $0x10] sm:$0xff]  ;;  %v1110_v29 = vld [vmem:[#allocation17 + $0x10] sm:$0xff]  ;;  %s3359_s18 = sshll.u32 %s863_s25, 4  ;;  %s6202_s1 = sld [smem:[#allocation58_spill]]  ;;  %s6046_s18 = int_to_ptr.vmem [resolvable:$true] %s3359_s18 }
 0x237   : > { %v884_v6 = vadd.f32 %v3649_v2, %v875_v3  ;;  %v885_v7 = vadd.f32 %v3649_v2, %v876_v5  ;;  %v4122_v25 = vpack.c.bf16 %v1109_v24, %v1108_v23  ;;  %v4110_v28 = vpack.c.bf16 %v933_v27, %v932_v26  ;;  %v1111_v30 = vld [vmem:[#allocation17 + $0x18] sm:$0xff]  ;;  %v1023_v33 = vld [vmem:[#allocation14 + $0x8] sm:$0xff]  ;;  %v5891_v42 = vld [vmem:[#allocation8] ss:$0 sm:$0xff]  ;;  %s3346_s3 = scalar_lea.sflag [#allocation4], %s5835_s0  ;;  %s5079_s2 = scalar_lea.vmem %s6046_s18, 256 }
 0x238   : > { %4107 = vmatprep.subr.bf16.mxu1 %v4106_v22  ;;  %v4126_v31 = vpack.c.bf16 %v1111_v30, %v1110_v29  ;;  %v1022_v32 = vld [vmem:[#allocation14] sm:$0xff]  ;;  %v5893_v44 = vld [vmem:[#allocation10] ss:$0 sm:$0xff]  ;;  %v1024_v49 = vld [vmem:[#allocation14 + $0x10] sm:$0xff]  ;;  %p5080_p5 = scmp.ne.s32.totalorder %s6046_s18, %s5079_s2  ;;  %p6203_p7 = scmp.ne.s32.totalorder %s6171_s28, 0 }
 0x239   : > { %v887_v8 = vsel %vm886_vm0, %v884_v6, 0.0  ;;  %v890_v9 = vsel %vm886_vm0, %v885_v7, 0.0  ;;  %4109 = vmatpush3.bf16.msra.mxu1 %v4106_v22  ;;  %4123 = vmatprep.subr.bf16.mxu0 %v4122_v25  ;;  %v4114_v34 = vpack.c.bf16 %v1023_v33, %v1022_v32  ;;  %v1025_v50 = vld [vmem:[#allocation14 + $0x18] sm:$0xff]  ;;  %v3658_v54 = vld [vmem:[#allocation19] ss:$0 sm:$0xff]  ;;  %vm5918_vm2 = vmpackc.low %vm1194_vm1, %vm1194_vm1  ;;  %s5206_s30 = smov [#allocation32]  }
 0x23a   : > { %888 = vadd.xlane.f32.xlu0 %v887_v8  ;;  %4125 = vmatpush3.bf16.msra.mxu0 %v4122_v25  ;;  %v4118_v53 = vpack.c.bf16 %v1025_v50, %v1024_v49  ;;  %v3652_v55 = vld [vmem:[#allocation13] ss:$0 sm:$0xff]  ;;  %v3655_v1 = vld [vmem:[#allocation16] ss:$0 sm:$0xff]  ;;  %v3673_v32 = vld [vmem:[#allocation19 + $0x1] ss:$0 sm:$0xff]  ;;  %p5081_p6 = pnand %p5080_p5, %p6203_p7 }
 0x23b   : > { %4111 = vmatprep.subr.bf16.mxu1 %v4110_v28  ;;  %4127 = vmatprep.subr.bf16.mxu0 %v4126_v31  ;;  %v1569_v20 = vld [vmem:[#allocation17 + $0x38] sm:$0xff]  ;;  %s5083_s27 = sshll.u32 %s5206_s30, 4  ;;  %s5084_s27 = int_to_ptr.vmem [resolvable:$false] %s5083_s27 }
 0x23c   : > { %s6044_s29 = scalar_lea.hbm %s6202_s1, %s3735_s23  ;;  %p5082_p9 = pneg %p5081_p6 }
 0x23d   : > { %4113 = vmatpush3.bf16.msra.mxu1 %v4110_v28  ;;  %v3667_v28 = vld [vmem:[#allocation13 + $0x1] ss:$0 sm:$0xff]  ;;  %s5085_s5 = scalar_lea.vmem %s5084_s27, 512  ;;  %p5086_p4 = scmp.lt.s32.totalorder %s6046_s18, %s5084_s27 }
 0x23e   : > { %891 = vadd.xlane.f32.xlu0 %v890_v9  ;;  %4129 = vmatpush3.bf16.msra.mxu0 %v4126_v31  ;;  %p5087_p1 = scmp.lt.s32.totalorder %s5085_s5, %s5079_s2 }
 0x23f   : > { %4115 = vmatprep.subr.bf16.mxu1 %v4114_v34 }
 0x240   : > { %p5088_p13 = por %p5087_p1, %p5086_p4 }
 0x242   : > { %p5089_p0 = pnand %p5088_p13, %p5082_p9 }
 0x2c7   : > { %v889_v10 = vpop.xlane.xlu0 %888 }
 0x2c8   : > { %v894_v11 = vmul.f32 0.03125, %v889_v10 }
 0x2ca   : > { %v896_v12 = vsub.f32 %v884_v6, %v894_v11  ;;  %v1390_v6 = vld [vmem:[#allocation11 + $0x20] sm:$0xff] }
 0x2cb   : > { %v892_v13 = vpop.xlane.xlu0 %891 }
 0x2cc   : > { %v895_v14 = vmul.f32 0.03125, %v892_v13  ;;  %v898_v15 = vmul.f32 %v896_v12, %v896_v12  ;;  %v1393_v13 = vld [vmem:[#allocation11 + $0x38] sm:$0xff] }
 0x2ce   : > { %v897_v16 = vsub.f32 %v885_v7, %v895_v14  ;;  %v900_v17 = vsel %vm886_vm0, %v898_v15, 0.0  ;;  %v1391_v7 = vld [vmem:[#allocation11 + $0x28] sm:$0xff] }
 0x2cf   : > { %901 = vadd.xlane.f32.xlu1 %v900_v17  ;;  %v4140_v11 = vpack.c.bf16 %v1391_v7, %v1390_v6  ;;  %v1567_v17 = vld [vmem:[#allocation17 + $0x28] sm:$0xff] }
 0x2d0   : > { %v899_v18 = vmul.f32 %v897_v16, %v897_v16 }
 0x2d2   : > { %v903_v19 = vsel %vm886_vm0, %v899_v18, 0.0 }
 0x2d3   : > { %904 = vadd.xlane.f32.xlu1 %v903_v19  ;;  %v1568_v19 = vld [vmem:[#allocation17 + $0x30] sm:$0xff] }
 0x2d4   : > { %v4160_v21 = vpack.c.bf16 %v1569_v20, %v1568_v19 }
 0x35c   : > { %v902_v35 = vpop.xlane.xlu1 %901 }
 0x35d   : > { %v906_v36 = vmul.f32 0.03125, %v902_v35 }
 0x35f   : > { %v908_v37 = vadd.f32 1e-05, %v906_v36 }
 0x360   : > { %v905_v38 = vpop.xlane.xlu1 %904 }
 0x361   : > { %4505 = vrsqrt.f32 %v908_v37  ;;  %v907_v39 = vmul.f32 0.03125, %v905_v38 }
 0x363   : > { %v909_v40 = vadd.f32 1e-05, %v907_v39 }
 0x365   : > { %4507 = vrsqrt.f32 %v909_v40 }
 0x36b   : > { %v4506_v41 = vpop.eup %4505 }
 0x36c   : > { %v912_v43 = vmul.f32 %v4506_v41, %v896_v12  ;;  %v1392_v12 = vld [vmem:[#allocation11 + $0x30] sm:$0xff] }
 0x36d   : > { %v4144_v15 = vpack.c.bf16 %v1393_v13, %v1392_v12 }
 0x36e   : > { %v920_v45 = vmul.f32 %v5891_v42, %v912_v43 }
 0x36f   : > { %v4508_v46 = vpop.eup %4507 }
 0x370   : > { %v5897_v47 = vadd.f32 %v5893_v44, %v920_v45  ;;  %v913_v48 = vmul.f32 %v4508_v46, %v897_v16  ;;  %v1566_v16 = vld [vmem:[#allocation17 + $0x20] sm:$0xff] }
 0x371   : > { %v4156_v18 = vpack.c.bf16 %v1567_v17, %v1566_v16 }
 0x372   : > { %v921_v51 = vmul.f32 %v5891_v42, %v913_v48  ;;  %3876 = vmatprep.mubr.msk.f32.mxu1 %vm886_vm0, %v5897_v47  ;;  %3898 = vmatprep.mubr.msk.f32.mxu0 %vm886_vm0, %v5897_v47 }
 0x374   : > { %v5905_v52 = vadd.f32 %v5893_v44, %v921_v51  ;;  %v1478_v51 = vld [vmem:[#allocation14 + $0x20] sm:$0xff] }
 0x376   : > { %3877 = vmatmul.mubr.msk.f32.vlgmr.msra.gmra.mrb[0].mxu1 %vm886_vm0, %v5905_v52  ;;  %3899 = vmatmul.mubr.msk.f32.vlgmr.msra.gmra.mrb[0].mxu0 %vm886_vm0, %v5905_v52 }
 0x377   : > { %4117 = vmatpush3.bf16.msra.mxu1 %v4114_v34  ;;  %3887 = vmatprep.mubr.msk.f32.mxu1 %vm886_vm0, %v5897_v47 }
 0x378   : > { %4119 = vmatprep.subr.bf16.mxu1 %v4118_v53 }
 0x37b   : > { %4121 = vmatpush3.bf16.msra.mxu1 %v4118_v53  ;;  %v1479_v53 = vld [vmem:[#allocation14 + $0x28] sm:$0xff] }
 0x37e   : > { %3888 = vmatmul.mubr.msk.f32.vlgmr.msra.gmra.mrb[2].mxu1 %vm886_vm0, %v5905_v52 }
 0x449   : > { %v3878_v56 = vpop.f32.mrb[0].mxu1  ;;  %v3900_v57 = vpop.f32.mrb[0].mxu0 }
 0x44a   : > { %v1191_v58 = vadd.f32 %v3900_v57, %v3658_v54  ;;  %v1013_v59 = vpop.f32.mrb[1].mxu1  ;;  %v1185_v60 = vpop.f32.mrb[1].mxu0  ;;  %v1019_v14 = vadd.f32 %v3878_v56, %v3652_v55 }
 0x44b   : > { %v1014_v61 = vadd.f32 %v3652_v55, %v1013_v59  ;;  %v1186_v62 = vadd.f32 %v3658_v54, %v1185_v60  ;;  %v4148_v54 = vpack.c.bf16 %v1479_v53, %v1478_v51  ;;  %v1481_v59 = vld [vmem:[#allocation14 + $0x38] sm:$0xff]  ;;  %v2098_v51 = vld [vmem:[#allocation14 + $0x40] sm:$0xff]  ;;  %v2099_v53 = vld [vmem:[#allocation14 + $0x48] sm:$0xff] }
 0x44d   : > { %v4136_v63 = vpack.c.bf16 %v1191_v58, %v1186_v62  ;;  %3905 = vmatprep.mubr.msk.f32.mxu1 %vm1194_vm1, %v1014_v61  ;;  %v1480_v58 = vld [vmem:[#allocation14 + $0x30] sm:$0xff] }
 0x44f   : > { %4137 = vmatprep.subr.bf16.mxu0 %v4136_v63 }
 0x450   : > { %4139 = vmatpush3.bf16.msra.mxu0 %v4136_v63  ;;  %v4152_v63 = vpack.c.bf16 %v1481_v59, %v1480_v58  ;;  %v2100_v58 = vld [vmem:[#allocation14 + $0x50] sm:$0xff]  ;;  %v2101_v59 = vld [vmem:[#allocation14 + $0x58] sm:$0xff] }
 0x451   : > { %v3889_v2 = vpop.f32.mrb[2].mxu1  ;;  %4149 = vmatprep.subr.bf16.mxu0 %v4148_v54 }
 0x452   : > { %v1105_v3 = vadd.f32 %v3889_v2, %v3655_v1  ;;  %v1099_v5 = vpop.f32.mrb[3].mxu1 }
 0x453   : > { %v1100_v8 = vadd.f32 %v3655_v1, %v1099_v5  ;;  %v3670_v5 = vld [vmem:[#allocation16 + $0x1] ss:$0 sm:$0xff] }
 0x455   : > { %v4130_v10 = vpack.c.bf16 %v1105_v3, %v1100_v8 }
 0x457   : > { %4132 = vmatprep.subr.msk.bf16.mxu1 %vm5918_vm2, %v4130_v10 }
 0x458   : > { %4135 = vmatpush3.bf16.xpose.msk.msra.mxu1 %vm5918_vm2, %v4130_v10 }
 0x459   : > { %4141 = vmatprep.subr.bf16.mxu1 %v4140_v11 }
 0x45f   : > { %3906 = vmatmul.mubr.msk.f32.vlgmr.msra.gmra.mrb[4].mxu1 %vm1194_vm1, %v1019_v14 }
 0x460   : > { %4143 = vmatpush3.bf16.msra.mxu1 %v4140_v11  ;;  %3923 = vmatprep.mubr.msk.f32.mxu1 %vm886_vm0, %v5897_v47 }
 0x461   : > { %4145 = vmatprep.subr.bf16.mxu1 %v4144_v15 }
 0x464   : > { %4147 = vmatpush3.bf16.msra.mxu1 %v4144_v15 }
 0x465   : > { %4157 = vmatprep.subr.bf16.mxu1 %v4156_v18 }
 0x467   : > { %3924 = vmatmul.mubr.msk.f32.vlgmr.msra.gmra.mrb[6].mxu1 %vm886_vm0, %v5905_v52 }
 0x468   : > { %4159 = vmatpush3.bf16.msra.mxu1 %v4156_v18  ;;  %3945 = vmatprep.mubr.msk.f32.mxu1 %vm886_vm0, %v5897_v47 }
 0x469   : > { %4161 = vmatprep.subr.bf16.mxu1 %v4160_v21 }
 0x46c   : > { %4163 = vmatpush3.bf16.msra.mxu1 %v4160_v21 }
 0x46f   : > { %3946 = vmatmul.mubr.msk.f32.vlgmr.msra.gmra.mrb[8].mxu1 %vm886_vm0, %v5905_v52 }
 0x532   : > { %v3907_v22 = vpop.f32.mrb[4].mxu1 }
 0x533   : > { %v1283_v23 = vmul.f32 0.35355338, %v3907_v22  ;;  %v1273_v24 = vpop.f32.mrb[5].mxu1 }
 0x534   : > { %v1282_v25 = vmul.f32 0.35355338, %v1273_v24 }
 0x535   : > { %v1288_v26 = vsel %vm1284_vm3, %v1283_v23, -inf }
 0x536   : > { %1289 = vmax.xlane.f32.xlu1 %v1288_v26  ;;  %v1285_v27 = vsel %vm1284_vm3, %v1282_v25, -inf }
 0x537   : > { %1286 = vmax.xlane.f32.xlu0 %v1285_v27 }
 0x53a   : > { %v3925_v29 = vpop.f32.mrb[6].mxu1 }
 0x53b   : > { %v1474_v30 = vadd.f32 %v3925_v29, %v3667_v28  ;;  %v1468_v31 = vpop.f32.mrb[7].mxu1  ;;  %v2011_v29 = vld [vmem:[#allocation11 + $0x48] sm:$0xff] }
 0x53c   : > { %v1469_v1 = vadd.f32 %v3667_v28, %v1468_v31  ;;  %v2010_v28 = vld [vmem:[#allocation11 + $0x40] sm:$0xff]  ;;  %v1846_v31 = vld [vmem:[#allocation20 + $0x8] sm:$0xff] }
 0x542   : > { %v3947_v33 = vpop.f32.mrb[8].mxu1 }
 0x543   : > { %v1650_v34 = vadd.f32 %v3947_v33, %v3673_v32  ;;  %v1644_v35 = vpop.f32.mrb[9].mxu1 }
 0x544   : > { %v1645_v36 = vadd.f32 %v3673_v32, %v1644_v35  ;;  %v2012_v35 = vld [vmem:[#allocation11 + $0x50] sm:$0xff] }
 0x546   : > { %v4170_v37 = vpack.c.bf16 %v1650_v34, %v1645_v36  ;;  %v2013_v36 = vld [vmem:[#allocation11 + $0x58] sm:$0xff] }
 0x548   : > { %4171 = vmatprep.subr.bf16.mxu1 %v4170_v37 }
 0x549   : > { %4173 = vmatpush3.bf16.msra.mxu1 %v4170_v37 }
 0x5c3   : > { %v1290_v38 = vpop.xlane.xlu1 %1289 }
 0x5c4   : > { %v1292_v39 = vsub.f32 %v1283_v23, %v1290_v38  ;;  %v1287_v40 = vpop.xlane.xlu0 %1286 }
 0x5c5   : > { %v1291_v41 = vsub.f32 %v1282_v25, %v1287_v40  ;;  %v4178_v40 = vpack.c.bf16 %v2013_v36, %v2012_v35  ;;  %v2466_v35 = vld [vmem:[#allocation20 + $0x10] sm:$0xff] }
 0x5c6   : > { %v1295_v43 = vmul.f32 1.442695, %v1292_v39 }
 0x5c7   : > { %v1293_v45 = vmul.f32 1.442695, %v1291_v41  ;;  %v2186_v41 = vld [vmem:[#allocation17 + $0x40] sm:$0xff] }
 0x5c8   : > { %4509 = vpow2.f32 %v1295_v43  ;;  %v2187_v43 = vld [vmem:[#allocation17 + $0x48] sm:$0xff] }
 0x5c9   : > { %4511 = vpow2.f32 %v1293_v45  ;;  %v4190_v45 = vpack.c.bf16 %v2187_v43, %v2186_v41 }
 0x5d2   : > { %v4510_v46 = vpop.eup %4509 }
 0x5d3   : > { %v4512_v48 = vpop.eup %4511  ;;  %v1300_v49 = vsel %vm1284_vm3, %v4510_v46, 0.0 }
 0x5d4   : > { %1301 = vadd.xlane.f32.xlu1 %v1300_v49  ;;  %v1297_v50 = vsel %vm1284_vm3, %v4512_v48, 0.0 }
 0x5d5   : > { %1298 = vadd.xlane.f32.xlu0 %v1297_v50  ;;  %v1388_v50 = vld [vmem:[#allocation20] sm:$0xff] }
 0x661   : > { %v1302_v55 = vpop.xlane.xlu1 %1301 }
 0x662   : > { %4513 = vrcp.f32 %v1302_v55  ;;  %v1299_v56 = vpop.xlane.xlu0 %1298 }
 0x663   : > { %4515 = vrcp.f32 %v1299_v56  ;;  %v4182_v56 = vpack.c.bf16 %v2099_v53, %v2098_v51  ;;  %v2729_v51 = vld [vmem:[#allocation17 + $0x70] sm:$0xff]  ;;  %v2730_v53 = vld [vmem:[#allocation17 + $0x78] sm:$0xff] }
 0x66c   : > { %v4514_v57 = vpop.eup %4513 }
 0x66d   : > { %v4516_v60 = vpop.eup %4515  ;;  %v1306_v62 = vmul.f32 %v4514_v57, %v4510_v46  ;;  %v2188_v46 = vld [vmem:[#allocation17 + $0x50] sm:$0xff]  ;;  %v3686_v57 = vld [vmem:[#allocation13 + $0x2] ss:$0 sm:$0xff] }
 0x66e   : > { %v1305_v61 = vmul.f32 %v4516_v60, %v4512_v48  ;;  %v2189_v48 = vld [vmem:[#allocation17 + $0x58] sm:$0xff] }
 0x66f   : > { %v4194_v49 = vpack.c.bf16 %v2189_v48, %v2188_v46  ;;  %v2727_v48 = vld [vmem:[#allocation17 + $0x60] sm:$0xff] }
 0x670   : > { %3912 = vmatprep.mubr.msk.f32.mxu0 %vm1284_vm3, %v1305_v61 }
 0x671   : > { %3913 = vmatmul.mubr.msk.f32.vlgmr.msra.gmra.mrb[2].mxu0 %vm1284_vm3, %v1306_v62 }
 0x672   : > { %4151 = vmatpush3.bf16.msra.mxu0 %v4148_v54  ;;  %3934 = vmatprep.mubr.msk.f32.mxu0 %vm886_vm0, %v5897_v47 }
 0x673   : > { %4153 = vmatprep.subr.bf16.mxu0 %v4152_v63 }
 0x676   : > { %4155 = vmatpush3.bf16.msra.mxu0 %v4152_v63  ;;  %v4186_v63 = vpack.c.bf16 %v2101_v59, %v2100_v58  ;;  %v2641_v58 = vld [vmem:[#allocation14 + $0x70] sm:$0xff]  ;;  %v2642_v59 = vld [vmem:[#allocation14 + $0x78] sm:$0xff] }
 0x679   : > { %3935 = vmatmul.mubr.msk.f32.vlgmr.msra.gmra.mrb[4].mxu0 %vm886_vm0, %v5905_v52 }
 0x67a   : > { %3952 = vmatprep.mubr.msk.f32.mxu0 %vm1194_vm1, %v1469_v1  ;;  %v3692_v1 = vld [vmem:[#allocation19 + $0x2] ss:$0 sm:$0xff] }
 0x744   : > { %v5946_v2 = vpop.f32.mrb[2].mxu0 }
 0x745   : > { %v5948_v3 = vpop.f32.mrb[3].mxu0 }
 0x74c   : > { %v3936_v6 = vpop.f32.mrb[4].mxu0 }
 0x74d   : > { %v1562_v7 = vadd.f32 %v3936_v6, %v3670_v5  ;;  %v1556_v8 = vpop.f32.mrb[5].mxu0 }
 0x74e   : > { %v1557_v10 = vadd.f32 %v3670_v5, %v1556_v8 }
 0x750   : > { %v4164_v11 = vpack.c.bf16 %v1562_v7, %v1557_v10 }
 0x752   : > { %4166 = vmatprep.subr.msk.bf16.mxu0 %vm5918_vm2, %v4164_v11 }
 0x753   : > { %4169 = vmatpush3.bf16.xpose.msk.msra.mxu0 %vm5918_vm2, %v4164_v11 }
 0x754   : > { %3962 = vmatprep.subr.mxu0 %v1846_v31 }
 0x75a   : > { %3953 = vmatmul.mubr.msk.f32.vlgmr.msra.gmra.mrb[6].mxu0 %vm1194_vm1, %v1474_v30  ;;  %v4174_v30 = vpack.c.bf16 %v2011_v29, %v2010_v28 }
 0x75b   : > { %3963 = vmatpush3.msra.mxu0 %v1846_v31 }
 0x75c   : > { %4175 = vmatprep.subr.bf16.mxu1 %v4174_v30  ;;  %3967 = vmatprep.subr.mxu0 %v1388_v50 }
 0x82d   : > { %v3954_v12 = vpop.f32.mrb[6].mxu0 }
 0x82e   : > { %v1741_v13 = vmul.f32 0.35355338, %v3954_v12  ;;  %v1731_v14 = vpop.f32.mrb[7].mxu0 }
 0x82f   : > { %v1740_v15 = vmul.f32 0.35355338, %v1731_v14 }
 0x830   : > { %v1745_v16 = vsel %vm1284_vm3, %v1741_v13, -inf }
 0x831   : > { %1746 = vmax.xlane.f32.xlu1 %v1745_v16  ;;  %v1742_v17 = vsel %vm1284_vm3, %v1740_v15, -inf }
 0x832   : > { %1743 = vmax.xlane.f32.xlu0 %v1742_v17 }
 0x8be   : > { %v1747_v18 = vpop.xlane.xlu1 %1746 }
 0x8bf   : > { %v1749_v19 = vsub.f32 %v1741_v13, %v1747_v18  ;;  %v1744_v20 = vpop.xlane.xlu0 %1743 }
 0x8c0   : > { %v1748_v21 = vsub.f32 %v1740_v15, %v1744_v20 }
 0x8c1   : > { %v1752_v22 = vmul.f32 1.442695, %v1749_v19 }
 0x8c2   : > { %v1750_v23 = vmul.f32 1.442695, %v1748_v21 }
 0x8c3   : > { %4517 = vpow2.f32 %v1752_v22 }
 0x8c4   : > { %4519 = vpow2.f32 %v1750_v23 }
 0x8cd   : > { %v4518_v24 = vpop.eup %4517 }
 0x8ce   : > { %v4520_v25 = vpop.eup %4519  ;;  %v1757_v26 = vsel %vm1284_vm3, %v4518_v24, 0.0 }
 0x8cf   : > { %1758 = vadd.xlane.f32.xlu1 %v1757_v26  ;;  %v1754_v27 = vsel %vm1284_vm3, %v4520_v25, 0.0 }
 0x8d0   : > { %1755 = vadd.xlane.f32.xlu0 %v1754_v27 }
 0x95c   : > { %v1759_v32 = vpop.xlane.xlu1 %1758 }
 0x95d   : > { %4521 = vrcp.f32 %v1759_v32  ;;  %v1756_v33 = vpop.xlane.xlu0 %1755  ;;  %v2551_v32 = vld [vmem:[#allocation11 + $0x60] sm:$0xff] }
 0x95e   : > { %4523 = vrcp.f32 %v1756_v33  ;;  %v2552_v33 = vld [vmem:[#allocation11 + $0x68] sm:$0xff] }
 0x967   : > { %v4522_v34 = vpop.eup %4521 }
 0x968   : > { %v4524_v37 = vpop.eup %4523  ;;  %v1763_v39 = vmul.f32 %v4522_v34, %v4518_v24  ;;  %v4208_v34 = vpack.c.bf16 %v2552_v33, %v2551_v32  ;;  %v3007_v32 = vld [vmem:[#allocation20 + $0x18] sm:$0xff] }
 0x969   : > { %v1762_v38 = vmul.f32 %v4524_v37, %v4520_v25 }
 0x96b   : > { %3959 = vmatprep.mubr.msk.f32.mxu1 %vm1284_vm3, %v1762_v38 }
 0x96c   : > { %3960 = vmatmul.mubr.msk.f32.vlgmr.msra.gmra.mrb[10].mxu1 %vm1284_vm3, %v1763_v39  ;;  %v2553_v39 = vld [vmem:[#allocation11 + $0x70] sm:$0xff] }
 0x96d   : > { %4177 = vmatpush3.bf16.msra.mxu1 %v4174_v30  ;;  %3980 = vmatprep.mubr.msk.f32.mxu1 %vm886_vm0, %v5897_v47 }
 0x96e   : > { %4179 = vmatprep.subr.bf16.mxu1 %v4178_v40 }
 0x971   : > { %4181 = vmatpush3.bf16.msra.mxu1 %v4178_v40  ;;  %v2554_v40 = vld [vmem:[#allocation11 + $0x78] sm:$0xff] }
 0x972   : > { %4191 = vmatprep.subr.bf16.mxu1 %v4190_v45  ;;  %v4212_v46 = vpack.c.bf16 %v2554_v40, %v2553_v39 }
 0x974   : > { %3981 = vmatmul.mubr.msk.f32.vlgmr.msra.gmra.mrb[12].mxu1 %vm886_vm0, %v5905_v52 }
 0x975   : > { %4193 = vmatpush3.bf16.msra.mxu1 %v4190_v45  ;;  %4002 = vmatprep.mubr.msk.f32.mxu1 %vm886_vm0, %v5897_v47 }
 0x976   : > { %4195 = vmatprep.subr.bf16.mxu1 %v4194_v49 }
 0x979   : > { %4197 = vmatpush3.bf16.msra.mxu1 %v4194_v49  ;;  %v2728_v49 = vld [vmem:[#allocation17 + $0x68] sm:$0xff] }
 0x97c   : > { %4003 = vmatmul.mubr.msk.f32.vlgmr.msra.gmra.mrb[14].mxu1 %vm886_vm0, %v5905_v52 }
 0xa3f   : > { %v3961_v54 = vpop.f32.mrb[10].mxu1 }
 0xa40   : > { %v1836_v55 = vpop.f32.mrb[11].mxu1 }
 0xa41   : > { %3964 = vmatprep.mubr.msk.f32.mxu0 %vm1194_vm1, %v1836_v55  ;;  %v2639_v55 = vld [vmem:[#allocation14 + $0x60] sm:$0xff] }
 0xa42   : > { %3965 = vmatmul.mubr.msk.f32.vlgmr.msra.gmra.mrb[8].mxu0 %vm1194_vm1, %v3961_v54  ;;  %v4228_v54 = vpack.c.bf16 %v2730_v53, %v2729_v51  ;;  %v3722_v53 = vld [vmem:[#allocation25] ss:$0 sm:$0xff] }
 0xa43   : > { %3968 = vmatpush3.msra.mxu0 %v1388_v50  ;;  %3969 = vmatprep.mubr.msk.f32.mxu0 %vm1194_vm1, %v5948_v3  ;;  %v4224_v50 = vpack.c.bf16 %v2728_v49, %v2727_v48  ;;  %v3721_v49 = vld [vmem:[#allocation23] ss:$0 sm:$0xff] }
 0xa44   : > { %4183 = vmatprep.subr.bf16.mxu0 %v4182_v56 }
 0xa47   : > { %v3982_v60 = vpop.f32.mrb[12].mxu1 }
 0xa48   : > { %v2094_v61 = vadd.f32 %v3982_v60, %v3686_v57  ;;  %v2088_v62 = vpop.f32.mrb[13].mxu1 }
 0xa49   : > { %v2089_v7 = vadd.f32 %v3686_v57, %v2088_v62  ;;  %v4220_v62 = vpack.c.bf16 %v2642_v59, %v2641_v58 }
 0xa4a   : > { %3970 = vmatmul.mubr.msk.f32.vlgmr.msra.gmra.mrb[8].mxu0 %vm1194_vm1, %v5946_v2  ;;  %v3689_v2 = vld [vmem:[#allocation16 + $0x2] ss:$0 sm:$0xff] }
 0xa4b   : > { %4185 = vmatpush3.bf16.msra.mxu0 %v4182_v56  ;;  %3991 = vmatprep.mubr.msk.f32.mxu0 %vm886_vm0, %v5897_v47  ;;  %v2640_v56 = vld [vmem:[#allocation14 + $0x68] sm:$0xff] }
 0xa4c   : > { %4187 = vmatprep.subr.bf16.mxu0 %v4186_v63  ;;  %v4216_v57 = vpack.c.bf16 %v2640_v56, %v2639_v55 }
 0xa4f   : > { %4189 = vmatpush3.bf16.msra.mxu0 %v4186_v63  ;;  %v4004_v5 = vpop.f32.mrb[14].mxu1  ;;  %v3703_v63 = vld [vmem:[#allocation13 + $0x3] ss:$0 sm:$0xff] }
 0xa50   : > { %v2270_v3 = vadd.f32 %v4004_v5, %v3692_v1  ;;  %v2264_v6 = vpop.f32.mrb[15].mxu1 }
 0xa51   : > { %v2265_v8 = vadd.f32 %v3692_v1, %v2264_v6 }
 0xa52   : > { %3992 = vmatmul.mubr.msk.f32.vlgmr.msra.gmra.mrb[10].mxu0 %vm886_vm0, %v5905_v52 }
 0xa53   : > { %v4204_v10 = vpack.c.bf16 %v2270_v3, %v2265_v8  ;;  %4009 = vmatprep.mubr.msk.f32.mxu0 %vm1194_vm1, %v2089_v7  ;;  %v3709_v7 = vld [vmem:[#allocation19 + $0x3] ss:$0 sm:$0xff] }
 0xa55   : > { %4205 = vmatprep.subr.bf16.mxu1 %v4204_v10 }
 0xa56   : > { %4207 = vmatpush3.bf16.msra.mxu1 %v4204_v10 }
 0xa57   : > { %4209 = vmatprep.subr.bf16.mxu1 %v4208_v34 }
 0xb25   : > { %v3993_v11 = vpop.f32.mrb[10].mxu0 }
 0xb26   : > { %v2182_v12 = vadd.f32 %v3993_v11, %v3689_v2  ;;  %v2176_v13 = vpop.f32.mrb[11].mxu0 }
 0xb27   : > { %v2177_v14 = vadd.f32 %v3689_v2, %v2176_v13 }
 0xb29   : > { %v4198_v15 = vpack.c.bf16 %v2182_v12, %v2177_v14 }
 0xb2b   : > { %4200 = vmatprep.subr.msk.bf16.mxu0 %vm5918_vm2, %v4198_v15 }
 0xb2c   : > { %4203 = vmatpush3.bf16.xpose.msk.msra.mxu0 %vm5918_vm2, %v4198_v15 }
 0xb2d   : > { %4019 = vmatprep.subr.mxu0 %v2466_v35 }
 0xb33   : > { %4010 = vmatmul.mubr.msk.f32.vlgmr.msra.gmra.mrb[12].mxu0 %vm1194_vm1, %v2094_v61 }
 0xb34   : > { %4020 = vmatpush3.msra.mxu0 %v2466_v35 }
 0xb35   : > { %4217 = vmatprep.subr.bf16.mxu0 %v4216_v57 }
 0xc06   : > { %v4011_v16 = vpop.f32.mrb[12].mxu0 }
 0xc07   : > { %v2361_v17 = vmul.f32 0.35355338, %v4011_v16  ;;  %v2351_v18 = vpop.f32.mrb[13].mxu0 }
 0xc08   : > { %v2360_v19 = vmul.f32 0.35355338, %v2351_v18 }
 0xc09   : > { %v2365_v20 = vsel %vm1284_vm3, %v2361_v17, -inf }
 0xc0a   : > { %2366 = vmax.xlane.f32.xlu1 %v2365_v20  ;;  %v2362_v21 = vsel %vm1284_vm3, %v2360_v19, -inf }
 0xc0b   : > { %2363 = vmax.xlane.f32.xlu0 %v2362_v21 }
 0xc97   : > { %v2367_v22 = vpop.xlane.xlu1 %2366 }
 0xc98   : > { %v2369_v23 = vsub.f32 %v2361_v17, %v2367_v22  ;;  %v2364_v24 = vpop.xlane.xlu0 %2363 }
 0xc99   : > { %v2368_v25 = vsub.f32 %v2360_v19, %v2364_v24 }
 0xc9a   : > { %v2372_v26 = vmul.f32 1.442695, %v2369_v23 }
 0xc9b   : > { %v2370_v27 = vmul.f32 1.442695, %v2368_v25 }
 0xc9c   : > { %4525 = vpow2.f32 %v2372_v26 }
 0xc9d   : > { %4527 = vpow2.f32 %v2370_v27 }
 0xca6   : > { %v4526_v28 = vpop.eup %4525 }
 0xca7   : > { %v4528_v29 = vpop.eup %4527  ;;  %v2377_v30 = vsel %vm1284_vm3, %v4526_v28, 0.0 }
 0xca8   : > { %2378 = vadd.xlane.f32.xlu1 %v2377_v30  ;;  %v2374_v31 = vsel %vm1284_vm3, %v4528_v29, 0.0 }
 0xca9   : > { %2375 = vadd.xlane.f32.xlu0 %v2374_v31 }
 0xd35   : > { %v2379_v36 = vpop.xlane.xlu1 %2378 }
 0xd36   : > { %4529 = vrcp.f32 %v2379_v36  ;;  %v2376_v37 = vpop.xlane.xlu0 %2375 }
 0xd37   : > { %4531 = vrcp.f32 %v2376_v37 }
 0xd40   : > { %v4530_v38 = vpop.eup %4529 }
 0xd41   : > { %v4532_v41 = vpop.eup %4531  ;;  %v2383_v45 = vmul.f32 %v4530_v38, %v4526_v28 }
 0xd42   : > { %v2382_v43 = vmul.f32 %v4532_v41, %v4528_v29 }
 0xd44   : > { %4016 = vmatprep.mubr.msk.f32.mxu1 %vm1284_vm3, %v2382_v43  ;;  %v3720_v43 = vld [vmem:[#allocation22] ss:$0 sm:$0xff] }
 0xd45   : > { %4017 = vmatmul.mubr.msk.f32.vlgmr.msra.gmra.mrb[16].mxu1 %vm1284_vm3, %v2383_v45 }
 0xd46   : > { %4211 = vmatpush3.bf16.msra.mxu1 %v4208_v34  ;;  %4032 = vmatprep.mubr.msk.f32.mxu1 %vm886_vm0, %v5897_v47 }
 0xd47   : > { %4213 = vmatprep.subr.bf16.mxu1 %v4212_v46 }
 0xd4a   : > { %4215 = vmatpush3.bf16.msra.mxu1 %v4212_v46 }
 0xd4b   : > { %4225 = vmatprep.subr.bf16.mxu1 %v4224_v50 }
 0xd4d   : > { %4033 = vmatmul.mubr.msk.f32.vlgmr.msra.gmra.mrb[18].mxu1 %vm886_vm0, %v5905_v52 }
 0xd4e   : > { %4227 = vmatpush3.bf16.msra.mxu1 %v4224_v50  ;;  %4054 = vmatprep.mubr.msk.f32.mxu1 %vm886_vm0, %v5897_v47 }
 0xd4f   : > { %4229 = vmatprep.subr.bf16.mxu1 %v4228_v54 }
 0xd52   : > { %4231 = vmatpush3.bf16.msra.mxu1 %v4228_v54 }
 0xd55   : > { %4055 = vmatmul.mubr.msk.f32.vlgmr.msra.gmra.mrb[20].mxu1 %vm886_vm0, %v5905_v52 }
 0xe18   : > { %v4018_v60 = vpop.f32.mrb[16].mxu1 }
 0xe19   : > { %v2456_v61 = vpop.f32.mrb[17].mxu1 }
 0xe1a   : > { %4021 = vmatprep.mubr.msk.f32.mxu0 %vm1194_vm1, %v2456_v61 }
 0xe1b   : > { %4022 = vmatmul.mubr.msk.f32.vlgmr.msra.gmra.mrb[8].mxu0 %vm1194_vm1, %v4018_v60 }
 0xe1c   : > { %4219 = vmatpush3.bf16.msra.mxu0 %v4216_v57  ;;  %4043 = vmatprep.mubr.msk.f32.mxu0 %vm886_vm0, %v5897_v47  ;;  %v3706_v47 = vld [vmem:[#allocation16 + $0x3] ss:$0 sm:$0xff] }
 0xe1d   : > { %4221 = vmatprep.subr.bf16.mxu0 %v4220_v62 }
 0xe20   : > { %v4034_v1 = vpop.f32.mrb[18].mxu1  ;;  %4223 = vmatpush3.bf16.msra.mxu0 %v4220_v62 }
 0xe21   : > { %v2635_v5 = vadd.f32 %v4034_v1, %v3703_v63  ;;  %v2629_v3 = vpop.f32.mrb[19].mxu1 }
 0xe22   : > { %v2630_v6 = vadd.f32 %v3703_v63, %v2629_v3 }
 0xe23   : > { %4044 = vmatmul.mubr.msk.f32.vlgmr.msra.gmra.mrb[14].mxu0 %vm886_vm0, %v5905_v52 }
 0xe24   : > { %4061 = vmatprep.mubr.msk.f32.mxu0 %vm1194_vm1, %v2630_v6 }
 0xe28   : > { %v4056_v8 = vpop.f32.mrb[20].mxu1 }
 0xe29   : > { %v2811_v10 = vadd.f32 %v4056_v8, %v3709_v7  ;;  %v2805_v2 = vpop.f32.mrb[21].mxu1  ;;  %v3151_v8 = vld [vmem:[#allocation26 + $0x8] sm:$0xff] }
 0xe2a   : > { %v2806_v11 = vadd.f32 %v3709_v7, %v2805_v2  ;;  %v3150_v7 = vld [vmem:[#allocation26] sm:$0xff]  ;;  %v3152_v2 = vld [vmem:[#allocation26 + $0x10] sm:$0xff] }
 0xe2c   : > { %v4238_v12 = vpack.c.bf16 %v2811_v10, %v2806_v11  ;;  %v4242_v10 = vpack.c.bf16 %v3151_v8, %v3150_v7  ;;  %v3153_v11 = vld [vmem:[#allocation26 + $0x18] sm:$0xff] }
 0xe2e   : > { %4239 = vmatprep.subr.bf16.mxu1 %v4238_v12 }
 0xe2f   : > { %4241 = vmatpush3.bf16.msra.mxu1 %v4238_v12  ;;  %v4246_v12 = vpack.c.bf16 %v3153_v11, %v3152_v2 }
 0xe30   : > { %4243 = vmatprep.subr.bf16.mxu1 %v4242_v10 }
 0xef6   : > { %v4045_v13 = vpop.f32.mrb[14].mxu0 }
 0xef7   : > { %v2723_v14 = vadd.f32 %v4045_v13, %v3706_v47  ;;  %v2717_v15 = vpop.f32.mrb[15].mxu0  ;;  %v3245_v13 = vld [vmem:[#allocation29 + $0x8] sm:$0xff] }
 0xef8   : > { %v2718_v16 = vadd.f32 %v3706_v47, %v2717_v15  ;;  %v3244_v47 = vld [vmem:[#allocation29] sm:$0xff] }
 0xef9   : > { %v4250_v15 = vpack.c.bf16 %v3245_v13, %v3244_v47 }
 0xefa   : > { %v4232_v17 = vpack.c.bf16 %v2723_v14, %v2718_v16  ;;  %v3246_v14 = vld [vmem:[#allocation29 + $0x10] sm:$0xff]  ;;  %v3247_v16 = vld [vmem:[#allocation29 + $0x18] sm:$0xff] }
 0xefc   : > { %4234 = vmatprep.subr.msk.bf16.mxu0 %vm5918_vm2, %v4232_v17 }
 0xefd   : > { %4237 = vmatpush3.bf16.xpose.msk.msra.mxu0 %vm5918_vm2, %v4232_v17  ;;  %v4254_v17 = vpack.c.bf16 %v3247_v16, %v3246_v14 }
 0xefe   : > { %4071 = vmatprep.subr.mxu0 %v3007_v32 }
 0xf04   : > { %4062 = vmatmul.mubr.msk.f32.vlgmr.msra.gmra.mrb[16].mxu0 %vm1194_vm1, %v2635_v5 }
 0xf05   : > { %4072 = vmatpush3.msra.mxu0 %v3007_v32 }
 0xf06   : > { %4251 = vmatprep.subr.bf16.mxu0 %v4250_v15 }
 0xfd7   : > { %v4063_v52 = vpop.f32.mrb[16].mxu0 }
 0xfd8   : > { %v2902_v18 = vmul.f32 0.35355338, %v4063_v52  ;;  %v2892_v19 = vpop.f32.mrb[17].mxu0  ;;  %v3248_v52 = vld [vmem:[#allocation29 + $0x20] sm:$0xff] }
 0xfd9   : > { %v2901_v20 = vmul.f32 0.35355338, %v2892_v19 }
 0xfda   : > { %v2906_v21 = vsel %vm1284_vm3, %v2902_v18, -inf }
 0xfdb   : > { %2907 = vmax.xlane.f32.xlu1 %v2906_v21  ;;  %v2903_v22 = vsel %vm1284_vm3, %v2901_v20, -inf }
 0xfdc   : > { %2904 = vmax.xlane.f32.xlu0 %v2903_v22 }
0x1068   : > { %v2908_v23 = vpop.xlane.xlu1 %2907 }
0x1069   : > { %v2910_v24 = vsub.f32 %v2902_v18, %v2908_v23  ;;  %v2905_v25 = vpop.xlane.xlu0 %2904  ;;  %v3249_v18 = vld [vmem:[#allocation29 + $0x28] sm:$0xff] }
0x106a   : > { %v2909_v26 = vsub.f32 %v2901_v20, %v2905_v25  ;;  %v4258_v19 = vpack.c.bf16 %v3249_v18, %v3248_v52 }
0x106b   : > { %v2913_v27 = vmul.f32 1.442695, %v2910_v24 }
0x106c   : > { %v2911_v28 = vmul.f32 1.442695, %v2909_v26 }
0x106d   : > { %4533 = vpow2.f32 %v2913_v27 }
0x106e   : > { %4535 = vpow2.f32 %v2911_v28 }
0x1077   : > { %v4534_v9 = vpop.eup %4533 }
0x1078   : > { %v4536_v29 = vpop.eup %4535  ;;  %v2918_v30 = vsel %vm1284_vm3, %v4534_v9, 0.0 }
0x1079   : > { %2919 = vadd.xlane.f32.xlu1 %v2918_v30  ;;  %v2915_v31 = vsel %vm1284_vm3, %v4536_v29, 0.0 }
0x107a   : > { %2916 = vadd.xlane.f32.xlu0 %v2915_v31 }
0x1106   : > { %v2920_v33 = vpop.xlane.xlu1 %2919 }
0x1107   : > { %4537 = vrcp.f32 %v2920_v33  ;;  %v2917_v34 = vpop.xlane.xlu0 %2916  ;;  %v3250_v33 = vld [vmem:[#allocation29 + $0x30] sm:$0xff] }
0x1108   : > { %4539 = vrcp.f32 %v2917_v34  ;;  %v3251_v34 = vld [vmem:[#allocation29 + $0x38] sm:$0xff] }
0x1111   : > { %v4538_v35 = vpop.eup %4537 }
0x1112   : > { %v4540_v36 = vpop.eup %4539  ;;  %v2924_v38 = vmul.f32 %v4538_v35, %v4534_v9  ;;  %v4262_v35 = vpack.c.bf16 %v3251_v34, %v3250_v33 }
0x1113   : > { %v2923_v37 = vmul.f32 %v4540_v36, %v4536_v29  ;;  %v3723_v36 = vld [vmem:[#allocation28] ss:$0 sm:$0xff] }
0x1115   : > { %4068 = vmatprep.mubr.msk.f32.mxu1 %vm1284_vm3, %v2923_v37 }
0x1116   : > { %4069 = vmatmul.mubr.msk.f32.vlgmr.msra.gmra.mrb[22].mxu1 %vm1284_vm3, %v2924_v38 }
0x1117   : > { %4245 = vmatpush3.bf16.msra.mxu1 %v4242_v10 }
0x1118   : > { %4247 = vmatprep.subr.bf16.mxu1 %v4246_v12 }
0x111b   : > { %4249 = vmatpush3.bf16.msra.mxu1 %v4246_v12 }
0x11e9   : > { %v4070_v39 = vpop.f32.mrb[22].mxu1 }
0x11ea   : > { %v2997_v40 = vpop.f32.mrb[23].mxu1 }
0x11eb   : > { %4073 = vmatprep.mubr.msk.f32.mxu0 %vm1194_vm1, %v2997_v40 }
0x11ec   : > { %4074 = vmatmul.mubr.msk.f32.vlgmr.msra.gmra.mrb[8].mxu0 %vm1194_vm1, %v4070_v39 }
0x11ed   : > { %4253 = vmatpush3.bf16.msra.mxu0 %v4250_v15 }
0x11ee   : > { %4255 = vmatprep.subr.bf16.mxu0 %v4254_v17 }
0x11f1   : > { %4257 = vmatpush3.bf16.msra.mxu0 %v4254_v17 }
0x11f2   : > { %4259 = vmatprep.subr.bf16.mxu0 %v4258_v19 }
0x11f5   : > { %4261 = vmatpush3.bf16.msra.mxu0 %v4258_v19 }
0x11f6   : > { %4263 = vmatprep.subr.bf16.mxu0 %v4262_v35 }
0x11f9   : > { %4265 = vmatpush3.bf16.msra.mxu0 %v4262_v35 }
0x12bf   : > { %v4075_v41 = vpop.f32.mrb[8].mxu0 }
0x12c0   : > { %v3092_v45 = vadd.f32 %v4075_v41, %v5884_v4  ;;  %v3080_v46 = vpop.f32.mrb[9].mxu0 }
0x12c1   : > { %v3091_v48 = vadd.f32 %v3080_v46, %v5881_v0 }
0x12c2   : > { %v6021_v50 = vadd.f32 %v3720_v43, %v3092_v45 }
0x12c3   : > { %v6023_v51 = vadd.f32 %v3720_v43, %v3091_v48 }
0x12c4   : > { %v3110_v54 = vmul.f32 %v3721_v49, %v6021_v50 }
0x12c5   : > { %v3109_v55 = vmul.f32 %v3721_v49, %v6023_v51 }
0x12c6   : > { %v3119_v56 = vadd.f32 %v3722_v53, %v3110_v54 }
0x12c7   : > { %v3118_v57 = vadd.f32 %v3722_v53, %v3109_v55 }
0x12c8   : > { %v3123_v58 = vsel %vm886_vm0, %v3119_v56, 0.0 }
0x12c9   : > { %3124 = vadd.xlane.f32.xlu1 %v3123_v58  ;;  %v3120_v4 = vsel %vm886_vm0, %v3118_v57, 0.0 }
0x12ca   : > { %3121 = vadd.xlane.f32.xlu0 %v3120_v4 }
0x1356   : > { %v3125_v59 = vpop.xlane.xlu1 %3124 }
0x1357   : > { %v3127_v0 = vmul.f32 0.03125, %v3125_v59  ;;  %v3122_v60 = vpop.xlane.xlu0 %3121 }
0x1358   : > { %v3126_v61 = vmul.f32 0.03125, %v3122_v60 }
0x1359   : > { %v3129_v62 = vsub.f32 %v3119_v56, %v3127_v0 }
0x135a   : > { %v3128_v63 = vsub.f32 %v3118_v57, %v3126_v61 }
0x135b   : > { %v3131_v1 = vmul.f32 %v3129_v62, %v3129_v62 }
0x135c   : > { %v3130_v5 = vmul.f32 %v3128_v63, %v3128_v63 }
0x135d   : > { %v3135_v3 = vsel %vm886_vm0, %v3131_v1, 0.0 }
0x135e   : > { %3136 = vadd.xlane.f32.xlu1 %v3135_v3  ;;  %v3132_v6 = vsel %vm886_vm0, %v3130_v5, 0.0 }
0x135f   : > { %3133 = vadd.xlane.f32.xlu0 %v3132_v6 }
0x13eb   : > { %v3137_v20 = vpop.xlane.xlu1 %3136 }
0x13ec   : > { %v3139_v21 = vmul.f32 0.03125, %v3137_v20  ;;  %v3134_v22 = vpop.xlane.xlu0 %3133 }
0x13ed   : > { %v3138_v23 = vmul.f32 0.03125, %v3134_v22 }
0x13ee   : > { %v3141_v24 = vadd.f32 1e-05, %v3139_v21 }
0x13ef   : > { %v3140_v25 = vadd.f32 1e-05, %v3138_v23 }
0x13f0   : > { %4541 = vrsqrt.f32 %v3141_v24 }
0x13f1   : > { %4543 = vrsqrt.f32 %v3140_v25 }
0x13fa   : > { %v4542_v26 = vpop.eup %4541 }
0x13fb   : > { %v4544_v27 = vpop.eup %4543  ;;  %v3145_v28 = vmul.f32 %v4542_v26, %v3129_v62 }
0x13fc   : > { %v3144_v9 = vmul.f32 %v4544_v27, %v3128_v63 }
0x13fd   : > { %v3147_v29 = vmul.f32 %v5891_v42, %v3145_v28 }
0x13fe   : > { %v3146_v30 = vmul.f32 %v5891_v42, %v3144_v9 }
0x13ff   : > { %v3149_v32 = vadd.f32 %v5893_v44, %v3147_v29 }
0x1400   : > { %v3148_v31 = vadd.f32 %v5893_v44, %v3146_v30  ;;  %v3726_v44 = vld [vmem:[#allocation31] ss:$0 sm:$0xff] }
0x1402   : > { %4084 = vmatprep.mubr.msk.f32.mxu1 %vm886_vm0, %v3148_v31 }
0x1403   : > { %4085 = vmatmul.mubr.msk.f32.vlgmr.msra.gmra.mrb[24].mxu1 %vm886_vm0, %v3149_v32 }
0x14d6   : > { %v4086_v37 = vpop.f32.mrb[24].mxu1 }
0x14d7   : > { %v3239_v38 = vadd.f32 %v4086_v37, %v3723_v36  ;;  %v3233_v39 = vpop.f32.mrb[25].mxu1 }
0x14d8   : > { %v3234_v42 = vadd.f32 %v3723_v36, %v3233_v39 }
0x14d9   : > { %v3243_v41 = vmax.f32 %v3239_v38, 0.0 }
0x14da   : > { %v3242_v40 = vmax.f32 %v3234_v42, 0.0 }
0x14dc   : > { %4103 = vmatprep.mubr.msk.f32.mxu0 %vm3259_vm4, %v3242_v40 }
0x14dd   : > { %4104 = vmatmul.mubr.msk.f32.vlgmr.msra.gmra.mrb[18].mxu0 %vm3259_vm4, %v3243_v41 }
0x15b0   : > { %v4105_v43 = vpop.f32.mrb[18].mxu0 }
0x15b1   : > { %v3338_v45 = vadd.f32 %v4105_v43, %v3726_v44  ;;  %v3332_v46 = vpop.f32.mrb[19].mxu0 }
0x15b2   : > { %v3333_v48 = vadd.f32 %v3726_v44, %v3332_v46 }
0x15b3   : > { %v3342_v49 = vadd.f32 %v3338_v45, %v6021_v50 }
0x15b4   : > { %v3341_v53 = vadd.f32 %v3333_v48, %v6023_v51 }
0x15b5   : > { %3344 = vst.msk [vmem:[%s863_s25 + $0x8] sm:$0xff] %vm886_vm0, %v3342_v49 }
0x15b6   : > { %3343 = vst.msk [vmem:[%s863_s25] sm:$0xff] %vm886_vm0, %v3341_v53 }
0x15b7   : > { %5092 = shalt.err (!%p5089_p0)
}
0x15b8   : > { %s5093_s23 = scalar_lea.hbm %s6044_s29, 256  ;;  %s5097_s20 = scalar_lea.hbm %s6202_s1, 512 }
0x15b9   : > { %p5094_p2 = scmp.ne.s32.totalorder %s6044_s29, %s5093_s23  ;;  %p5098_p11 = scmp.lt.u32.totalorder %s6044_s29, %s6202_s1 }
0x15ba   : > { %p5099_p12 = scmp.lt.u32.totalorder %s5097_s20, %s5093_s23  ;;  %p5101_p5 = scmp.lt.u32.totalorder %s5093_s23, %s6044_s29 }
0x15bb   : > { %p5095_p8 = pnand %p5094_p2, %p6203_p7 }
0x15bc   : > { %p5100_p3 = por %p5099_p12, %p5098_p11 }
0x15bd   : > { %p5096_p10 = pneg %p5095_p8 }
0x15be   : > { %p5102_p6 = por %p5101_p5, %p5100_p3 }
0x15c0   : > { %p5103_p9 = pnand %p5102_p6, %p5096_p10 }
0x15c2   : > { %5106 = shalt.err (!%p5103_p9)
}
0x15c3   : > { %s5207_s2 = smov 128   ;;  %s5208_s5 = smov 8  }
0x15c4   : > { %4346 = dma.vmem_to_hbm [thread:$0]  (%p6203_p7), %s6046_s18, 256, %s6044_s29, %s3346_s3, %s5207_s2, %s5207_s2, %s5208_s5  }
0x15c5 PF: > { %s6204_s25 = sld [smem:[#allocation44_spill]]  ;;  %s6205_s21 = sld [smem:[#allocation47_spill]] }
0x15c6   : > { %p6206_p4 = scmp.ne.s32.totalorder %s6172_s24, 0 }
0x15cb   : > { %s3374_s30 = sand.u32 1, %s6204_s25   ;;  %p6207_p1 = scmp.ge.s32.totalorder %s6205_s21, 2 }
0x15cc   : > { %s3375_s23 = scalar_lea.sflag [#allocation4], %s3374_s30 }
0x15cd   : > { %p4408_p13 = pnand %p6207_p1, %p6206_p4 }
0x15cf   : > { %5164 = dma.done.wait (!%p4408_p13), %s3375_s23, 256  }
0x15d0   : > { %5166 = vsyncadd (!%p4408_p13), %s3375_s23, 4294967040  ;;  %s6208_s0 = sld [smem:[#allocation45_spill]]  ;;  %s6209_s30 = sld [smem:[#allocation46_spill]] }
0x15d1   : > { %p41_p0 = scmp.ge.s32.totalorder %s5753_s22, 4   ;;  %s6210_s20 = smov %s5764_s26 }
0x15d2   : > { %s6211_s21 = smov %s5753_s22 }
0x15d3   :  { %43 = sbr.rel (!%p41_p0) target bundleno = 24 (0x18), region = 234 }
0x15da   :  { %3380 = vsyncpa [#allocation3], 1 }
0x15db   :  { %3382 = vsyncpa [#allocation3 + $0x1], 1 }
0x15dc   :  { %3383 = vsyncpa [#allocation6], 1 }
0x15dd   :  { %3384 = vsyncpa [#allocation9], 1 }
0x15de   :  { %3385 = vsyncpa [#allocation12], 1 }
0x15df   :  { %3386 = vsyncpa [#allocation15], 1 }
0x15e0   :  { %3387 = vsyncpa [#allocation18], 1 }
0x15e1   :  { %3388 = vsyncpa [#allocation21], 1 }
0x15e2   :  { %3389 = vsyncpa [#allocation24], 1 }
0x15e3   :  { %3390 = vsyncpa [#allocation27], 1 }
0x15e4   :  { %3391 = vsyncpa [#allocation30], 1 }
0x15e5   :  { %3392 = vsyncpa [#allocation4], 1 }
0x15e6   :  { %3394 = vsyncpa [#allocation4 + $0x1], 1 }

</bundles_post_ra>
